<compile_context>
chip_gen: v7x
topology: tpu7x:2x2x1
jax: 0.10.0
libtpu: 0.0.40
codegen_flags: <defaults>
</compile_context>

<pallas_src>
import functools
import numpy as np
import jax
import jax.numpy as jnp
from jax.experimental import pallas as pl
from jax.experimental.pallas import tpu as pltpu

# ----------------------------- configuration ------------------------------
BASE_WIDTH = 16
EXPANSION = 2
REPLACE_STRIDE_WITH_DILATION = (False, True, True)
NRSWD = 4 - sum(int(r) for r in REPLACE_STRIDE_WITH_DILATION)          # = 2
WIDTH = BASE_WIDTH * NRSWD * EXPANSION * (2 if REPLACE_STRIDE_WITH_DILATION[0] else 1)  # 64
IC = 1
OC = 1

_MIN_PALLAS_M = 256   # below this M, launch overhead dominates -> XLA einsum
_MIN_PALLAS_N = 16    # 1/2-channel outputs are lane-sparse -> XLA einsum


def _rup(x, m):
    return (x + m - 1) // m * m


# ------------------- fused matmul + bias + ReLU kernel ---------------------
# Single K block (full K), full-N block: one MXU dot per (M-tile) grid step,
# epilogue is just +bias (+ReLU). No accumulator scratch, no K phases.
def _fmm_kernel(x_ref, w_ref, b_ref, o_ref, *, relu):
    y = jnp.dot(x_ref[...], w_ref[...], preferred_element_type=jnp.float32)
    y = y + b_ref[...]
    if relu:
        y = jnp.maximum(y, 0.0)
    o_ref[...] = y.astype(o_ref.dtype)


def _pick_tm(m):
    for t in (512, 256, 128):
        if m % t == 0:
            return t, m
    return 128, _rup(m, 128)


def matmul_bias_act(xm, wm, bias, *, relu=True):
    """Y = act(xm @ wm + bias).  xm:(M,K) bf16, wm:(K,N) bf16, bias:(N,) f32."""
    M, K = xm.shape
    K2, N = wm.shape
    assert K == K2
    if M < _MIN_PALLAS_M or N < _MIN_PALLAS_N:
        # tiny /8-resolution, global-pool and 1-channel matmuls: XLA is cheaper
        y = jnp.dot(xm, wm, preferred_element_type=jnp.float32) + bias
        return jnp.maximum(y, 0.0) if relu else y

    tm, Mp = _pick_tm(M)
    xp = xm if Mp == M else jnp.pad(xm, ((0, Mp - M), (0, 0)))
    b2 = bias.reshape(1, N).astype(jnp.float32)

    out = pl.pallas_call(
        functools.partial(_fmm_kernel, relu=relu),
        out_shape=jax.ShapeDtypeStruct((Mp, N), jnp.float32),
        grid_spec=pltpu.PrefetchScalarGridSpec(
            num_scalar_prefetch=0,
            grid=(Mp // tm,),
            in_specs=[
                pl.BlockSpec((tm, K), lambda i: (i, 0)),   # x tile (full K)
                pl.BlockSpec((K, N), lambda i: (0, 0)),    # whole weight, resident
                pl.BlockSpec((1, N), lambda i: (0, 0)),    # bias, resident
            ],
            out_specs=pl.BlockSpec((tm, N), lambda i: (i, 0)),
        ),
        compiler_params=pltpu.CompilerParams(
            dimension_semantics=("parallel",)),
    )(xp, wm, b2)
    return out if Mp == M else out[:M]


# ---------------------------- conv3d via im2col ----------------------------
def conv3d(x, w, bias, *, stride=1, dilation=1, relu=True):
    """x: (N, D, H, W, Cin) f32, w: (k, k, k, Cin, Cout) bf16 (BN-folded).
    Replication ('edge') pad of size dilation*(k//2) == ReplicationPad3d +
    Conv3d(padding=0) — matches conv()/ASPPConv in the reference."""
    kd, kh, kw, cin, cout = w.shape
    pad = dilation * (kd // 2)
    if pad > 0:
        xp = jnp.pad(x, ((0, 0), (pad, pad), (pad, pad), (pad, pad), (0, 0)),
                     mode="edge")
    else:
        xp = x
    n, dp, hp, wp_, _ = xp.shape
    do = (dp - dilation * (kd - 1) - 1) // stride + 1
    ho = (hp - dilation * (kh - 1) - 1) // stride + 1
    wo = (wp_ - dilation * (kw - 1) - 1) // stride + 1

    # TODO(synk): a tap-loop conv kernel (grid axis over the 27 taps) would avoid
    #             materializing the im2col matrix in HBM; kept as JAX glue here.
    cols = []
    for a in range(kd):
        for b in range(kh):
            for c in range(kw):
                sl = xp[:,
                        a * dilation: a * dilation + stride * do: stride,
                        b * dilation: b * dilation + stride * ho: stride,
                        c * dilation: c * dilation + stride * wo: stride,
                        :]
                cols.append(sl)
    patches = jnp.concatenate(cols, axis=-1)               # (N,Do,Ho,Wo,Kvol*Cin)
    xm = patches.reshape(n * do * ho * wo, kd * kh * kw * cin).astype(jnp.bfloat16)
    wm = w.reshape(kd * kh * kw * cin, cout)
    ym = matmul_bias_act(xm, wm, bias, relu=relu)
    return ym.reshape(n, do, ho, wo, cout)


def conv_block(x, p, *, stride=1, dilation=1, relu=True):
    return conv3d(x, p["w"], p["bias"], stride=stride, dilation=dilation, relu=relu)


def conv_block_fused(x, plist, *, stride=1, dilation=1, relu=True):
    """Sibling convs sharing the same input & geometry -> one matmul, split cout."""
    w = jnp.concatenate([p["w"] for p in plist], axis=-1)
    b = jnp.concatenate([p["bias"] for p in plist], axis=0)
    y = conv3d(x, w, b, stride=stride, dilation=dilation, relu=relu)
    splits = [int(s) for s in np.cumsum([p["w"].shape[-1] for p in plist])[:-1]]
    return jnp.split(y, splits, axis=-1)


# -------------------- trilinear interpolation (align_corners) --------------
# TODO(synk): F.interpolate(trilinear, align_corners=True) is a data-dependent
#             gather with no clean Pallas equivalent; implemented as JAX glue.
def _interp_axis(x, out_len, axis):
    in_len = x.shape[axis]
    if in_len == out_len:
        return x
    if in_len == 1:
        return jnp.repeat(x, out_len, axis=axis)
    pos = jnp.arange(out_len, dtype=jnp.float32) * ((in_len - 1) / (out_len - 1))
    lo = jnp.clip(jnp.floor(pos).astype(jnp.int32), 0, in_len - 2)
    frac = pos - lo.astype(jnp.float32)
    x_lo = jnp.take(x, lo, axis=axis)
    x_hi = jnp.take(x, lo + 1, axis=axis)
    shp = [1] * x.ndim
    shp[axis] = out_len
    frac = frac.reshape(shp)
    return x_lo * (1.0 - frac) + x_hi * frac


def trilinear(x, size):          # x: (N, D, H, W, C)
    x = _interp_axis(x, size[0], 1)
    x = _interp_axis(x, size[1], 2)
    x = _interp_axis(x, size[2], 3)
    return x


def interpcat(x, r):             # torch.cat((interp(x, r spatial), r), dim=1)
    return jnp.concatenate([trilinear(x, r.shape[1:4]), r], axis=-1)


# ------------------------------- parameters --------------------------------
def make_conv(key, k, cin, cout, *, bias=False):
    kw_, kb, kg, kbt = jax.random.split(key, 4)
    w = jax.random.normal(kw_, (k, k, k, cin, cout), jnp.float32)
    w = w * (1.0 / np.sqrt(k * k * k * cin))
    if bias:  # plain Conv3d with bias, no BN
        scale = jnp.ones((cout,), jnp.float32)
        b = 0.01 * jax.random.normal(kb, (cout,), jnp.float32)
    else:     # Conv3d(bias=False) + BatchNorm3d folded (eval: mean=0, var=1)
        gamma = 1.0 + 0.05 * jax.random.normal(kg, (cout,), jnp.float32)
        beta = 0.05 * jax.random.normal(kbt, (cout,), jnp.float32)
        scale = gamma / jnp.sqrt(1.0 + 1e-5)
        b = beta
    # Fold BN scale into the weights; store bf16 for the MXU / halved HBM bytes.
    w = (w * scale).astype(jnp.bfloat16)
    return dict(w=w, bias=b)


def init_params(key):
    idx = [0]

    def nxt():
        idx[0] += 1
        return jax.random.fold_in(key, idx[0])

    P = {}
    P["orig_conv"] = make_conv(nxt(), 7, IC, 1)
    # backbone stand-in (see TODO(synk) at top)
    P["stem"] = make_conv(nxt(), 3, IC, BASE_WIDTH)
    P["layer2"] = make_conv(nxt(), 3, BASE_WIDTH, WIDTH // 2)
    P["layer3"] = make_conv(nxt(), 3, WIDTH // 2, WIDTH)
    P["start_conv"] = make_conv(nxt(), 1, BASE_WIDTH, BASE_WIDTH // 8)
    P["mid_conv"] = make_conv(nxt(), 1, WIDTH // 2, WIDTH // 4)
    # DeepLabHead(width, BASE_WIDTH, mid_channels=width) -> ASPP + tail
    P["aspp0"] = make_conv(nxt(), 1, WIDTH, WIDTH)
    P["aspp1"] = make_conv(nxt(), 3, WIDTH, WIDTH)
    P["aspp2"] = make_conv(nxt(), 3, WIDTH, WIDTH)
    P["aspp3"] = make_conv(nxt(), 3, WIDTH, WIDTH)
    P["aspp_pool"] = make_conv(nxt(), 1, WIDTH, WIDTH)
    P["project"] = make_conv(nxt(), 1, 5 * WIDTH, WIDTH)
    P["head_conv"] = make_conv(nxt(), 3, WIDTH, WIDTH)
    P["head_cls"] = make_conv(nxt(), 1, WIDTH, BASE_WIDTH, bias=True)
    # decoder
    P["end1_a"] = make_conv(nxt(), 3, BASE_WIDTH + WIDTH // 4, BASE_WIDTH)
    P["end1_b"] = make_conv(nxt(), 3, BASE_WIDTH, BASE_WIDTH)
    P["end2_a"] = make_conv(nxt(), 3, BASE_WIDTH + BASE_WIDTH // 8, BASE_WIDTH)
    P["end2_b"] = make_conv(nxt(), 3, BASE_WIDTH, BASE_WIDTH)
    P["syn_a"] = make_conv(nxt(), 3, BASE_WIDTH + 1, BASE_WIDTH)
    P["syn_out"] = make_conv(nxt(), 1, BASE_WIDTH, OC, bias=True)
    P["unc_a"] = make_conv(nxt(), 3, BASE_WIDTH + 1, BASE_WIDTH)
    P["unc_out"] = make_conv(nxt(), 1, BASE_WIDTH, OC, bias=True)
    return P


# --------------------------------- model -----------------------------------
def backbone(x, P):
    start = conv_block(x, P["stem"], stride=2)        # (N, D/2, ., ., BASE_WIDTH)
    mid = conv_block(start, P["layer2"], stride=2)    # (N, D/4, ., ., WIDTH//2)
    out = conv_block(mid, P["layer3"], stride=2)      # (N, D/8, ., ., WIDTH)
    return out, start, mid


def deeplab_head(x, P):
    size = x.shape[1:4]
    r0 = conv_block(x, P["aspp0"])                     # 1x1
    r1 = conv_block(x, P["aspp1"], dilation=6)         # ASPPConv(rate 6)
    r2 = conv_block(x, P["aspp2"], dilation=12)        # ASPPConv(rate 12)
    r3 = conv_block(x, P["aspp3"], dilation=18)        # ASPPConv(rate 18)
    gp = jnp.mean(x, axis=(1, 2, 3), keepdims=True)    # AdaptiveAvgPool3d(1)
    r4 = trilinear(conv_block(gp, P["aspp_pool"]), size)
    cat = jnp.concatenate([r0, r1, r2, r3, r4], axis=-1)
    y = conv_block(cat, P["project"])                  # project 1x1
    y = conv_block(y, P["head_conv"])                  # ReplicationPad(1)+3x3+BN+ReLU
    y = conv_block(y, P["head_cls"], relu=False)       # Conv3d(mid, num_classes, 1) + bias
    return y


def deeplab3d_forward(x_ncdhw, P):
    # to channels-last
    x = jnp.transpose(x_ncdhw, (0, 2, 3, 4, 1))                # (N, D, H, W, C)
    orig = conv_block(x, P["orig_conv"])                       # long_skip=True
    bx, start, mid = backbone(x, P)
    start = conv_block(start, P["start_conv"])
    mid = conv_block(mid, P["mid_conv"])
    h = deeplab_head(bx, P)
    # dropout: p=0.0, eval mode (bayesian=False) -> identity
    h = interpcat(h, mid)
    h = conv_block(conv_block(h, P["end1_a"]), P["end1_b"])    # end_1 (unet_block)
    h = interpcat(h, start)
    h = conv_block(conv_block(h, P["end2_a"]), P["end2_b"])    # end_2 (unet_block)
    h = interpcat(h, orig)
    # syn_a / unc_a share the same input -> fuse into one matmul (N = 32 lanes)
    syn_h, unc_h = conv_block_fused(h, [P["syn_a"], P["unc_a"]])
    yhat = conv_block(syn_h, P["syn_out"], relu=False)
    s = conv_block(unc_h, P["unc_out"], relu=False)
    # back to NCDHW
    yhat = jnp.transpose(yhat, (0, 4, 1, 2, 3))
    s = jnp.transpose(s, (0, 4, 1, 2, 3))
    return yhat, s


# ---------------------------------- main ------------------------------------
if __name__ == "__main__":
    key = jax.random.PRNGKey(0)
    N, D, H, W = 2, 16, 16, 16
    x = jax.random.normal(jax.random.fold_in(key, 12345), (N, IC, D, H, W),
                          jnp.float32)
    params = init_params(key)

    fwd = jax.jit(deeplab3d_forward)
    yhat, s = fwd(x, params)
    jax.block_until_ready((yhat, s))

    assert yhat.shape == (N, OC, D, H, W), yhat.shape
    assert s.shape == (N, OC, D, H, W), s.shape
    assert bool(jnp.all(jnp.isfinite(yhat))) and bool(jnp.all(jnp.isfinite(s)))
    print("KERNEL_OK")
</pallas_src>

<mosaic_0001>
module attributes {stable_mosaic.version = 11 : i64} {
  func.func @_fmm_kernel(%arg0: i32, %arg1: memref<512x27xbf16, #tpu.memory_space<vmem>>, %arg2: memref<27x16xbf16, #tpu.memory_space<vmem>>, %arg3: memref<1x16xf32, #tpu.memory_space<vmem>>, %arg4: memref<512x16xf32, #tpu.memory_space<vmem>>) attributes {dimension_semantics = [#tpu.dimension_semantics<parallel>], iteration_bounds = array<i64: 2>, scalar_prefetch = 0 : i64, scratch_operands = 0 : i64, tpu.core_type = #tpu.core_type<tc>, window_params = [{transform_indices = @transform_0, window_bounds = array<i64: 512, 27>}, {pipeline_mode = #tpu.pipeline_mode<synchronous>, transform_indices = @transform_1, window_bounds = array<i64: 27, 16>}, {pipeline_mode = #tpu.pipeline_mode<synchronous>, transform_indices = @transform_2, window_bounds = array<i64: 1, 16>}, {transform_indices = @transform_3, window_bounds = array<i64: 512, 16>}]} {
    %c0 = arith.constant 0 : index
    %c0_0 = arith.constant 0 : index
    %0 = vector.load %arg1[%c0, %c0_0] : memref<512x27xbf16, #tpu.memory_space<vmem>>, vector<512x27xbf16>
    %c0_1 = arith.constant 0 : index
    %c0_2 = arith.constant 0 : index
    %1 = vector.load %arg2[%c0_1, %c0_2] : memref<27x16xbf16, #tpu.memory_space<vmem>>, vector<27x16xbf16>
    %cst = arith.constant dense<0.000000e+00> : vector<512x16xf32>
    %2 = tpu.matmul %0, %1, %cst {dimension_numbers = #tpu.dot_dimension_numbers<[1], [0], [0], [1], [0, 0, 1, 1], [], []>} : vector<512x27xbf16>, vector<27x16xbf16>, vector<512x16xf32> -> vector<512x16xf32>
    %c0_3 = arith.constant 0 : index
    %c0_4 = arith.constant 0 : index
    %3 = vector.load %arg3[%c0_3, %c0_4] : memref<1x16xf32, #tpu.memory_space<vmem>>, vector<1x16xf32>
    %4 = vector.broadcast %3 : vector<1x16xf32> to vector<512x16xf32>
    %5 = arith.addf %2, %4 : vector<512x16xf32>
    %cst_5 = arith.constant 0.000000e+00 : f32
    %6 = vector.broadcast %cst_5 : f32 to vector<512x16xf32>
    %7 = arith.maximumf %5, %6 : vector<512x16xf32>
    %c0_6 = arith.constant 0 : index
    %c0_7 = arith.constant 0 : index
    %8 = vector.load %arg4[%c0_6, %c0_7] : memref<512x16xf32, #tpu.memory_space<vmem>>, vector<512x16xf32>
    tpu.vector_store %arg4[%c0_6, %c0_7], %7 {strides = array<i32>} : memref<512x16xf32, #tpu.memory_space<vmem>>, vector<512x16xf32>,
    return
  }
  func.func @transform_0(%arg0: i32) -> (i32, i32) {
    %c0_i32 = arith.constant 0 : i32
    %c0_i32_0 = arith.constant 0 : i32
    return %arg0, %c0_i32 : i32, i32
  }
  func.func @transform_1(%arg0: i32) -> (i32, i32) {
    %c0_i32 = arith.constant 0 : i32
    %c0_i32_0 = arith.constant 0 : i32
    %c0_i32_1 = arith.constant 0 : i32
    return %c0_i32, %c0_i32_0 : i32, i32
  }
  func.func @transform_2(%arg0: i32) -> (i32, i32) {
    %c0_i32 = arith.constant 0 : i32
    %c0_i32_0 = arith.constant 0 : i32
    %c0_i32_1 = arith.constant 0 : i32
    return %c0_i32, %c0_i32_0 : i32, i32
  }
  func.func @transform_3(%arg0: i32) -> (i32, i32) {
    %c0_i32 = arith.constant 0 : i32
    %c0_i32_0 = arith.constant 0 : i32
    return %arg0, %c0_i32 : i32, i32
  }
}

module attributes {stable_mosaic.version = 11 : i64} {
  func.func @_fmm_kernel(%arg0: i32, %arg1: memref<512x486xbf16, #tpu.memory_space<vmem>>, %arg2: memref<486x16xbf16, #tpu.memory_space<vmem>>, %arg3: memref<1x16xf32, #tpu.memory_space<vmem>>, %arg4: memref<512x16xf32, #tpu.memory_space<vmem>>) attributes {dimension_semantics = [#tpu.dimension_semantics<parallel>], iteration_bounds = array<i64: 2>, scalar_prefetch = 0 : i64, scratch_operands = 0 : i64, tpu.core_type = #tpu.core_type<tc>, window_params = [{transform_indices = @transform_0, window_bounds = array<i64: 512, 486>}, {pipeline_mode = #tpu.pipeline_mode<synchronous>, transform_indices = @transform_1, window_bounds = array<i64: 486, 16>}, {pipeline_mode = #tpu.pipeline_mode<synchronous>, transform_indices = @transform_2, window_bounds = array<i64: 1, 16>}, {transform_indices = @transform_3, window_bounds = array<i64: 512, 16>}]} {
    %c0 = arith.constant 0 : index
    %c0_0 = arith.constant 0 : index
    %0 = vector.load %arg1[%c0, %c0_0] : memref<512x486xbf16, #tpu.memory_space<vmem>>, vector<512x486xbf16>
    %c0_1 = arith.constant 0 : index
    %c0_2 = arith.constant 0 : index
    %1 = vector.load %arg2[%c0_1, %c0_2] : memref<486x16xbf16, #tpu.memory_space<vmem>>, vector<486x16xbf16>
    %cst = arith.constant dense<0.000000e+00> : vector<512x16xf32>
    %2 = tpu.matmul %0, %1, %cst {dimension_numbers = #tpu.dot_dimension_numbers<[1], [0], [0], [1], [0, 0, 1, 1], [], []>} : vector<512x486xbf16>, vector<486x16xbf16>, vector<512x16xf32> -> vector<512x16xf32>
    %c0_3 = arith.constant 0 : index
    %c0_4 = arith.constant 0 : index
    %3 = vector.load %arg3[%c0_3, %c0_4] : memref<1x16xf32, #tpu.memory_space<vmem>>, vector<1x16xf32>
    %4 = vector.broadcast %3 : vector<1x16xf32> to vector<512x16xf32>
    %5 = arith.addf %2, %4 : vector<512x16xf32>
    %cst_5 = arith.constant 0.000000e+00 : f32
    %6 = vector.broadcast %cst_5 : f32 to vector<512x16xf32>
    %7 = arith.maximumf %5, %6 : vector<512x16xf32>
    %c0_6 = arith.constant 0 : index
    %c0_7 = arith.constant 0 : index
    %8 = vector.load %arg4[%c0_6, %c0_7] : memref<512x16xf32, #tpu.memory_space<vmem>>, vector<512x16xf32>
    tpu.vector_store %arg4[%c0_6, %c0_7], %7 {strides = array<i32>} : memref<512x16xf32, #tpu.memory_space<vmem>>, vector<512x16xf32>,
    return
  }
  func.func @transform_0(%arg0: i32) -> (i32, i32) {
    %c0_i32 = arith.constant 0 : i32
    %c0_i32_0 = arith.constant 0 : i32
    return %arg0, %c0_i32 : i32, i32
  }
  func.func @transform_1(%arg0: i32) -> (i32, i32) {
    %c0_i32 = arith.constant 0 : i32
    %c0_i32_0 = arith.constant 0 : i32
    %c0_i32_1 = arith.constant 0 : i32
    return %c0_i32, %c0_i32_0 : i32, i32
  }
  func.func @transform_2(%arg0: i32) -> (i32, i32) {
    %c0_i32 = arith.constant 0 : i32
    %c0_i32_0 = arith.constant 0 : i32
    %c0_i32_1 = arith.constant 0 : i32
    return %c0_i32, %c0_i32_0 : i32, i32
  }
  func.func @transform_3(%arg0: i32) -> (i32, i32) {
    %c0_i32 = arith.constant 0 : i32
    %c0_i32_0 = arith.constant 0 : i32
    return %arg0, %c0_i32 : i32, i32
  }
}

module attributes {stable_mosaic.version = 11 : i64} {
  func.func @_fmm_kernel(%arg0: i32, %arg1: memref<512x432xbf16, #tpu.memory_space<vmem>>, %arg2: memref<432x16xbf16, #tpu.memory_space<vmem>>, %arg3: memref<1x16xf32, #tpu.memory_space<vmem>>, %arg4: memref<512x16xf32, #tpu.memory_space<vmem>>) attributes {dimension_semantics = [#tpu.dimension_semantics<parallel>], iteration_bounds = array<i64: 2>, scalar_prefetch = 0 : i64, scratch_operands = 0 : i64, tpu.core_type = #tpu.core_type<tc>, window_params = [{transform_indices = @transform_0, window_bounds = array<i64: 512, 432>}, {pipeline_mode = #tpu.pipeline_mode<synchronous>, transform_indices = @transform_1, window_bounds = array<i64: 432, 16>}, {pipeline_mode = #tpu.pipeline_mode<synchronous>, transform_indices = @transform_2, window_bounds = array<i64: 1, 16>}, {transform_indices = @transform_3, window_bounds = array<i64: 512, 16>}]} {
    %c0 = arith.constant 0 : index
    %c0_0 = arith.constant 0 : index
    %0 = vector.load %arg1[%c0, %c0_0] : memref<512x432xbf16, #tpu.memory_space<vmem>>, vector<512x432xbf16>
    %c0_1 = arith.constant 0 : index
    %c0_2 = arith.constant 0 : index
    %1 = vector.load %arg2[%c0_1, %c0_2] : memref<432x16xbf16, #tpu.memory_space<vmem>>, vector<432x16xbf16>
    %cst = arith.constant dense<0.000000e+00> : vector<512x16xf32>
    %2 = tpu.matmul %0, %1, %cst {dimension_numbers = #tpu.dot_dimension_numbers<[1], [0], [0], [1], [0, 0, 1, 1], [], []>} : vector<512x432xbf16>, vector<432x16xbf16>, vector<512x16xf32> -> vector<512x16xf32>
    %c0_3 = arith.constant 0 : index
    %c0_4 = arith.constant 0 : index
    %3 = vector.load %arg3[%c0_3, %c0_4] : memref<1x16xf32, #tpu.memory_space<vmem>>, vector<1x16xf32>
    %4 = vector.broadcast %3 : vector<1x16xf32> to vector<512x16xf32>
    %5 = arith.addf %2, %4 : vector<512x16xf32>
    %cst_5 = arith.constant 0.000000e+00 : f32
    %6 = vector.broadcast %cst_5 : f32 to vector<512x16xf32>
    %7 = arith.maximumf %5, %6 : vector<512x16xf32>
    %c0_6 = arith.constant 0 : index
    %c0_7 = arith.constant 0 : index
    %8 = vector.load %arg4[%c0_6, %c0_7] : memref<512x16xf32, #tpu.memory_space<vmem>>, vector<512x16xf32>
    tpu.vector_store %arg4[%c0_6, %c0_7], %7 {strides = array<i32>} : memref<512x16xf32, #tpu.memory_space<vmem>>, vector<512x16xf32>,
    return
  }
  func.func @transform_0(%arg0: i32) -> (i32, i32) {
    %c0_i32 = arith.constant 0 : i32
    %c0_i32_0 = arith.constant 0 : i32
    return %arg0, %c0_i32 : i32, i32
  }
  func.func @transform_1(%arg0: i32) -> (i32, i32) {
    %c0_i32 = arith.constant 0 : i32
    %c0_i32_0 = arith.constant 0 : i32
    %c0_i32_1 = arith.constant 0 : i32
    return %c0_i32, %c0_i32_0 : i32, i32
  }
  func.func @transform_2(%arg0: i32) -> (i32, i32) {
    %c0_i32 = arith.constant 0 : i32
    %c0_i32_0 = arith.constant 0 : i32
    %c0_i32_1 = arith.constant 0 : i32
    return %c0_i32, %c0_i32_0 : i32, i32
  }
  func.func @transform_3(%arg0: i32) -> (i32, i32) {
    %c0_i32 = arith.constant 0 : i32
    %c0_i32_0 = arith.constant 0 : i32
    return %arg0, %c0_i32 : i32, i32
  }
}

module attributes {stable_mosaic.version = 11 : i64} {
  func.func @_fmm_kernel(%arg0: i32, %arg1: memref<512x459xbf16, #tpu.memory_space<vmem>>, %arg2: memref<459x32xbf16, #tpu.memory_space<vmem>>, %arg3: memref<1x32xf32, #tpu.memory_space<vmem>>, %arg4: memref<512x32xf32, #tpu.memory_space<vmem>>) attributes {dimension_semantics = [#tpu.dimension_semantics<parallel>], iteration_bounds = array<i64: 16>, scalar_prefetch = 0 : i64, scratch_operands = 0 : i64, tpu.core_type = #tpu.core_type<tc>, window_params = [{transform_indices = @transform_0, window_bounds = array<i64: 512, 459>}, {pipeline_mode = #tpu.pipeline_mode<synchronous>, transform_indices = @transform_1, window_bounds = array<i64: 459, 32>}, {pipeline_mode = #tpu.pipeline_mode<synchronous>, transform_indices = @transform_2, window_bounds = array<i64: 1, 32>}, {transform_indices = @transform_3, window_bounds = array<i64: 512, 32>}]} {
    %c0 = arith.constant 0 : index
    %c0_0 = arith.constant 0 : index
    %0 = vector.load %arg1[%c0, %c0_0] : memref<512x459xbf16, #tpu.memory_space<vmem>>, vector<512x459xbf16>
    %c0_1 = arith.constant 0 : index
    %c0_2 = arith.constant 0 : index
    %1 = vector.load %arg2[%c0_1, %c0_2] : memref<459x32xbf16, #tpu.memory_space<vmem>>, vector<459x32xbf16>
    %cst = arith.constant dense<0.000000e+00> : vector<512x32xf32>
    %2 = tpu.matmul %0, %1, %cst {dimension_numbers = #tpu.dot_dimension_numbers<[1], [0], [0], [1], [0, 0, 1, 1], [], []>} : vector<512x459xbf16>, vector<459x32xbf16>, vector<512x32xf32> -> vector<512x32xf32>
    %c0_3 = arith.constant 0 : index
    %c0_4 = arith.constant 0 : index
    %3 = vector.load %arg3[%c0_3, %c0_4] : memref<1x32xf32, #tpu.memory_space<vmem>>, vector<1x32xf32>
    %4 = vector.broadcast %3 : vector<1x32xf32> to vector<512x32xf32>
    %5 = arith.addf %2, %4 : vector<512x32xf32>
    %cst_5 = arith.constant 0.000000e+00 : f32
    %6 = vector.broadcast %cst_5 : f32 to vector<512x32xf32>
    %7 = arith.maximumf %5, %6 : vector<512x32xf32>
    %c0_6 = arith.constant 0 : index
    %c0_7 = arith.constant 0 : index
    %8 = vector.load %arg4[%c0_6, %c0_7] : memref<512x32xf32, #tpu.memory_space<vmem>>, vector<512x32xf32>
    tpu.vector_store %arg4[%c0_6, %c0_7], %7 {strides = array<i32>} : memref<512x32xf32, #tpu.memory_space<vmem>>, vector<512x32xf32>,
    return
  }
  func.func @transform_0(%arg0: i32) -> (i32, i32) {
    %c0_i32 = arith.constant 0 : i32
    %c0_i32_0 = arith.constant 0 : i32
    return %arg0, %c0_i32 : i32, i32
  }
  func.func @transform_1(%arg0: i32) -> (i32, i32) {
    %c0_i32 = arith.constant 0 : i32
    %c0_i32_0 = arith.constant 0 : i32
    %c0_i32_1 = arith.constant 0 : i32
    return %c0_i32, %c0_i32_0 : i32, i32
  }
  func.func @transform_2(%arg0: i32) -> (i32, i32) {
    %c0_i32 = arith.constant 0 : i32
    %c0_i32_0 = arith.constant 0 : i32
    %c0_i32_1 = arith.constant 0 : i32
    return %c0_i32, %c0_i32_0 : i32, i32
  }
  func.func @transform_3(%arg0: i32) -> (i32, i32) {
    %c0_i32 = arith.constant 0 : i32
    %c0_i32_0 = arith.constant 0 : i32
    return %arg0, %c0_i32 : i32, i32
  }
}

</mosaic_0001>

<bundles_post_ra>
// kernel: deeplab3d_forward.4
= control target key start
LH: loop header
LB: loop body
LE: loop exit
PB: predicated region body
PF: predicated region fallthrough
CT: control target
= control target key end

     0   :  { %s1255_s12 = smov 0   ;;  %s1547_s0 = inlined_call_operand.vmem [shape: bf16[1024,27], index: 0, kind: input, shape index: {}]   ;;  %s1548_s1 = inlined_call_operand.vmem [shape: bf16[27,16], index: 1, kind: input, shape index: {}]   ;;  %s1549_s2 = inlined_call_operand.vmem [shape: f32[1,16], index: 2, kind: input, shape index: {}]   ;;  %s1550_s3 = inlined_call_operand.vmem [shape: f32[1024,16], index: 3, kind: output, shape index: {}]  }
   0x1 LB: > { %s999_s13 = sadd.s32 4294967295, %s1232_s12   ;;  %p1003_p0 = scmp.ge.s32.totalorder %s1232_s12, 1  ;;  %s1232_s12 = sphi %s1255_s12, %s13_s12  }
   0x2   : > { %p138_p1 = scmp.lt.s32.totalorder %s1232_s12, 3 }
   0x4   : > { %p139_p2 = pnand %p1003_p0, %p138_p1 }
   0x5   : > { %v1192_v0 = vld [vmem:[%s1548_s1] sm:$0xff] (!%p139_p2)   ;;  %vm518_vm0 = vcmask (!%p139_p2), 1044480   ;;  %v1193_v1 = vld [vmem:[%s1548_s1 + $0x8] sm:$0x3f] (!%p139_p2)   ;;  %vm519_vm1 = vcmask (!%p139_p2), 1045504   ;;  %s1004_s18 = sshll.u32 (!%p139_p2), %s999_s13, 6 }
   0x6   : > { %142 = sbr.rel (%p139_p2) target bundleno = 295 (0x127), region = 32  ;;  %1111 = vmatprep.subr.bf16.mxu0 (!%p139_p2), %v1192_v0  ;;  %1179 = vmatprep.subr.bf16.mxu1 (!%p139_p2), %v1192_v0  ;;  %v1234_v2 = vmov (!%p139_p2), 65535   ;;  %p163_p3 = scmp.lt.s32.totalorder (!%p139_p2), %s1004_s18, 127  ;;  %vm421_vm2 = vcmask (!%p139_p2), 220160   ;;  %v1344_v38 = vld [vmem:[%s1549_s2] ss:$0 sm:$0xff] (!%p139_p2) }
   0x7   : > { %1112 = vmatpush3.bf16.msra.mxu0 (!%p139_p2), %v1192_v0  ;;  %1181 = vmatpush3.bf16.msra.mxu1 (!%p139_p2), %v1192_v0  ;;  %v520_v3 = vsel (!%p139_p2), %vm518_vm0, 4294967295, %v1234_v2  ;;  %vm878_vm3 = vcmask (!%p139_p2), 130048  }
   0x8   : > { %v521_v4 = vsel (!%p139_p2), %vm519_vm1, %v520_v3, 0 }
   0x9   : > { %v523_v5 = vand.u32 (!%p139_p2), %v1193_v1, %v521_v4 }
   0xb   : > { %1113 = vmatprep.subr.bf16.mxu0 (!%p139_p2), %v523_v5  ;;  %1180 = vmatprep.subr.bf16.mxu1 (!%p139_p2), %v523_v5 }
   0xc   : > { %1114 = vmatpush3.bf16.msra.mxu0 (!%p139_p2), %v523_v5  ;;  %1182 = vmatpush3.bf16.msra.mxu1 (!%p139_p2), %v523_v5 }
   0xd   : > { %s1552_s18 = smov (!%p163_p3, %s1004_s18), 127 }
   0xe   : > { %s1005_s19 = sshll.u32 %s1552_s18, 2  ;;  %s1007_s25 = sshll.u32 %s1552_s18, 3 }
   0xf   : > { %s1275_s22 = scalar_lea.vmem %s1547_s0, %s1005_s19  ;;  %s1351_s28 = scalar_lea.vmem %s1550_s3, %s1007_s25 }
  0x10   : > { %v1194_v6 = vld [vmem:[%s1275_s22] sm:$0xff]   ;;  %v1196_v8 = vld [vmem:[%s1275_s22 + $0x8] sm:$0xff]   ;;  %v1198_v10 = vld [vmem:[%s1275_s22 + $0x10] sm:$0xff]  }
  0x11   : > { %v1195_v7 = vld [vmem:[%s1275_s22 + $0x80] sm:$0xff]   ;;  %1115 = vmatprep.mubr.msk.bf16.mxu0 %vm421_vm2, %v1194_v6  ;;  %v1197_v9 = vld [vmem:[%s1275_s22 + $0x88] sm:$0xff]   ;;  %v1199_v11 = vld [vmem:[%s1275_s22 + $0x90] sm:$0xff]  }
  0x12   : > { %1147 = vmatprep.mubr.msk.bf16.mxu1 %vm421_vm2, %v1195_v7  ;;  %1116 = vmatmul.mubr.msk.bf16.vlgmr.msra.gmra.mrb[0].mxu0 %vm421_vm2, %v1196_v8  ;;  %v1200_v12 = vld [vmem:[%s1275_s22 + $0x18] sm:$0xff]   ;;  %v1202_v14 = vld [vmem:[%s1275_s22 + $0x20] sm:$0xff]   ;;  %v1204_v16 = vld [vmem:[%s1275_s22 + $0x28] sm:$0xff]  }
  0x13   : > { %1148 = vmatmul.mubr.msk.bf16.vlgmr.msra.gmra.mrb[0].mxu1 %vm421_vm2, %v1197_v9  ;;  %1119 = vmatprep.mubr.msk.bf16.mxu0 %vm421_vm2, %v1198_v10  ;;  %v1201_v13 = vld [vmem:[%s1275_s22 + $0x98] sm:$0xff]   ;;  %v1203_v15 = vld [vmem:[%s1275_s22 + $0xa0] sm:$0xff]   ;;  %v1205_v17 = vld [vmem:[%s1275_s22 + $0xa8] sm:$0xff]  }
  0x14   : > { %1151 = vmatprep.mubr.msk.bf16.mxu1 %vm421_vm2, %v1199_v11  ;;  %v1206_v18 = vld [vmem:[%s1275_s22 + $0x30] sm:$0xff]   ;;  %v1208_v20 = vld [vmem:[%s1275_s22 + $0x38] sm:$0xff]   ;;  %v1210_v22 = vld [vmem:[%s1275_s22 + $0x40] sm:$0xff]  }
  0x15   : > { %v1207_v19 = vld [vmem:[%s1275_s22 + $0xb0] sm:$0xff]   ;;  %v1209_v21 = vld [vmem:[%s1275_s22 + $0xb8] sm:$0xff]   ;;  %v1211_v23 = vld [vmem:[%s1275_s22 + $0xc0] sm:$0xff]  }
  0x16   : > { %v1212_v24 = vld [vmem:[%s1275_s22 + $0x48] sm:$0xff]   ;;  %v1214_v26 = vld [vmem:[%s1275_s22 + $0x50] sm:$0xff]   ;;  %v1216_v28 = vld [vmem:[%s1275_s22 + $0x58] sm:$0xff]  }
  0x17   : > { %v1213_v25 = vld [vmem:[%s1275_s22 + $0xc8] sm:$0xff]   ;;  %v1215_v27 = vld [vmem:[%s1275_s22 + $0xd0] sm:$0xff]   ;;  %v1217_v29 = vld [vmem:[%s1275_s22 + $0xd8] sm:$0xff]  }
  0x18   : > { %v1218_v30 = vld [vmem:[%s1275_s22 + $0x60] sm:$0xff]   ;;  %v1220_v32 = vld [vmem:[%s1275_s22 + $0x68] sm:$0xff]   ;;  %v1222_v34 = vld [vmem:[%s1275_s22 + $0x70] sm:$0xff]  }
  0x19   : > { %v1219_v31 = vld [vmem:[%s1275_s22 + $0xe0] sm:$0xff]   ;;  %v1221_v33 = vld [vmem:[%s1275_s22 + $0xe8] sm:$0xff]   ;;  %v1223_v35 = vld [vmem:[%s1275_s22 + $0xf0] sm:$0xff]  }
  0x1a   : > { %1120 = vmatmul.mubr.msk.bf16.gmra.mrb[4].mxu0 %vm421_vm2, %v1200_v12  ;;  %v1224_v36 = vld [vmem:[%s1275_s22 + $0x78] sm:$0xff]  }
  0x1b   : > { %1152 = vmatmul.mubr.msk.bf16.gmra.mrb[4].mxu1 %vm421_vm2, %v1201_v13  ;;  %1123 = vmatprep.mubr.msk.bf16.mxu0 %vm421_vm2, %v1202_v14  ;;  %v1225_v37 = vld [vmem:[%s1275_s22 + $0xf8] sm:$0xff]  }
  0x1c   : > { %1155 = vmatprep.mubr.msk.bf16.mxu1 %vm421_vm2, %v1203_v15 }
  0x22   : > { %1124 = vmatmul.mubr.msk.bf16.gmra.mrb[8].mxu0 %vm421_vm2, %v1204_v16 }
  0x23   : > { %1156 = vmatmul.mubr.msk.bf16.gmra.mrb[8].mxu1 %vm421_vm2, %v1205_v17  ;;  %1127 = vmatprep.mubr.msk.bf16.mxu0 %vm421_vm2, %v1206_v18 }
  0x24   : > { %1159 = vmatprep.mubr.msk.bf16.mxu1 %vm421_vm2, %v1207_v19 }
  0x2a   : > { %1128 = vmatmul.mubr.msk.bf16.gmra.mrb[12].mxu0 %vm421_vm2, %v1208_v20 }
  0x2b   : > { %1160 = vmatmul.mubr.msk.bf16.gmra.mrb[12].mxu1 %vm421_vm2, %v1209_v21  ;;  %1131 = vmatprep.mubr.msk.bf16.mxu0 %vm421_vm2, %v1210_v22 }
  0x2c   : > { %1163 = vmatprep.mubr.msk.bf16.mxu1 %vm421_vm2, %v1211_v23 }
  0x32   : > { %1132 = vmatmul.mubr.msk.bf16.gmra.mrb[16].mxu0 %vm421_vm2, %v1212_v24 }
  0x33   : > { %1164 = vmatmul.mubr.msk.bf16.gmra.mrb[16].mxu1 %vm421_vm2, %v1213_v25  ;;  %1135 = vmatprep.mubr.msk.bf16.mxu0 %vm421_vm2, %v1214_v26 }
  0x34   : > { %1167 = vmatprep.mubr.msk.bf16.mxu1 %vm421_vm2, %v1215_v27 }
  0x3a   : > { %1136 = vmatmul.mubr.msk.bf16.gmra.mrb[20].mxu0 %vm421_vm2, %v1216_v28 }
  0x3b   : > { %1168 = vmatmul.mubr.msk.bf16.gmra.mrb[20].mxu1 %vm421_vm2, %v1217_v29  ;;  %1139 = vmatprep.mubr.msk.bf16.mxu0 %vm421_vm2, %v1218_v30 }
  0x3c   : > { %1171 = vmatprep.mubr.msk.bf16.mxu1 %vm421_vm2, %v1219_v31 }
  0x42   : > { %1140 = vmatmul.mubr.msk.bf16.gmra.mrb[24].mxu0 %vm421_vm2, %v1220_v32 }
  0x43   : > { %1172 = vmatmul.mubr.msk.bf16.gmra.mrb[24].mxu1 %vm421_vm2, %v1221_v33  ;;  %1143 = vmatprep.mubr.msk.bf16.mxu0 %vm421_vm2, %v1222_v34 }
  0x44   : > { %1175 = vmatprep.mubr.msk.bf16.mxu1 %vm421_vm2, %v1223_v35 }
  0x4a   : > { %1144 = vmatmul.mubr.msk.bf16.gmra.mrb[28].mxu0 %vm421_vm2, %v1224_v36 }
  0x4b   : > { %1176 = vmatmul.mubr.msk.bf16.gmra.mrb[28].mxu1 %vm421_vm2, %v1225_v37 }
  0xe5   : > { %v1117_v39 = vpop.f32.mrb[0].mxu0 }
  0xe6   : > { %v568_v40 = vadd.f32 %v1117_v39, %v1344_v38  ;;  %v1149_v41 = vpop.f32.mrb[0].mxu1  ;;  %v559_v42 = vpop.f32.mrb[1].mxu0 }
  0xe7   : > { %v696_v43 = vadd.f32 %v1149_v41, %v1344_v38  ;;  %v560_v44 = vadd.f32 %v1344_v38, %v559_v42  ;;  %v687_v45 = vpop.f32.mrb[1].mxu1  ;;  %v1118_v46 = vpop.f32.mrb[2].mxu0 }
  0xe8   : > { %v816_v47 = vmax.f32 %v568_v40, 0.0  ;;  %v688_v48 = vadd.f32 %v1344_v38, %v687_v45  ;;  %v571_v49 = vadd.f32 %v1118_v46, %v1344_v38  ;;  %v1150_v50 = vpop.f32.mrb[2].mxu1  ;;  %v562_v51 = vpop.f32.mrb[3].mxu0 }
  0xe9   : > { %v848_v52 = vmax.f32 %v696_v43, 0.0  ;;  %v814_v53 = vmax.f32 %v560_v44, 0.0  ;;  %v699_v54 = vadd.f32 %v1150_v50, %v1344_v38  ;;  %v563_v55 = vadd.f32 %v1344_v38, %v562_v51  ;;  %v690_v56 = vpop.f32.mrb[3].mxu1 }
  0xea   : > { %881 = vst.msk [vmem:[%s1351_s28 + $0x10] sm:$0xff] %vm878_vm3, %v816_v47  ;;  %v846_v57 = vmax.f32 %v688_v48, 0.0  ;;  %v817_v58 = vmax.f32 %v571_v49, 0.0  ;;  %v691_v59 = vadd.f32 %v1344_v38, %v690_v56 }
  0xeb   : > { %913 = vst.msk [vmem:[%s1351_s28 + $0x110] sm:$0xff] %vm878_vm3, %v848_v52  ;;  %879 = vst.msk [vmem:[%s1351_s28] sm:$0xff] %vm878_vm3, %v814_v53  ;;  %v849_v60 = vmax.f32 %v699_v54, 0.0  ;;  %v815_v61 = vmax.f32 %v563_v55, 0.0 }
  0xec   : > { %911 = vst.msk [vmem:[%s1351_s28 + $0x100] sm:$0xff] %vm878_vm3, %v846_v57  ;;  %882 = vst.msk [vmem:[%s1351_s28 + $0x18] sm:$0xff] %vm878_vm3, %v817_v58  ;;  %v847_v62 = vmax.f32 %v691_v59, 0.0 }
  0xed   : > { %914 = vst.msk [vmem:[%s1351_s28 + $0x118] sm:$0xff] %vm878_vm3, %v849_v60  ;;  %880 = vst.msk [vmem:[%s1351_s28 + $0x8] sm:$0xff] %vm878_vm3, %v815_v61  ;;  %v1121_v63 = vpop.f32.mrb[4].mxu0 }
  0xee   : > { %912 = vst.msk [vmem:[%s1351_s28 + $0x108] sm:$0xff] %vm878_vm3, %v847_v62  ;;  %v584_v0 = vadd.f32 %v1121_v63, %v1344_v38  ;;  %v1153_v1 = vpop.f32.mrb[4].mxu1  ;;  %v575_v2 = vpop.f32.mrb[5].mxu0 }
  0xef   : > { %v712_v3 = vadd.f32 %v1153_v1, %v1344_v38  ;;  %v576_v4 = vadd.f32 %v1344_v38, %v575_v2  ;;  %v703_v5 = vpop.f32.mrb[5].mxu1  ;;  %v1122_v6 = vpop.f32.mrb[6].mxu0 }
  0xf0   : > { %v820_v7 = vmax.f32 %v584_v0, 0.0  ;;  %v704_v8 = vadd.f32 %v1344_v38, %v703_v5  ;;  %v587_v9 = vadd.f32 %v1122_v6, %v1344_v38  ;;  %v1154_v10 = vpop.f32.mrb[6].mxu1  ;;  %v578_v11 = vpop.f32.mrb[7].mxu0 }
  0xf1   : > { %v852_v12 = vmax.f32 %v712_v3, 0.0  ;;  %v818_v13 = vmax.f32 %v576_v4, 0.0  ;;  %v715_v14 = vadd.f32 %v1154_v10, %v1344_v38  ;;  %v579_v15 = vadd.f32 %v1344_v38, %v578_v11  ;;  %v706_v16 = vpop.f32.mrb[7].mxu1 }
  0xf2   : > { %885 = vst.msk [vmem:[%s1351_s28 + $0x30] sm:$0xff] %vm878_vm3, %v820_v7  ;;  %v850_v17 = vmax.f32 %v704_v8, 0.0  ;;  %v821_v18 = vmax.f32 %v587_v9, 0.0  ;;  %v707_v19 = vadd.f32 %v1344_v38, %v706_v16 }
  0xf3   : > { %917 = vst.msk [vmem:[%s1351_s28 + $0x130] sm:$0xff] %vm878_vm3, %v852_v12  ;;  %883 = vst.msk [vmem:[%s1351_s28 + $0x20] sm:$0xff] %vm878_vm3, %v818_v13  ;;  %v853_v20 = vmax.f32 %v715_v14, 0.0  ;;  %v819_v21 = vmax.f32 %v579_v15, 0.0 }
  0xf4   : > { %915 = vst.msk [vmem:[%s1351_s28 + $0x120] sm:$0xff] %vm878_vm3, %v850_v17  ;;  %886 = vst.msk [vmem:[%s1351_s28 + $0x38] sm:$0xff] %vm878_vm3, %v821_v18  ;;  %v851_v22 = vmax.f32 %v707_v19, 0.0 }
  0xf5   : > { %918 = vst.msk [vmem:[%s1351_s28 + $0x138] sm:$0xff] %vm878_vm3, %v853_v20  ;;  %884 = vst.msk [vmem:[%s1351_s28 + $0x28] sm:$0xff] %vm878_vm3, %v819_v21  ;;  %v1125_v23 = vpop.f32.mrb[8].mxu0 }
  0xf6   : > { %916 = vst.msk [vmem:[%s1351_s28 + $0x128] sm:$0xff] %vm878_vm3, %v851_v22  ;;  %v600_v24 = vadd.f32 %v1125_v23, %v1344_v38  ;;  %v1157_v25 = vpop.f32.mrb[8].mxu1  ;;  %v591_v26 = vpop.f32.mrb[9].mxu0 }
  0xf7   : > { %v728_v27 = vadd.f32 %v1157_v25, %v1344_v38  ;;  %v592_v28 = vadd.f32 %v1344_v38, %v591_v26  ;;  %v719_v29 = vpop.f32.mrb[9].mxu1  ;;  %v1126_v30 = vpop.f32.mrb[10].mxu0 }
  0xf8   : > { %v824_v31 = vmax.f32 %v600_v24, 0.0  ;;  %v720_v32 = vadd.f32 %v1344_v38, %v719_v29  ;;  %v603_v33 = vadd.f32 %v1126_v30, %v1344_v38  ;;  %v1158_v34 = vpop.f32.mrb[10].mxu1  ;;  %v594_v35 = vpop.f32.mrb[11].mxu0 }
  0xf9   : > { %v856_v36 = vmax.f32 %v728_v27, 0.0  ;;  %v822_v37 = vmax.f32 %v592_v28, 0.0  ;;  %v731_v39 = vadd.f32 %v1158_v34, %v1344_v38  ;;  %v595_v40 = vadd.f32 %v1344_v38, %v594_v35  ;;  %v722_v41 = vpop.f32.mrb[11].mxu1 }
  0xfa   : > { %889 = vst.msk [vmem:[%s1351_s28 + $0x50] sm:$0xff] %vm878_vm3, %v824_v31  ;;  %v854_v42 = vmax.f32 %v720_v32, 0.0  ;;  %v825_v43 = vmax.f32 %v603_v33, 0.0  ;;  %v723_v44 = vadd.f32 %v1344_v38, %v722_v41 }
  0xfb   : > { %921 = vst.msk [vmem:[%s1351_s28 + $0x150] sm:$0xff] %vm878_vm3, %v856_v36  ;;  %887 = vst.msk [vmem:[%s1351_s28 + $0x40] sm:$0xff] %vm878_vm3, %v822_v37  ;;  %v857_v45 = vmax.f32 %v731_v39, 0.0  ;;  %v823_v46 = vmax.f32 %v595_v40, 0.0 }
  0xfc   : > { %919 = vst.msk [vmem:[%s1351_s28 + $0x140] sm:$0xff] %vm878_vm3, %v854_v42  ;;  %890 = vst.msk [vmem:[%s1351_s28 + $0x58] sm:$0xff] %vm878_vm3, %v825_v43  ;;  %v855_v47 = vmax.f32 %v723_v44, 0.0 }
  0xfd   : > { %922 = vst.msk [vmem:[%s1351_s28 + $0x158] sm:$0xff] %vm878_vm3, %v857_v45  ;;  %888 = vst.msk [vmem:[%s1351_s28 + $0x48] sm:$0xff] %vm878_vm3, %v823_v46  ;;  %v1129_v48 = vpop.f32.mrb[12].mxu0 }
  0xfe   : > { %920 = vst.msk [vmem:[%s1351_s28 + $0x148] sm:$0xff] %vm878_vm3, %v855_v47  ;;  %v616_v49 = vadd.f32 %v1129_v48, %v1344_v38  ;;  %v1161_v50 = vpop.f32.mrb[12].mxu1  ;;  %v607_v51 = vpop.f32.mrb[13].mxu0 }
  0xff   : > { %v744_v52 = vadd.f32 %v1161_v50, %v1344_v38  ;;  %v608_v53 = vadd.f32 %v1344_v38, %v607_v51  ;;  %v735_v54 = vpop.f32.mrb[13].mxu1  ;;  %v1130_v55 = vpop.f32.mrb[14].mxu0 }
 0x100   : > { %v828_v56 = vmax.f32 %v616_v49, 0.0  ;;  %v736_v57 = vadd.f32 %v1344_v38, %v735_v54  ;;  %v619_v58 = vadd.f32 %v1130_v55, %v1344_v38  ;;  %v1162_v59 = vpop.f32.mrb[14].mxu1  ;;  %v610_v60 = vpop.f32.mrb[15].mxu0 }
 0x101   : > { %v860_v61 = vmax.f32 %v744_v52, 0.0  ;;  %v826_v62 = vmax.f32 %v608_v53, 0.0  ;;  %v747_v63 = vadd.f32 %v1162_v59, %v1344_v38  ;;  %v611_v0 = vadd.f32 %v1344_v38, %v610_v60  ;;  %v738_v1 = vpop.f32.mrb[15].mxu1 }
 0x102   : > { %893 = vst.msk [vmem:[%s1351_s28 + $0x70] sm:$0xff] %vm878_vm3, %v828_v56  ;;  %v858_v2 = vmax.f32 %v736_v57, 0.0  ;;  %v829_v3 = vmax.f32 %v619_v58, 0.0  ;;  %v739_v4 = vadd.f32 %v1344_v38, %v738_v1 }
 0x103   : > { %925 = vst.msk [vmem:[%s1351_s28 + $0x170] sm:$0xff] %vm878_vm3, %v860_v61  ;;  %891 = vst.msk [vmem:[%s1351_s28 + $0x60] sm:$0xff] %vm878_vm3, %v826_v62  ;;  %v861_v5 = vmax.f32 %v747_v63, 0.0  ;;  %v827_v6 = vmax.f32 %v611_v0, 0.0 }
 0x104   : > { %923 = vst.msk [vmem:[%s1351_s28 + $0x160] sm:$0xff] %vm878_vm3, %v858_v2  ;;  %894 = vst.msk [vmem:[%s1351_s28 + $0x78] sm:$0xff] %vm878_vm3, %v829_v3  ;;  %v859_v7 = vmax.f32 %v739_v4, 0.0 }
 0x105   : > { %926 = vst.msk [vmem:[%s1351_s28 + $0x178] sm:$0xff] %vm878_vm3, %v861_v5  ;;  %892 = vst.msk [vmem:[%s1351_s28 + $0x68] sm:$0xff] %vm878_vm3, %v827_v6  ;;  %v1133_v8 = vpop.f32.mrb[16].mxu0 }
 0x106   : > { %924 = vst.msk [vmem:[%s1351_s28 + $0x168] sm:$0xff] %vm878_vm3, %v859_v7  ;;  %v632_v9 = vadd.f32 %v1133_v8, %v1344_v38  ;;  %v1165_v10 = vpop.f32.mrb[16].mxu1  ;;  %v623_v11 = vpop.f32.mrb[17].mxu0 }
 0x107   : > { %v760_v12 = vadd.f32 %v1165_v10, %v1344_v38  ;;  %v624_v13 = vadd.f32 %v1344_v38, %v623_v11  ;;  %v751_v14 = vpop.f32.mrb[17].mxu1  ;;  %v1134_v15 = vpop.f32.mrb[18].mxu0 }
 0x108   : > { %v832_v16 = vmax.f32 %v632_v9, 0.0  ;;  %v752_v17 = vadd.f32 %v1344_v38, %v751_v14  ;;  %v635_v18 = vadd.f32 %v1134_v15, %v1344_v38  ;;  %v1166_v19 = vpop.f32.mrb[18].mxu1  ;;  %v626_v20 = vpop.f32.mrb[19].mxu0 }
 0x109   : > { %v864_v21 = vmax.f32 %v760_v12, 0.0  ;;  %v830_v22 = vmax.f32 %v624_v13, 0.0  ;;  %v763_v23 = vadd.f32 %v1166_v19, %v1344_v38  ;;  %v627_v24 = vadd.f32 %v1344_v38, %v626_v20  ;;  %v754_v25 = vpop.f32.mrb[19].mxu1 }
 0x10a   : > { %897 = vst.msk [vmem:[%s1351_s28 + $0x90] sm:$0xff] %vm878_vm3, %v832_v16  ;;  %v862_v26 = vmax.f32 %v752_v17, 0.0  ;;  %v833_v27 = vmax.f32 %v635_v18, 0.0  ;;  %v755_v28 = vadd.f32 %v1344_v38, %v754_v25 }
 0x10b   : > { %929 = vst.msk [vmem:[%s1351_s28 + $0x190] sm:$0xff] %vm878_vm3, %v864_v21  ;;  %895 = vst.msk [vmem:[%s1351_s28 + $0x80] sm:$0xff] %vm878_vm3, %v830_v22  ;;  %v865_v29 = vmax.f32 %v763_v23, 0.0  ;;  %v831_v30 = vmax.f32 %v627_v24, 0.0 }
 0x10c   : > { %927 = vst.msk [vmem:[%s1351_s28 + $0x180] sm:$0xff] %vm878_vm3, %v862_v26  ;;  %898 = vst.msk [vmem:[%s1351_s28 + $0x98] sm:$0xff] %vm878_vm3, %v833_v27  ;;  %v863_v31 = vmax.f32 %v755_v28, 0.0 }
 0x10d   : > { %930 = vst.msk [vmem:[%s1351_s28 + $0x198] sm:$0xff] %vm878_vm3, %v865_v29  ;;  %896 = vst.msk [vmem:[%s1351_s28 + $0x88] sm:$0xff] %vm878_vm3, %v831_v30  ;;  %v1137_v32 = vpop.f32.mrb[20].mxu0 }
 0x10e   : > { %928 = vst.msk [vmem:[%s1351_s28 + $0x188] sm:$0xff] %vm878_vm3, %v863_v31  ;;  %v648_v33 = vadd.f32 %v1137_v32, %v1344_v38  ;;  %v1169_v34 = vpop.f32.mrb[20].mxu1  ;;  %v639_v35 = vpop.f32.mrb[21].mxu0 }
 0x10f   : > { %v776_v36 = vadd.f32 %v1169_v34, %v1344_v38  ;;  %v640_v37 = vadd.f32 %v1344_v38, %v639_v35  ;;  %v767_v39 = vpop.f32.mrb[21].mxu1  ;;  %v1138_v40 = vpop.f32.mrb[22].mxu0 }
 0x110   : > { %v836_v41 = vmax.f32 %v648_v33, 0.0  ;;  %v768_v42 = vadd.f32 %v1344_v38, %v767_v39  ;;  %v651_v43 = vadd.f32 %v1138_v40, %v1344_v38  ;;  %v1170_v44 = vpop.f32.mrb[22].mxu1  ;;  %v642_v45 = vpop.f32.mrb[23].mxu0 }
 0x111   : > { %v868_v46 = vmax.f32 %v776_v36, 0.0  ;;  %v834_v47 = vmax.f32 %v640_v37, 0.0  ;;  %v779_v48 = vadd.f32 %v1170_v44, %v1344_v38  ;;  %v643_v49 = vadd.f32 %v1344_v38, %v642_v45  ;;  %v770_v50 = vpop.f32.mrb[23].mxu1 }
 0x112   : > { %901 = vst.msk [vmem:[%s1351_s28 + $0xb0] sm:$0xff] %vm878_vm3, %v836_v41  ;;  %v866_v51 = vmax.f32 %v768_v42, 0.0  ;;  %v837_v52 = vmax.f32 %v651_v43, 0.0  ;;  %v771_v53 = vadd.f32 %v1344_v38, %v770_v50 }
 0x113   : > { %933 = vst.msk [vmem:[%s1351_s28 + $0x1b0] sm:$0xff] %vm878_vm3, %v868_v46  ;;  %899 = vst.msk [vmem:[%s1351_s28 + $0xa0] sm:$0xff] %vm878_vm3, %v834_v47  ;;  %v869_v54 = vmax.f32 %v779_v48, 0.0  ;;  %v835_v55 = vmax.f32 %v643_v49, 0.0 }
 0x114   : > { %931 = vst.msk [vmem:[%s1351_s28 + $0x1a0] sm:$0xff] %vm878_vm3, %v866_v51  ;;  %902 = vst.msk [vmem:[%s1351_s28 + $0xb8] sm:$0xff] %vm878_vm3, %v837_v52  ;;  %v867_v56 = vmax.f32 %v771_v53, 0.0 }
 0x115   : > { %934 = vst.msk [vmem:[%s1351_s28 + $0x1b8] sm:$0xff] %vm878_vm3, %v869_v54  ;;  %900 = vst.msk [vmem:[%s1351_s28 + $0xa8] sm:$0xff] %vm878_vm3, %v835_v55  ;;  %v1141_v57 = vpop.f32.mrb[24].mxu0 }
 0x116   : > { %932 = vst.msk [vmem:[%s1351_s28 + $0x1a8] sm:$0xff] %vm878_vm3, %v867_v56  ;;  %v664_v58 = vadd.f32 %v1141_v57, %v1344_v38  ;;  %v1173_v59 = vpop.f32.mrb[24].mxu1  ;;  %v655_v60 = vpop.f32.mrb[25].mxu0 }
 0x117   : > { %v792_v61 = vadd.f32 %v1173_v59, %v1344_v38  ;;  %v656_v62 = vadd.f32 %v1344_v38, %v655_v60  ;;  %v783_v63 = vpop.f32.mrb[25].mxu1  ;;  %v1142_v0 = vpop.f32.mrb[26].mxu0 }
 0x118   : > { %v840_v1 = vmax.f32 %v664_v58, 0.0  ;;  %v784_v2 = vadd.f32 %v1344_v38, %v783_v63  ;;  %v667_v3 = vadd.f32 %v1142_v0, %v1344_v38  ;;  %v1174_v4 = vpop.f32.mrb[26].mxu1  ;;  %v658_v5 = vpop.f32.mrb[27].mxu0 }
 0x119   : > { %v872_v6 = vmax.f32 %v792_v61, 0.0  ;;  %v838_v7 = vmax.f32 %v656_v62, 0.0  ;;  %v795_v8 = vadd.f32 %v1174_v4, %v1344_v38  ;;  %v659_v9 = vadd.f32 %v1344_v38, %v658_v5  ;;  %v786_v10 = vpop.f32.mrb[27].mxu1 }
 0x11a   : > { %905 = vst.msk [vmem:[%s1351_s28 + $0xd0] sm:$0xff] %vm878_vm3, %v840_v1  ;;  %v870_v11 = vmax.f32 %v784_v2, 0.0  ;;  %v841_v12 = vmax.f32 %v667_v3, 0.0  ;;  %v787_v13 = vadd.f32 %v1344_v38, %v786_v10 }
 0x11b   : > { %937 = vst.msk [vmem:[%s1351_s28 + $0x1d0] sm:$0xff] %vm878_vm3, %v872_v6  ;;  %903 = vst.msk [vmem:[%s1351_s28 + $0xc0] sm:$0xff] %vm878_vm3, %v838_v7  ;;  %v873_v14 = vmax.f32 %v795_v8, 0.0  ;;  %v839_v15 = vmax.f32 %v659_v9, 0.0 }
 0x11c   : > { %935 = vst.msk [vmem:[%s1351_s28 + $0x1c0] sm:$0xff] %vm878_vm3, %v870_v11  ;;  %906 = vst.msk [vmem:[%s1351_s28 + $0xd8] sm:$0xff] %vm878_vm3, %v841_v12  ;;  %v871_v16 = vmax.f32 %v787_v13, 0.0 }
 0x11d   : > { %938 = vst.msk [vmem:[%s1351_s28 + $0x1d8] sm:$0xff] %vm878_vm3, %v873_v14  ;;  %904 = vst.msk [vmem:[%s1351_s28 + $0xc8] sm:$0xff] %vm878_vm3, %v839_v15  ;;  %v1145_v17 = vpop.f32.mrb[28].mxu0 }
 0x11e   : > { %936 = vst.msk [vmem:[%s1351_s28 + $0x1c8] sm:$0xff] %vm878_vm3, %v871_v16  ;;  %v680_v18 = vadd.f32 %v1145_v17, %v1344_v38  ;;  %v1177_v19 = vpop.f32.mrb[28].mxu1  ;;  %v671_v20 = vpop.f32.mrb[29].mxu0 }
 0x11f   : > { %v808_v21 = vadd.f32 %v1177_v19, %v1344_v38  ;;  %v672_v22 = vadd.f32 %v1344_v38, %v671_v20  ;;  %v799_v23 = vpop.f32.mrb[29].mxu1  ;;  %v1146_v24 = vpop.f32.mrb[30].mxu0 }
 0x120   : > { %v844_v25 = vmax.f32 %v680_v18, 0.0  ;;  %v800_v26 = vadd.f32 %v1344_v38, %v799_v23  ;;  %v683_v27 = vadd.f32 %v1146_v24, %v1344_v38  ;;  %v1178_v28 = vpop.f32.mrb[30].mxu1  ;;  %v674_v29 = vpop.f32.mrb[31].mxu0 }
 0x121   : > { %v876_v30 = vmax.f32 %v808_v21, 0.0  ;;  %v842_v31 = vmax.f32 %v672_v22, 0.0  ;;  %v811_v32 = vadd.f32 %v1178_v28, %v1344_v38  ;;  %v675_v33 = vadd.f32 %v1344_v38, %v674_v29  ;;  %v802_v34 = vpop.f32.mrb[31].mxu1 }
 0x122   : > { %909 = vst.msk [vmem:[%s1351_s28 + $0xf0] sm:$0xff] %vm878_vm3, %v844_v25  ;;  %v874_v35 = vmax.f32 %v800_v26, 0.0  ;;  %v845_v36 = vmax.f32 %v683_v27, 0.0  ;;  %v803_v37 = vadd.f32 %v1344_v38, %v802_v34 }
 0x123   : > { %941 = vst.msk [vmem:[%s1351_s28 + $0x1f0] sm:$0xff] %vm878_vm3, %v876_v30  ;;  %907 = vst.msk [vmem:[%s1351_s28 + $0xe0] sm:$0xff] %vm878_vm3, %v842_v31  ;;  %v877_v39 = vmax.f32 %v811_v32, 0.0  ;;  %v843_v40 = vmax.f32 %v675_v33, 0.0 }
 0x124   : > { %939 = vst.msk [vmem:[%s1351_s28 + $0x1e0] sm:$0xff] %vm878_vm3, %v874_v35  ;;  %910 = vst.msk [vmem:[%s1351_s28 + $0xf8] sm:$0xff] %vm878_vm3, %v845_v36  ;;  %v875_v41 = vmax.f32 %v803_v37, 0.0 }
 0x125   : > { %942 = vst.msk [vmem:[%s1351_s28 + $0x1f8] sm:$0xff] %vm878_vm3, %v877_v39  ;;  %908 = vst.msk [vmem:[%s1351_s28 + $0xe8] sm:$0xff] %vm878_vm3, %v843_v40 }
 0x126   : > { %940 = vst.msk [vmem:[%s1351_s28 + $0x1e8] sm:$0xff] %vm878_vm3, %v875_v41 }
 0x127 PF: > { %s13_s12 = sadd.s32 1, %s1232_s12  }
 0x128   : > { %p10_p4 = scmp.ge.s32.totalorder %s13_s12, 4  }
 0x12a   :  { %12 = sbr.rel (!%p10_p4) target bundleno = 1 (0x1), region = 62 }

// kernel: deeplab3d_forward.5
= control target key start
LH: loop header
LB: loop body
LE: loop exit
PB: predicated region body
PF: predicated region fallthrough
CT: control target
= control target key end

     0   :  { %s2624_s12 = smov 0   ;;  %s3130_s0 = inlined_call_operand.vmem [shape: bf16[1024,486], index: 0, kind: input, shape index: {}]   ;;  %s3131_s1 = inlined_call_operand.vmem [shape: bf16[486,16], index: 1, kind: input, shape index: {}]   ;;  %s3132_s2 = inlined_call_operand.vmem [shape: f32[1,16], index: 2, kind: input, shape index: {}]   ;;  %s3133_s3 = inlined_call_operand.vmem [shape: f32[1024,16], index: 3, kind: output, shape index: {}]  }
   0x1 LB: > { %s2029_s13 = sadd.s32 4294967295, %s2601_s12   ;;  %p2033_p0 = scmp.ge.s32.totalorder %s2601_s12, 1  ;;  %s2601_s12 = sphi %s2624_s12, %s13_s12  }
   0x2   : > { %p139_p1 = scmp.lt.s32.totalorder %s2601_s12, 3 }
   0x4   : > { %p140_p2 = pnand %p2033_p0, %p139_p1 }
   0x5   : > { %v2371_v0 = vld [vmem:[%s3131_s1] sm:$0xff] (!%p140_p2)   ;;  %v2603_v1 = vmov (!%p140_p2), 0   ;;  %v2373_v3 = vld [vmem:[%s3131_s1 + $0x8] sm:$0xff] (!%p140_p2)   ;;  %v2375_v5 = vld [vmem:[%s3131_s1 + $0x10] sm:$0xff] (!%p140_p2)   ;;  %s2034_s5 = sshll.u32 (!%p140_p2), %s2029_s13, 6  ;;  %vm1165_vm0 = vcmask (!%p140_p2), 834560  }
   0x6   : > { %143 = sbr.rel (%p140_p2) target bundleno = 539 (0x21b), region = 32  ;;  %1266 = vmatprep.subr.bf16.mxu1 (!%p140_p2), %v2603_v1  ;;  %1555 = vmatprep.subr.bf16.mxu0 (!%p140_p2), %v2603_v1  ;;  %v2372_v2 = vld [vmem:[%s3131_s1 + $0x80] sm:$0xff] (!%p140_p2)   ;;  %v2374_v4 = vld [vmem:[%s3131_s1 + $0x88] sm:$0xff] (!%p140_p2)   ;;  %v2376_v6 = vld [vmem:[%s3131_s1 + $0x90] sm:$0xff] (!%p140_p2)   ;;  %p165_p3 = scmp.lt.s32.totalorder (!%p140_p2), %s2034_s5, 127  ;;  %vm1262_vm1 = vcmask (!%p140_p2), 1042432  }
   0x7   : > { %1267 = vmatpush1.bf16.msra.mxu1 (!%p140_p2), %v2371_v0  ;;  %1556 = vmatpush1.bf16.msra.mxu0 (!%p140_p2), %v2372_v2  ;;  %v2377_v7 = vld [vmem:[%s3131_s1 + $0x18] sm:$0xff] (!%p140_p2)   ;;  %v2379_v9 = vld [vmem:[%s3131_s1 + $0x20] sm:$0xff] (!%p140_p2)   ;;  %v2381_v11 = vld [vmem:[%s3131_s1 + $0x28] sm:$0xff] (!%p140_p2)   ;;  %vm1908_vm2 = vcmask (!%p140_p2), 130048  }
   0x8   : > { %1268 = vmatprep.subr.bf16.mxu1 (!%p140_p2), %v2603_v1  ;;  %1557 = vmatprep.subr.bf16.mxu0 (!%p140_p2), %v2603_v1  ;;  %v2378_v8 = vld [vmem:[%s3131_s1 + $0x98] sm:$0xff] (!%p140_p2)   ;;  %v2380_v10 = vld [vmem:[%s3131_s1 + $0xa0] sm:$0xff] (!%p140_p2)   ;;  %v2382_v12 = vld [vmem:[%s3131_s1 + $0xa8] sm:$0xff] (!%p140_p2)  }
   0x9   : > { %v2383_v13 = vld [vmem:[%s3131_s1 + $0x30] sm:$0xff] (!%p140_p2)   ;;  %v2385_v15 = vld [vmem:[%s3131_s1 + $0x38] sm:$0xff] (!%p140_p2)   ;;  %v2387_v17 = vld [vmem:[%s3131_s1 + $0x40] sm:$0xff] (!%p140_p2)  }
   0xa   : > { %v2384_v14 = vld [vmem:[%s3131_s1 + $0xb0] sm:$0xff] (!%p140_p2)   ;;  %v2386_v16 = vld [vmem:[%s3131_s1 + $0xb8] sm:$0xff] (!%p140_p2)   ;;  %v2388_v18 = vld [vmem:[%s3131_s1 + $0xc0] sm:$0xff] (!%p140_p2)  }
   0xb   : > { %1269 = vmatpush1.bf16.msra.mxu1 (!%p140_p2), %v2373_v3  ;;  %1558 = vmatpush1.bf16.msra.mxu0 (!%p140_p2), %v2374_v4  ;;  %v2389_v21 = vld [vmem:[%s3131_s1 + $0x48] sm:$0xff] (!%p140_p2)   ;;  %v2391_v23 = vld [vmem:[%s3131_s1 + $0x50] sm:$0xff] (!%p140_p2)   ;;  %v2393_v25 = vld [vmem:[%s3131_s1 + $0x58] sm:$0xff] (!%p140_p2)  }
   0xc   : > { %1270 = vmatprep.subr.bf16.mxu1 (!%p140_p2), %v2603_v1  ;;  %1559 = vmatprep.subr.bf16.mxu0 (!%p140_p2), %v2603_v1  ;;  %v2390_v22 = vld [vmem:[%s3131_s1 + $0xc8] sm:$0xff] (!%p140_p2)   ;;  %v2392_v24 = vld [vmem:[%s3131_s1 + $0xd0] sm:$0xff] (!%p140_p2)   ;;  %v2394_v26 = vld [vmem:[%s3131_s1 + $0xd8] sm:$0xff] (!%p140_p2)  }
   0xd   : > { %s3135_s5 = smov (!%p165_p3, %s2034_s5), 127  ;;  %v2395_v27 = vld [vmem:[%s3131_s1 + $0x60] sm:$0xff]   ;;  %v2397_v29 = vld [vmem:[%s3131_s1 + $0x68] sm:$0xff]   ;;  %v2400_v31 = vld [vmem:[%s3131_s1 + $0xf0] ss:$0 sps:$4 sm:$0x77]  }
   0xe   : > { %s2233_s17 = sshll.u32 %s3135_s5, 4  ;;  %v2396_v28 = vld [vmem:[%s3131_s1 + $0xe0] sm:$0xff]   ;;  %v2398_v30 = vld [vmem:[%s3131_s1 + $0xe8] sm:$0xff]   ;;  %v2399_v32 = vld [vmem:[%s3131_s1 + $0x70] sm:$0xff]   ;;  %v1264_v33 = vsel %vm1262_vm1, %v2400_v31, 0  ;;  %s2038_s7 = sshll.u32 %s3135_s5, 3 }
   0xf   : > { %1271 = vmatpush1.bf16.msra.mxu1 %v2375_v5  ;;  %1560 = vmatpush1.bf16.msra.mxu0 %v2376_v6  ;;  %s2704_s24 = scalar_lea.vmem %s3130_s0, %s2233_s17  ;;  %v2401_v34 = vld [vmem:[%s3131_s1 + $0x78] sm:$0xff]   ;;  %s2920_s10 = scalar_lea.vmem %s3133_s3, %s2038_s7 }
  0x10   : > { %1272 = vmatprep.subr.bf16.mxu1 %v2603_v1  ;;  %1561 = vmatprep.subr.bf16.mxu0 %v2603_v1  ;;  %v2404_v19 = vld [vmem:[%s2704_s24 + $0xc] ss:$16 sps:$4 sm:$0xff]   ;;  %v2407_v20 = vld [vmem:[%s2704_s24 + $0x4] ss:$16 sps:$4 sm:$0xff]   ;;  %v2402_v35 = vld [vmem:[%s2704_s24 + $0x8] ss:$16 sps:$4 sm:$0xff]  }
  0x11   : > { %2199 = vmatprep.mubr.msk.bf16.mxu0 %vm1165_vm0, %v2404_v19  ;;  %1298 = vmatprep.mubr.bf16.mxu1 %v2407_v20  ;;  %v2408_v36 = vld [vmem:[%s2704_s24 + $0x2c] ss:$16 sps:$4 sm:$0xff]   ;;  %v2405_v37 = vld [vmem:[%s2704_s24] ss:$16 sps:$4 sm:$0xff]   ;;  %v2410_v38 = vld [vmem:[%s2704_s24 + $0x24] ss:$16 sps:$4 sm:$0xff]  }
  0x12   : > { %v2412_v39 = vld [vmem:[%s2704_s24 + $0x28] ss:$16 sps:$4 sm:$0xff]   ;;  %v2414_v40 = vld [vmem:[%s2704_s24 + $0x4c] ss:$16 sps:$4 sm:$0xff]   ;;  %v2413_v41 = vld [vmem:[%s2704_s24 + $0x20] ss:$16 sps:$4 sm:$0xff]  }
  0x13   : > { %1273 = vmatpush1.bf16.msra.mxu1 %v2377_v7  ;;  %1562 = vmatpush1.bf16.msra.mxu0 %v2378_v8  ;;  %v2416_v42 = vld [vmem:[%s2704_s24 + $0x44] ss:$16 sps:$4 sm:$0xff]   ;;  %v2418_v43 = vld [vmem:[%s2704_s24 + $0x48] ss:$16 sps:$4 sm:$0xff]   ;;  %v2420_v44 = vld [vmem:[%s2704_s24 + $0x6c] ss:$16 sps:$4 sm:$0xff]  }
  0x14   : > { %1274 = vmatprep.subr.bf16.mxu1 %v2603_v1  ;;  %1563 = vmatprep.subr.bf16.mxu0 %v2603_v1  ;;  %v2419_v45 = vld [vmem:[%s2704_s24 + $0x40] ss:$16 sps:$4 sm:$0xff]   ;;  %v2422_v46 = vld [vmem:[%s2704_s24 + $0x64] ss:$16 sps:$4 sm:$0xff]   ;;  %v2424_v47 = vld [vmem:[%s2704_s24 + $0x68] ss:$16 sps:$4 sm:$0xff]  }
  0x15   : > { %v2425_v48 = vld [vmem:[%s2704_s24 + $0x60] ss:$16 sps:$4 sm:$0xff]   ;;  %v2426_v49 = vld [vmem:[%s2704_s24 + $0x8c] ss:$16 sps:$4 sm:$0xff]   ;;  %v2428_v50 = vld [vmem:[%s2704_s24 + $0x84] ss:$16 sps:$4 sm:$0xff]  }
  0x16   : > { %v2430_v51 = vld [vmem:[%s2704_s24 + $0x88] ss:$16 sps:$4 sm:$0xff]   ;;  %v2432_v52 = vld [vmem:[%s2704_s24 + $0xac] ss:$16 sps:$4 sm:$0xff]   ;;  %v2431_v53 = vld [vmem:[%s2704_s24 + $0x80] ss:$16 sps:$4 sm:$0xff]  }
  0x17   : > { %1275 = vmatpush1.bf16.msra.mxu1 %v2379_v9  ;;  %1564 = vmatpush1.bf16.msra.mxu0 %v2380_v10  ;;  %v2434_v54 = vld [vmem:[%s2704_s24 + $0xa4] ss:$16 sps:$4 sm:$0xff]   ;;  %v2436_v55 = vld [vmem:[%s2704_s24 + $0xa8] ss:$16 sps:$4 sm:$0xff]   ;;  %v2438_v56 = vld [vmem:[%s2704_s24 + $0xcc] ss:$16 sps:$4 sm:$0xff]  }
  0x18   : > { %1276 = vmatprep.subr.bf16.mxu1 %v2603_v1  ;;  %1565 = vmatprep.subr.bf16.mxu0 %v2603_v1  ;;  %v2437_v57 = vld [vmem:[%s2704_s24 + $0xa0] ss:$16 sps:$4 sm:$0xff]   ;;  %v2440_v58 = vld [vmem:[%s2704_s24 + $0xc4] ss:$16 sps:$4 sm:$0xff]   ;;  %v2442_v59 = vld [vmem:[%s2704_s24 + $0xc8] ss:$16 sps:$4 sm:$0xff]  }
  0x19   : > { %v2444_v60 = vld [vmem:[%s2704_s24 + $0xec] ss:$16 sps:$4 sm:$0xff]   ;;  %v2443_v61 = vld [vmem:[%s2704_s24 + $0xc0] ss:$16 sps:$4 sm:$0xff]   ;;  %v2446_v62 = vld [vmem:[%s2704_s24 + $0xe4] ss:$16 sps:$4 sm:$0xff]  }
  0x1a   : > { %v2448_v63 = vld [vmem:[%s2704_s24 + $0xe8] ss:$16 sps:$4 sm:$0xff]   ;;  %v2450_v0 = vld [vmem:[%s2704_s24 + $0x10c] ss:$16 sps:$4 sm:$0xff]   ;;  %v2452_v2 = vld [vmem:[%s2704_s24 + $0x104] ss:$16 sps:$4 sm:$0xff]  }
  0x1b   : > { %1277 = vmatpush1.bf16.msra.mxu1 %v2381_v11  ;;  %1566 = vmatpush1.bf16.msra.mxu0 %v2382_v12  ;;  %v2454_v3 = vld [vmem:[%s2704_s24 + $0x108] ss:$16 sps:$4 sm:$0xff]   ;;  %v2456_v4 = vld [vmem:[%s2704_s24 + $0x12c] ss:$16 sps:$4 sm:$0xff]   ;;  %v2455_v5 = vld [vmem:[%s2704_s24 + $0x100] ss:$16 sps:$4 sm:$0xff]  }
  0x1c   : > { %1278 = vmatprep.subr.bf16.mxu1 %v2603_v1  ;;  %1567 = vmatprep.subr.bf16.mxu0 %v2603_v1  ;;  %v2458_v6 = vld [vmem:[%s2704_s24 + $0x124] ss:$16 sps:$4 sm:$0xff]   ;;  %v2460_v7 = vld [vmem:[%s2704_s24 + $0x128] ss:$16 sps:$4 sm:$0xff]   ;;  %v2462_v8 = vld [vmem:[%s2704_s24 + $0x14c] ss:$16 sps:$4 sm:$0xff]  }
  0x1d   : > { %v2461_v9 = vld [vmem:[%s2704_s24 + $0x120] ss:$16 sps:$4 sm:$0xff]   ;;  %v2464_v10 = vld [vmem:[%s2704_s24 + $0x144] ss:$16 sps:$4 sm:$0xff]   ;;  %v2466_v11 = vld [vmem:[%s2704_s24 + $0x148] ss:$16 sps:$4 sm:$0xff]  }
  0x1e   : > { %v2468_v12 = vld [vmem:[%s2704_s24 + $0x16c] ss:$16 sps:$4 sm:$0xff]   ;;  %v2478_v19 = vld [vmem:[%s2704_s24 + $0x188] ss:$16 sps:$4 sm:$0xff]  }
  0x1f   : > { %1279 = vmatpush1.bf16.msra.mxu1 %v2383_v13  ;;  %1568 = vmatpush1.bf16.msra.mxu0 %v2384_v14  ;;  %v2467_v13 = vld [vmem:[%s2704_s24 + $0x140] ss:$16 sps:$4 sm:$0xff]   ;;  %v2470_v14 = vld [vmem:[%s2704_s24 + $0x164] ss:$16 sps:$4 sm:$0xff]   ;;  %v2480_v20 = vld [vmem:[%s2704_s24 + $0x1ac] ss:$16 sps:$4 sm:$0xff]  }
  0x20   : > { %1280 = vmatprep.subr.bf16.mxu1 %v2603_v1  ;;  %1569 = vmatprep.subr.bf16.mxu0 %v2603_v1  ;;  %v2496_v31 = vld [vmem:[%s2704_s24 + $0x1e8] ss:$16 sps:$4 sm:$0xff]  }
  0x23   : > { %1281 = vmatpush1.bf16.msra.mxu1 %v2385_v15  ;;  %1570 = vmatpush1.bf16.msra.mxu0 %v2386_v16  ;;  %v2472_v15 = vld [vmem:[%s2704_s24 + $0x168] ss:$16 sps:$4 sm:$0xff]   ;;  %v2474_v16 = vld [vmem:[%s2704_s24 + $0x18c] ss:$16 sps:$4 sm:$0xff]  }
  0x24   : > { %1282 = vmatprep.subr.bf16.mxu1 %v2603_v1  ;;  %1571 = vmatprep.subr.bf16.mxu0 %v2603_v1 }
  0x27   : > { %1283 = vmatpush1.bf16.msra.mxu1 %v2387_v17  ;;  %1572 = vmatpush1.bf16.msra.mxu0 %v2388_v18  ;;  %v2473_v17 = vld [vmem:[%s2704_s24 + $0x160] ss:$16 sps:$4 sm:$0xff]   ;;  %v2476_v18 = vld [vmem:[%s2704_s24 + $0x184] ss:$16 sps:$4 sm:$0xff]  }
  0x28   : > { %1284 = vmatprep.subr.bf16.mxu1 %v2603_v1  ;;  %1573 = vmatprep.subr.bf16.mxu0 %v2603_v1 }
  0x2b   : > { %1285 = vmatpush1.bf16.msra.mxu1 %v2389_v21  ;;  %1574 = vmatpush1.bf16.msra.mxu0 %v2390_v22  ;;  %v2479_v21 = vld [vmem:[%s2704_s24 + $0x180] ss:$16 sps:$4 sm:$0xff]   ;;  %v2482_v22 = vld [vmem:[%s2704_s24 + $0x1a4] ss:$16 sps:$4 sm:$0xff]  }
  0x2c   : > { %1286 = vmatprep.subr.bf16.mxu1 %v2603_v1  ;;  %1575 = vmatprep.subr.bf16.mxu0 %v2603_v1 }
  0x2f   : > { %1287 = vmatpush1.bf16.msra.mxu1 %v2391_v23  ;;  %1576 = vmatpush1.bf16.msra.mxu0 %v2392_v24  ;;  %v2484_v23 = vld [vmem:[%s2704_s24 + $0x1a8] ss:$16 sps:$4 sm:$0xff]   ;;  %v2486_v24 = vld [vmem:[%s2704_s24 + $0x1cc] ss:$16 sps:$4 sm:$0xff]  }
  0x30   : > { %1288 = vmatprep.subr.bf16.mxu1 %v2603_v1  ;;  %1577 = vmatprep.subr.bf16.mxu0 %v2603_v1 }
  0x33   : > { %1289 = vmatpush1.bf16.msra.mxu1 %v2393_v25  ;;  %1578 = vmatpush1.bf16.msra.mxu0 %v2394_v26  ;;  %v2485_v25 = vld [vmem:[%s2704_s24 + $0x1a0] ss:$16 sps:$4 sm:$0xff]   ;;  %v2488_v26 = vld [vmem:[%s2704_s24 + $0x1c4] ss:$16 sps:$4 sm:$0xff]  }
  0x34   : > { %1290 = vmatprep.subr.bf16.mxu1 %v2603_v1  ;;  %1579 = vmatprep.subr.bf16.mxu0 %v2603_v1 }
  0x37   : > { %1291 = vmatpush1.bf16.msra.mxu1 %v2395_v27  ;;  %1580 = vmatpush1.bf16.msra.mxu0 %v2396_v28  ;;  %v2490_v27 = vld [vmem:[%s2704_s24 + $0x1c8] ss:$16 sps:$4 sm:$0xff]   ;;  %v2492_v28 = vld [vmem:[%s2704_s24 + $0x1ec] ss:$16 sps:$4 sm:$0xff]  }
  0x38   : > { %1292 = vmatprep.subr.bf16.mxu1 %v2603_v1  ;;  %1581 = vmatprep.subr.bf16.mxu0 %v2603_v1 }
  0x3b   : > { %1293 = vmatpush1.bf16.msra.mxu1 %v2397_v29  ;;  %1582 = vmatpush1.bf16.msra.mxu0 %v2398_v30  ;;  %v2491_v29 = vld [vmem:[%s2704_s24 + $0x1c0] ss:$16 sps:$4 sm:$0xff]   ;;  %v2494_v30 = vld [vmem:[%s2704_s24 + $0x1e4] ss:$16 sps:$4 sm:$0xff]  }
  0x3c   : > { %1294 = vmatprep.subr.bf16.mxu1 %v2603_v1  ;;  %1583 = vmatprep.subr.bf16.mxu0 %v2603_v1 }
  0x3f   : > { %1295 = vmatpush1.bf16.msra.mxu1 %v2399_v32  ;;  %1584 = vmatpush1.bf16.msra.mxu0 %v1264_v33  ;;  %v2498_v32 = vld [vmem:[%s2704_s24 + $0x20c] ss:$16 sps:$4 sm:$0xff]   ;;  %v2497_v33 = vld [vmem:[%s2704_s24 + $0x1e0] ss:$16 sps:$4 sm:$0xff]  }
  0x40   : > { %1296 = vmatprep.subr.bf16.mxu1 %v2603_v1  ;;  %v2449_v1 = vld [vmem:[%s2704_s24 + $0xe0] ss:$16 sps:$4 sm:$0xff]  }
  0x42   : > { %1588 = vmatmul.mubr.bf16.vlgmr.msra.gmra.mrb[0].mxu0 %v2402_v35  ;;  %v2502_v35 = vld [vmem:[%s2704_s24 + $0x208] ss:$16 sps:$4 sm:$0xff]  }
  0x43   : > { %1297 = vmatpush1.bf16.msra.mxu1 %v2401_v34  ;;  %2200 = vmatprep.mubr.msk.bf16.mxu0 %vm1165_vm0, %v2408_v36  ;;  %v2500_v34 = vld [vmem:[%s2704_s24 + $0x204] ss:$16 sps:$4 sm:$0xff]   ;;  %v2504_v36 = vld [vmem:[%s2704_s24 + $0x22c] ss:$16 sps:$4 sm:$0xff]  }
  0x46   : > { %1299 = vmatmul.mubr.bf16.vlgmr.msra.gmra.mrb[0].mxu1 %v2405_v37  ;;  %v2503_v37 = vld [vmem:[%s2704_s24 + $0x200] ss:$16 sps:$4 sm:$0xff]  }
  0x47   : > { %1306 = vmatprep.mubr.bf16.mxu1 %v2410_v38  ;;  %v2506_v38 = vld [vmem:[%s2704_s24 + $0x224] ss:$16 sps:$4 sm:$0xff]  }
  0x4a   : > { %1596 = vmatmul.mubr.bf16.gmra.mrb[4].mxu0 %v2412_v39  ;;  %v2508_v39 = vld [vmem:[%s2704_s24 + $0x228] ss:$16 sps:$4 sm:$0xff]  }
  0x4b   : > { %2201 = vmatprep.mubr.msk.bf16.mxu0 %vm1165_vm0, %v2414_v40  ;;  %v2510_v40 = vld [vmem:[%s2704_s24 + $0x24c] ss:$16 sps:$4 sm:$0xff]  }
  0x4e   : > { %1307 = vmatmul.mubr.bf16.gmra.mrb[4].mxu1 %v2413_v41  ;;  %v2509_v41 = vld [vmem:[%s2704_s24 + $0x220] ss:$16 sps:$4 sm:$0xff]  }
  0x4f   : > { %1314 = vmatprep.mubr.bf16.mxu1 %v2416_v42  ;;  %v2512_v42 = vld [vmem:[%s2704_s24 + $0x244] ss:$16 sps:$4 sm:$0xff]  }
  0x52   : > { %1604 = vmatmul.mubr.bf16.gmra.mrb[8].mxu0 %v2418_v43  ;;  %v2514_v43 = vld [vmem:[%s2704_s24 + $0x248] ss:$16 sps:$4 sm:$0xff]  }
  0x53   : > { %2202 = vmatprep.mubr.msk.bf16.mxu0 %vm1165_vm0, %v2420_v44  ;;  %v2516_v44 = vld [vmem:[%s2704_s24 + $0x26c] ss:$16 sps:$4 sm:$0xff]  }
  0x56   : > { %1315 = vmatmul.mubr.bf16.gmra.mrb[8].mxu1 %v2419_v45  ;;  %v2515_v45 = vld [vmem:[%s2704_s24 + $0x240] ss:$16 sps:$4 sm:$0xff]  }
  0x57   : > { %1322 = vmatprep.mubr.bf16.mxu1 %v2422_v46  ;;  %v2518_v46 = vld [vmem:[%s2704_s24 + $0x264] ss:$16 sps:$4 sm:$0xff]  }
  0x5a   : > { %1612 = vmatmul.mubr.bf16.gmra.mrb[12].mxu0 %v2424_v47  ;;  %v2520_v47 = vld [vmem:[%s2704_s24 + $0x268] ss:$16 sps:$4 sm:$0xff]  }
  0x5b   : > { %2203 = vmatprep.mubr.msk.bf16.mxu0 %vm1165_vm0, %v2426_v49  ;;  %v2521_v49 = vld [vmem:[%s2704_s24 + $0x260] ss:$16 sps:$4 sm:$0xff]  }
  0x5e   : > { %1323 = vmatmul.mubr.bf16.gmra.mrb[12].mxu1 %v2425_v48  ;;  %v2522_v48 = vld [vmem:[%s2704_s24 + $0x28c] ss:$16 sps:$4 sm:$0xff]  }
  0x5f   : > { %1330 = vmatprep.mubr.bf16.mxu1 %v2428_v50  ;;  %v2524_v50 = vld [vmem:[%s2704_s24 + $0x284] ss:$16 sps:$4 sm:$0xff]  }
  0x62   : > { %1620 = vmatmul.mubr.bf16.gmra.mrb[16].mxu0 %v2430_v51  ;;  %v2526_v51 = vld [vmem:[%s2704_s24 + $0x288] ss:$16 sps:$4 sm:$0xff]  }
  0x63   : > { %2204 = vmatprep.mubr.msk.bf16.mxu0 %vm1165_vm0, %v2432_v52  ;;  %v2528_v52 = vld [vmem:[%s2704_s24 + $0x2ac] ss:$16 sps:$4 sm:$0xff]  }
  0x66   : > { %1331 = vmatmul.mubr.bf16.gmra.mrb[16].mxu1 %v2431_v53  ;;  %v2527_v53 = vld [vmem:[%s2704_s24 + $0x280] ss:$16 sps:$4 sm:$0xff]  }
  0x67   : > { %1338 = vmatprep.mubr.bf16.mxu1 %v2434_v54  ;;  %v2530_v54 = vld [vmem:[%s2704_s24 + $0x2a4] ss:$16 sps:$4 sm:$0xff]  }
  0x6a   : > { %1628 = vmatmul.mubr.bf16.gmra.mrb[20].mxu0 %v2436_v55  ;;  %v2532_v55 = vld [vmem:[%s2704_s24 + $0x2a8] ss:$16 sps:$4 sm:$0xff]  }
  0x6b   : > { %2205 = vmatprep.mubr.msk.bf16.mxu0 %vm1165_vm0, %v2438_v56  ;;  %v2534_v56 = vld [vmem:[%s2704_s24 + $0x2cc] ss:$16 sps:$4 sm:$0xff]  }
  0x6e   : > { %1339 = vmatmul.mubr.bf16.gmra.mrb[20].mxu1 %v2437_v57  ;;  %v2533_v57 = vld [vmem:[%s2704_s24 + $0x2a0] ss:$16 sps:$4 sm:$0xff]  }
  0x6f   : > { %1346 = vmatprep.mubr.bf16.mxu1 %v2440_v58  ;;  %v2536_v58 = vld [vmem:[%s2704_s24 + $0x2c4] ss:$16 sps:$4 sm:$0xff]  }
  0x72   : > { %1636 = vmatmul.mubr.bf16.gmra.mrb[24].mxu0 %v2442_v59  ;;  %v2538_v59 = vld [vmem:[%s2704_s24 + $0x2c8] ss:$16 sps:$4 sm:$0xff]  }
  0x73   : > { %2206 = vmatprep.mubr.msk.bf16.mxu0 %vm1165_vm0, %v2444_v60  ;;  %v2540_v60 = vld [vmem:[%s2704_s24 + $0x2ec] ss:$16 sps:$4 sm:$0xff]  }
  0x76   : > { %1347 = vmatmul.mubr.bf16.gmra.mrb[24].mxu1 %v2443_v61  ;;  %v2539_v61 = vld [vmem:[%s2704_s24 + $0x2c0] ss:$16 sps:$4 sm:$0xff]  }
  0x77   : > { %1354 = vmatprep.mubr.bf16.mxu1 %v2446_v62  ;;  %v2542_v62 = vld [vmem:[%s2704_s24 + $0x2e4] ss:$16 sps:$4 sm:$0xff]  }
  0x7a   : > { %1644 = vmatmul.mubr.bf16.gmra.mrb[28].mxu0 %v2448_v63  ;;  %v2544_v63 = vld [vmem:[%s2704_s24 + $0x2e8] ss:$16 sps:$4 sm:$0xff]  }
  0x7b   : > { %2207 = vmatprep.mubr.msk.bf16.mxu0 %vm1165_vm0, %v2450_v0  ;;  %v2546_v0 = vld [vmem:[%s2704_s24 + $0x30c] ss:$16 sps:$4 sm:$0xff]  }
  0x7e   : > { %1355 = vmatmul.mubr.bf16.gmra.mrb[28].mxu1 %v2449_v1  ;;  %v2545_v1 = vld [vmem:[%s2704_s24 + $0x2e0] ss:$16 sps:$4 sm:$0xff]  }
  0x7f   : > { %1362 = vmatprep.mubr.bf16.mxu1 %v2452_v2  ;;  %v2548_v2 = vld [vmem:[%s2704_s24 + $0x304] ss:$16 sps:$4 sm:$0xff]  }
  0x82   : > { %1652 = vmatmul.mubr.bf16.gmra.mrb[32].mxu0 %v2454_v3  ;;  %v2550_v3 = vld [vmem:[%s2704_s24 + $0x308] ss:$16 sps:$4 sm:$0xff]  }
  0x83   : > { %2208 = vmatprep.mubr.msk.bf16.mxu0 %vm1165_vm0, %v2456_v4  ;;  %v2552_v4 = vld [vmem:[%s2704_s24 + $0x32c] ss:$16 sps:$4 sm:$0xff]  }
  0x86   : > { %1363 = vmatmul.mubr.bf16.gmra.mrb[32].mxu1 %v2455_v5  ;;  %v2551_v5 = vld [vmem:[%s2704_s24 + $0x300] ss:$16 sps:$4 sm:$0xff]  }
  0x87   : > { %1370 = vmatprep.mubr.bf16.mxu1 %v2458_v6  ;;  %v2554_v6 = vld [vmem:[%s2704_s24 + $0x324] ss:$16 sps:$4 sm:$0xff]  }
  0x8a   : > { %1660 = vmatmul.mubr.bf16.gmra.mrb[36].mxu0 %v2460_v7  ;;  %v2556_v7 = vld [vmem:[%s2704_s24 + $0x328] ss:$16 sps:$4 sm:$0xff]  }
  0x8b   : > { %2209 = vmatprep.mubr.msk.bf16.mxu0 %vm1165_vm0, %v2462_v8  ;;  %v2558_v8 = vld [vmem:[%s2704_s24 + $0x34c] ss:$16 sps:$4 sm:$0xff]  }
  0x8e   : > { %1371 = vmatmul.mubr.bf16.gmra.mrb[36].mxu1 %v2461_v9  ;;  %v2557_v9 = vld [vmem:[%s2704_s24 + $0x320] ss:$16 sps:$4 sm:$0xff]  }
  0x8f   : > { %1378 = vmatprep.mubr.bf16.mxu1 %v2464_v10  ;;  %v2560_v10 = vld [vmem:[%s2704_s24 + $0x344] ss:$16 sps:$4 sm:$0xff]  }
  0x92   : > { %1668 = vmatmul.mubr.bf16.gmra.mrb[40].mxu0 %v2466_v11  ;;  %v2562_v11 = vld [vmem:[%s2704_s24 + $0x348] ss:$16 sps:$4 sm:$0xff]  }
  0x93   : > { %2210 = vmatprep.mubr.msk.bf16.mxu0 %vm1165_vm0, %v2468_v12  ;;  %v2564_v12 = vld [vmem:[%s2704_s24 + $0x36c] ss:$16 sps:$4 sm:$0xff]  }
  0x96   : > { %1379 = vmatmul.mubr.bf16.gmra.mrb[40].mxu1 %v2467_v13  ;;  %v2563_v13 = vld [vmem:[%s2704_s24 + $0x340] ss:$16 sps:$4 sm:$0xff]  }
  0x97   : > { %1386 = vmatprep.mubr.bf16.mxu1 %v2470_v14  ;;  %v2566_v14 = vld [vmem:[%s2704_s24 + $0x364] ss:$16 sps:$4 sm:$0xff]  }
  0x9a   : > { %1676 = vmatmul.mubr.bf16.gmra.mrb[44].mxu0 %v2472_v15 }
  0x9b   : > { %2211 = vmatprep.mubr.msk.bf16.mxu0 %vm1165_vm0, %v2474_v16  ;;  %v2907_v16 = vld [vmem:[%s3132_s2] ss:$0 sm:$0xff] }
  0x9e   : > { %1387 = vmatmul.mubr.bf16.gmra.mrb[44].mxu1 %v2473_v17 }
  0x9f   : > { %1394 = vmatprep.mubr.bf16.mxu1 %v2476_v18  ;;  %v2568_v18 = vld [vmem:[%s2704_s24 + $0x368] ss:$16 sps:$4 sm:$0xff]  }
  0xa2   : > { %1684 = vmatmul.mubr.bf16.gmra.mrb[48].mxu0 %v2478_v19 }
  0xa3   : > { %2212 = vmatprep.mubr.msk.bf16.mxu0 %vm1165_vm0, %v2480_v20  ;;  %v2570_v20 = vld [vmem:[%s2704_s24 + $0x38c] ss:$16 sps:$4 sm:$0xff]  }
  0xa6   : > { %1395 = vmatmul.mubr.bf16.gmra.mrb[48].mxu1 %v2479_v21 }
  0xa7   : > { %1402 = vmatprep.mubr.bf16.mxu1 %v2482_v22 }
  0xaa   : > { %1692 = vmatmul.mubr.bf16.gmra.mrb[52].mxu0 %v2484_v23 }
  0xab   : > { %2213 = vmatprep.mubr.msk.bf16.mxu0 %vm1165_vm0, %v2486_v24 }
  0xae   : > { %1403 = vmatmul.mubr.bf16.gmra.mrb[52].mxu1 %v2485_v25  ;;  %v2569_v25 = vld [vmem:[%s2704_s24 + $0x360] ss:$16 sps:$4 sm:$0xff]  }
  0xaf   : > { %1410 = vmatprep.mubr.bf16.mxu1 %v2488_v26 }
  0xb2   : > { %1700 = vmatmul.mubr.bf16.gmra.mrb[56].mxu0 %v2490_v27  ;;  %v2572_v27 = vld [vmem:[%s2704_s24 + $0x384] ss:$16 sps:$4 sm:$0xff]  }
  0xb3   : > { %2214 = vmatprep.mubr.msk.bf16.mxu0 %vm1165_vm0, %v2492_v28 }
  0xb6   : > { %1411 = vmatmul.mubr.bf16.gmra.mrb[56].mxu1 %v2491_v29 }
  0xb7   : > { %1418 = vmatprep.mubr.bf16.mxu1 %v2494_v30 }
  0xba   : > { %1708 = vmatmul.mubr.bf16.gmra.mrb[60].mxu0 %v2496_v31 }
  0xbb   : > { %2215 = vmatprep.mubr.msk.bf16.mxu0 %vm1165_vm0, %v2498_v32 }
  0xbe   : > { %1419 = vmatmul.mubr.bf16.gmra.mrb[60].mxu1 %v2497_v33 }
  0xbf   : > { %1426 = vmatprep.mubr.bf16.mxu1 %v2500_v34 }
  0xc2   : > { %1716 = vmatmul.mubr.bf16.gmra.mrb[64].mxu0 %v2502_v35  ;;  %v2574_v35 = vld [vmem:[%s2704_s24 + $0x388] ss:$16 sps:$4 sm:$0xff]  }
  0xc3   : > { %2216 = vmatprep.mubr.msk.bf16.mxu0 %vm1165_vm0, %v2504_v36 }
  0xc6   : > { %1427 = vmatmul.mubr.bf16.gmra.mrb[64].mxu1 %v2503_v37 }
  0xc7   : > { %1434 = vmatprep.mubr.bf16.mxu1 %v2506_v38  ;;  %v2576_v38 = vld [vmem:[%s2704_s24 + $0x3ac] ss:$16 sps:$4 sm:$0xff]  }
  0xca   : > { %1724 = vmatmul.mubr.bf16.gmra.mrb[68].mxu0 %v2508_v39 }
  0xcb   : > { %2217 = vmatprep.mubr.msk.bf16.mxu0 %vm1165_vm0, %v2510_v40 }
  0xce   : > { %1435 = vmatmul.mubr.bf16.gmra.mrb[68].mxu1 %v2509_v41 }
  0xcf   : > { %1442 = vmatprep.mubr.bf16.mxu1 %v2512_v42 }
  0xd2   : > { %1732 = vmatmul.mubr.bf16.gmra.mrb[72].mxu0 %v2514_v43  ;;  %v2575_v43 = vld [vmem:[%s2704_s24 + $0x380] ss:$16 sps:$4 sm:$0xff]  }
  0xd3   : > { %2218 = vmatprep.mubr.msk.bf16.mxu0 %vm1165_vm0, %v2516_v44 }
  0xd6   : > { %1443 = vmatmul.mubr.bf16.gmra.mrb[72].mxu1 %v2515_v45  ;;  %v2578_v45 = vld [vmem:[%s2704_s24 + $0x3a4] ss:$16 sps:$4 sm:$0xff]  }
  0xd7   : > { %1450 = vmatprep.mubr.bf16.mxu1 %v2518_v46 }
  0xda   : > { %1740 = vmatmul.mubr.bf16.gmra.mrb[76].mxu0 %v2520_v47 }
  0xdb   : > { %2219 = vmatprep.mubr.msk.bf16.mxu0 %vm1165_vm0, %v2522_v48 }
  0xde   : > { %1451 = vmatmul.mubr.bf16.gmra.mrb[76].mxu1 %v2521_v49 }
  0xdf   : > { %1458 = vmatprep.mubr.bf16.mxu1 %v2524_v50 }
  0xe2   : > { %1748 = vmatmul.mubr.bf16.gmra.mrb[80].mxu0 %v2526_v51 }
  0xe3   : > { %2220 = vmatprep.mubr.msk.bf16.mxu0 %vm1165_vm0, %v2528_v52 }
  0xe6   : > { %1459 = vmatmul.mubr.bf16.gmra.mrb[80].mxu1 %v2527_v53  ;;  %v2580_v53 = vld [vmem:[%s2704_s24 + $0x3a8] ss:$16 sps:$4 sm:$0xff]  }
  0xe7   : > { %1466 = vmatprep.mubr.bf16.mxu1 %v2530_v54 }
  0xea   : > { %1756 = vmatmul.mubr.bf16.gmra.mrb[84].mxu0 %v2532_v55 }
  0xeb   : > { %2221 = vmatprep.mubr.msk.bf16.mxu0 %vm1165_vm0, %v2534_v56  ;;  %v2582_v56 = vld [vmem:[%s2704_s24 + $0x3cc] ss:$16 sps:$4 sm:$0xff]  }
  0xee   : > { %1467 = vmatmul.mubr.bf16.gmra.mrb[84].mxu1 %v2533_v57 }
  0xef   : > { %1474 = vmatprep.mubr.bf16.mxu1 %v2536_v58 }
  0xf2   : > { %1764 = vmatmul.mubr.bf16.gmra.mrb[88].mxu0 %v2538_v59 }
  0xf3   : > { %2222 = vmatprep.mubr.msk.bf16.mxu0 %vm1165_vm0, %v2540_v60 }
  0xf6   : > { %1475 = vmatmul.mubr.bf16.gmra.mrb[88].mxu1 %v2539_v61  ;;  %v2581_v61 = vld [vmem:[%s2704_s24 + $0x3a0] ss:$16 sps:$4 sm:$0xff]  }
  0xf7   : > { %1482 = vmatprep.mubr.bf16.mxu1 %v2542_v62 }
  0xfa   : > { %1772 = vmatmul.mubr.bf16.gmra.mrb[92].mxu0 %v2544_v63  ;;  %v2584_v63 = vld [vmem:[%s2704_s24 + $0x3c4] ss:$16 sps:$4 sm:$0xff]  }
  0xfb   : > { %2223 = vmatprep.mubr.msk.bf16.mxu0 %vm1165_vm0, %v2546_v0 }
  0xfe   : > { %1483 = vmatmul.mubr.bf16.gmra.mrb[92].mxu1 %v2545_v1 }
  0xff   : > { %1490 = vmatprep.mubr.bf16.mxu1 %v2548_v2 }
 0x102   : > { %1780 = vmatmul.mubr.bf16.gmra.mrb[96].mxu0 %v2550_v3 }
 0x103   : > { %2224 = vmatprep.mubr.msk.bf16.mxu0 %vm1165_vm0, %v2552_v4 }
 0x106   : > { %1491 = vmatmul.mubr.bf16.gmra.mrb[96].mxu1 %v2551_v5 }
 0x107   : > { %1498 = vmatprep.mubr.bf16.mxu1 %v2554_v6 }
 0x10a   : > { %1788 = vmatmul.mubr.bf16.gmra.mrb[100].mxu0 %v2556_v7  ;;  %v2586_v7 = vld [vmem:[%s2704_s24 + $0x3c8] ss:$16 sps:$4 sm:$0xff]  }
 0x10b   : > { %2225 = vmatprep.mubr.msk.bf16.mxu0 %vm1165_vm0, %v2558_v8 }
 0x10e   : > { %1499 = vmatmul.mubr.bf16.gmra.mrb[100].mxu1 %v2557_v9 }
 0x10f   : > { %1506 = vmatprep.mubr.bf16.mxu1 %v2560_v10  ;;  %v2588_v10 = vld [vmem:[%s2704_s24 + $0x3ec] ss:$16 sps:$4 sm:$0xff]  }
 0x112   : > { %1796 = vmatmul.mubr.bf16.gmra.mrb[104].mxu0 %v2562_v11 }
 0x113   : > { %2226 = vmatprep.mubr.msk.bf16.mxu0 %vm1165_vm0, %v2564_v12 }
 0x115   : > { %v1589_v15 = vpop.f32.mrb[0].mxu0 }
 0x116   : > { %1507 = vmatmul.mubr.bf16.gmra.mrb[104].mxu1 %v2563_v13  ;;  %v1591_v17 = vpop.f32.mrb[1].mxu0 }
 0x117   : > { %1514 = vmatprep.mubr.bf16.mxu1 %v2566_v14  ;;  %v1592_v19 = vpop.f32.mrb[2].mxu0 }
 0x118   : > { %v1594_v22 = vpop.f32.mrb[3].mxu0 }
 0x119   : > { %v1300_v21 = vpop.f32.mrb[0].mxu1 }
 0x11a   : > { %v1301_v23 = vadd.f32 %v2907_v16, %v1300_v21  ;;  %v1302_v24 = vpop.f32.mrb[1].mxu1  ;;  %1804 = vmatmul.mubr.bf16.gmra.mrb[108].mxu0 %v2568_v18  ;;  %v2590_v18 = vld [vmem:[%s2704_s24 + $0x3e4] ss:$16 sps:$4 sm:$0xff]  }
 0x11b   : > { %v1303_v26 = vpop.f32.mrb[2].mxu1  ;;  %2227 = vmatprep.mubr.msk.bf16.mxu0 %vm1165_vm0, %v2570_v20 }
 0x11c   : > { %v1590_v28 = vadd.f32 %v1589_v15, %v1301_v23  ;;  %v1304_v29 = vadd.f32 %v2907_v16, %v1303_v26  ;;  %v1305_v30 = vpop.f32.mrb[3].mxu1  ;;  %v2587_v15 = vld [vmem:[%s2704_s24 + $0x3c0] ss:$16 sps:$4 sm:$0xff]   ;;  %v2592_v26 = vld [vmem:[%s2704_s24 + $0x3e8] ss:$16 sps:$4 sm:$0xff]  }
 0x11d   : > { %v1597_v33 = vpop.f32.mrb[4].mxu0 }
 0x11e   : > { %v1844_v31 = vmax.f32 %v1590_v28, 0.0  ;;  %v1593_v32 = vadd.f32 %v1592_v19, %v1304_v29  ;;  %1515 = vmatmul.mubr.bf16.gmra.mrb[108].mxu1 %v2569_v25  ;;  %v1599_v34 = vpop.f32.mrb[5].mxu0 }
 0x11f   : > { %1522 = vmatprep.mubr.bf16.mxu1 %v2572_v27  ;;  %v1600_v37 = vpop.f32.mrb[6].mxu0 }
 0x120   : > { %1909 = vst.msk [vmem:[%s2920_s10] sm:$0xff] %vm1908_vm2, %v1844_v31  ;;  %v1845_v36 = vmax.f32 %v1593_v32, 0.0  ;;  %v1602_v40 = vpop.f32.mrb[7].mxu0 }
 0x121   : > { %v1308_v39 = vpop.f32.mrb[4].mxu1 }
 0x122   : > { %1910 = vst.msk [vmem:[%s2920_s10 + $0x8] sm:$0xff] %vm1908_vm2, %v1845_v36  ;;  %v1309_v41 = vadd.f32 %v2907_v16, %v1308_v39  ;;  %v1310_v42 = vpop.f32.mrb[5].mxu1  ;;  %1812 = vmatmul.mubr.bf16.gmra.mrb[112].mxu0 %v2574_v35 }
 0x123   : > { %v1311_v44 = vpop.f32.mrb[6].mxu1  ;;  %2228 = vmatprep.mubr.msk.bf16.mxu0 %vm1165_vm0, %v2576_v38 }
 0x124   : > { %v1598_v46 = vadd.f32 %v1597_v33, %v1309_v41  ;;  %v1312_v47 = vadd.f32 %v2907_v16, %v1311_v44  ;;  %v1313_v48 = vpop.f32.mrb[7].mxu1  ;;  %v2593_v33 = vld [vmem:[%s2704_s24 + $0x3e0] ss:$16 sps:$4 sm:$0xff]  }
 0x125   : > { %v1605_v51 = vpop.f32.mrb[8].mxu0 }
 0x126   : > { %v1846_v49 = vmax.f32 %v1598_v46, 0.0  ;;  %v1601_v50 = vadd.f32 %v1600_v37, %v1312_v47  ;;  %1523 = vmatmul.mubr.bf16.gmra.mrb[112].mxu1 %v2575_v43  ;;  %v1607_v52 = vpop.f32.mrb[9].mxu0 }
 0x127   : > { %1530 = vmatprep.mubr.bf16.mxu1 %v2578_v45  ;;  %v1608_v55 = vpop.f32.mrb[10].mxu0 }
 0x128   : > { %1911 = vst.msk [vmem:[%s2920_s10 + $0x10] sm:$0xff] %vm1908_vm2, %v1846_v49  ;;  %v1847_v54 = vmax.f32 %v1601_v50, 0.0  ;;  %v1610_v58 = vpop.f32.mrb[11].mxu0 }
 0x129   : > { %v1316_v57 = vpop.f32.mrb[8].mxu1 }
 0x12a   : > { %1912 = vst.msk [vmem:[%s2920_s10 + $0x18] sm:$0xff] %vm1908_vm2, %v1847_v54  ;;  %v1317_v59 = vadd.f32 %v2907_v16, %v1316_v57  ;;  %v1318_v60 = vpop.f32.mrb[9].mxu1  ;;  %1820 = vmatmul.mubr.bf16.gmra.mrb[116].mxu0 %v2580_v53 }
 0x12b   : > { %v1319_v62 = vpop.f32.mrb[10].mxu1  ;;  %2229 = vmatprep.mubr.msk.bf16.mxu0 %vm1165_vm0, %v2582_v56 }
 0x12c   : > { %v1606_v0 = vadd.f32 %v1605_v51, %v1317_v59  ;;  %v1320_v1 = vadd.f32 %v2907_v16, %v1319_v62  ;;  %v1321_v2 = vpop.f32.mrb[11].mxu1 }
 0x12d   : > { %v1613_v5 = vpop.f32.mrb[12].mxu0 }
 0x12e   : > { %v1848_v3 = vmax.f32 %v1606_v0, 0.0  ;;  %v1609_v4 = vadd.f32 %v1608_v55, %v1320_v1  ;;  %1531 = vmatmul.mubr.bf16.gmra.mrb[116].mxu1 %v2581_v61  ;;  %v1615_v6 = vpop.f32.mrb[13].mxu0 }
 0x12f   : > { %1538 = vmatprep.mubr.bf16.mxu1 %v2584_v63  ;;  %v1616_v9 = vpop.f32.mrb[14].mxu0 }
 0x130   : > { %1913 = vst.msk [vmem:[%s2920_s10 + $0x20] sm:$0xff] %vm1908_vm2, %v1848_v3  ;;  %v1849_v8 = vmax.f32 %v1609_v4, 0.0  ;;  %v1618_v12 = vpop.f32.mrb[15].mxu0 }
 0x131   : > { %v1324_v11 = vpop.f32.mrb[12].mxu1 }
 0x132   : > { %1914 = vst.msk [vmem:[%s2920_s10 + $0x28] sm:$0xff] %vm1908_vm2, %v1849_v8  ;;  %v1325_v13 = vadd.f32 %v2907_v16, %v1324_v11  ;;  %v1326_v14 = vpop.f32.mrb[13].mxu1  ;;  %1828 = vmatmul.mubr.bf16.gmra.mrb[120].mxu0 %v2586_v7 }
 0x133   : > { %v1327_v17 = vpop.f32.mrb[14].mxu1  ;;  %2230 = vmatprep.mubr.msk.bf16.mxu0 %vm1165_vm0, %v2588_v10 }
 0x134   : > { %v1614_v19 = vadd.f32 %v1613_v5, %v1325_v13  ;;  %v1328_v20 = vadd.f32 %v2907_v16, %v1327_v17  ;;  %v1329_v21 = vpop.f32.mrb[15].mxu1 }
 0x135   : > { %v1621_v24 = vpop.f32.mrb[16].mxu0 }
 0x136   : > { %v1850_v22 = vmax.f32 %v1614_v19, 0.0  ;;  %v1617_v23 = vadd.f32 %v1616_v9, %v1328_v20  ;;  %1539 = vmatmul.mubr.bf16.gmra.mrb[120].mxu1 %v2587_v15  ;;  %v1623_v25 = vpop.f32.mrb[17].mxu0 }
 0x137   : > { %1546 = vmatprep.mubr.bf16.mxu1 %v2590_v18  ;;  %v1624_v28 = vpop.f32.mrb[18].mxu0 }
 0x138   : > { %1915 = vst.msk [vmem:[%s2920_s10 + $0x30] sm:$0xff] %vm1908_vm2, %v1850_v22  ;;  %v1851_v27 = vmax.f32 %v1617_v23, 0.0  ;;  %v1626_v30 = vpop.f32.mrb[19].mxu0 }
 0x139   : > { %v1332_v29 = vpop.f32.mrb[16].mxu1 }
 0x13a   : > { %1916 = vst.msk [vmem:[%s2920_s10 + $0x38] sm:$0xff] %vm1908_vm2, %v1851_v27  ;;  %v1333_v31 = vadd.f32 %v2907_v16, %v1332_v29  ;;  %v1334_v32 = vpop.f32.mrb[17].mxu1  ;;  %1836 = vmatmul.mubr.bf16.gmra.mrb[124].mxu0 %v2592_v26 }
 0x13b   : > { %v1335_v34 = vpop.f32.mrb[18].mxu1 }
 0x13c   : > { %v1622_v35 = vadd.f32 %v1621_v24, %v1333_v31  ;;  %v1336_v36 = vadd.f32 %v2907_v16, %v1335_v34  ;;  %v1337_v37 = vpop.f32.mrb[19].mxu1 }
 0x13d   : > { %v1629_v40 = vpop.f32.mrb[20].mxu0 }
 0x13e   : > { %v1852_v38 = vmax.f32 %v1622_v35, 0.0  ;;  %v1625_v39 = vadd.f32 %v1624_v28, %v1336_v36  ;;  %1547 = vmatmul.mubr.bf16.gmra.mrb[124].mxu1 %v2593_v33  ;;  %v1631_v41 = vpop.f32.mrb[21].mxu0 }
 0x13f   : > { %v1632_v43 = vpop.f32.mrb[22].mxu0 }
 0x140   : > { %1917 = vst.msk [vmem:[%s2920_s10 + $0x40] sm:$0xff] %vm1908_vm2, %v1852_v38  ;;  %v1853_v42 = vmax.f32 %v1625_v39, 0.0  ;;  %v1634_v45 = vpop.f32.mrb[23].mxu0 }
 0x141   : > { %v1340_v44 = vpop.f32.mrb[20].mxu1 }
 0x142   : > { %1918 = vst.msk [vmem:[%s2920_s10 + $0x48] sm:$0xff] %vm1908_vm2, %v1853_v42  ;;  %v1341_v46 = vadd.f32 %v2907_v16, %v1340_v44  ;;  %v1342_v47 = vpop.f32.mrb[21].mxu1 }
 0x143   : > { %v1343_v48 = vpop.f32.mrb[22].mxu1 }
 0x144   : > { %v1630_v49 = vadd.f32 %v1629_v40, %v1341_v46  ;;  %v1344_v50 = vadd.f32 %v2907_v16, %v1343_v48  ;;  %v1345_v51 = vpop.f32.mrb[23].mxu1 }
 0x145   : > { %v1637_v54 = vpop.f32.mrb[24].mxu0 }
 0x146   : > { %v1854_v52 = vmax.f32 %v1630_v49, 0.0  ;;  %v1633_v53 = vadd.f32 %v1632_v43, %v1344_v50  ;;  %v1639_v55 = vpop.f32.mrb[25].mxu0 }
 0x147   : > { %v1640_v57 = vpop.f32.mrb[26].mxu0 }
 0x148   : > { %1919 = vst.msk [vmem:[%s2920_s10 + $0x50] sm:$0xff] %vm1908_vm2, %v1854_v52  ;;  %v1855_v56 = vmax.f32 %v1633_v53, 0.0  ;;  %v1642_v59 = vpop.f32.mrb[27].mxu0 }
 0x149   : > { %v1348_v58 = vpop.f32.mrb[24].mxu1 }
 0x14a   : > { %1920 = vst.msk [vmem:[%s2920_s10 + $0x58] sm:$0xff] %vm1908_vm2, %v1855_v56  ;;  %v1349_v60 = vadd.f32 %v2907_v16, %v1348_v58  ;;  %v1350_v61 = vpop.f32.mrb[25].mxu1 }
 0x14b   : > { %v1351_v62 = vpop.f32.mrb[26].mxu1 }
 0x14c   : > { %v1638_v63 = vadd.f32 %v1637_v54, %v1349_v60  ;;  %v1352_v0 = vadd.f32 %v2907_v16, %v1351_v62  ;;  %v1353_v1 = vpop.f32.mrb[27].mxu1 }
 0x14d   : > { %v1645_v4 = vpop.f32.mrb[28].mxu0 }
 0x14e   : > { %v1856_v2 = vmax.f32 %v1638_v63, 0.0  ;;  %v1641_v3 = vadd.f32 %v1640_v57, %v1352_v0  ;;  %v1647_v5 = vpop.f32.mrb[29].mxu0 }
 0x14f   : > { %v1648_v7 = vpop.f32.mrb[30].mxu0 }
 0x150   : > { %1921 = vst.msk [vmem:[%s2920_s10 + $0x60] sm:$0xff] %vm1908_vm2, %v1856_v2  ;;  %v1857_v6 = vmax.f32 %v1641_v3, 0.0  ;;  %v1650_v9 = vpop.f32.mrb[31].mxu0 }
 0x151   : > { %v1356_v8 = vpop.f32.mrb[28].mxu1 }
 0x152   : > { %1922 = vst.msk [vmem:[%s2920_s10 + $0x68] sm:$0xff] %vm1908_vm2, %v1857_v6  ;;  %v1357_v10 = vadd.f32 %v2907_v16, %v1356_v8  ;;  %v1358_v11 = vpop.f32.mrb[29].mxu1 }
 0x153   : > { %v1359_v12 = vpop.f32.mrb[30].mxu1 }
 0x154   : > { %v1646_v13 = vadd.f32 %v1645_v4, %v1357_v10  ;;  %v1360_v14 = vadd.f32 %v2907_v16, %v1359_v12  ;;  %v1361_v15 = vpop.f32.mrb[31].mxu1 }
 0x155   : > { %v1653_v19 = vpop.f32.mrb[32].mxu0 }
 0x156   : > { %v1858_v17 = vmax.f32 %v1646_v13, 0.0  ;;  %v1649_v18 = vadd.f32 %v1648_v7, %v1360_v14  ;;  %v1655_v20 = vpop.f32.mrb[33].mxu0 }
 0x157   : > { %v1656_v22 = vpop.f32.mrb[34].mxu0 }
 0x158   : > { %1923 = vst.msk [vmem:[%s2920_s10 + $0x70] sm:$0xff] %vm1908_vm2, %v1858_v17  ;;  %v1859_v21 = vmax.f32 %v1649_v18, 0.0  ;;  %v1658_v24 = vpop.f32.mrb[35].mxu0 }
 0x159   : > { %v1364_v23 = vpop.f32.mrb[32].mxu1 }
 0x15a   : > { %1924 = vst.msk [vmem:[%s2920_s10 + $0x78] sm:$0xff] %vm1908_vm2, %v1859_v21  ;;  %v1365_v25 = vadd.f32 %v2907_v16, %v1364_v23  ;;  %v1366_v26 = vpop.f32.mrb[33].mxu1 }
 0x15b   : > { %v1367_v27 = vpop.f32.mrb[34].mxu1 }
 0x15c   : > { %v1654_v28 = vadd.f32 %v1653_v19, %v1365_v25  ;;  %v1368_v29 = vadd.f32 %v2907_v16, %v1367_v27  ;;  %v1369_v30 = vpop.f32.mrb[35].mxu1 }
 0x15d   : > { %v1661_v33 = vpop.f32.mrb[36].mxu0 }
 0x15e   : > { %v1860_v31 = vmax.f32 %v1654_v28, 0.0  ;;  %v1657_v32 = vadd.f32 %v1656_v22, %v1368_v29  ;;  %v1663_v34 = vpop.f32.mrb[37].mxu0 }
 0x15f   : > { %v1664_v36 = vpop.f32.mrb[38].mxu0 }
 0x160   : > { %1925 = vst.msk [vmem:[%s2920_s10 + $0x80] sm:$0xff] %vm1908_vm2, %v1860_v31  ;;  %v1861_v35 = vmax.f32 %v1657_v32, 0.0  ;;  %v1666_v38 = vpop.f32.mrb[39].mxu0 }
 0x161   : > { %v1372_v37 = vpop.f32.mrb[36].mxu1 }
 0x162   : > { %1926 = vst.msk [vmem:[%s2920_s10 + $0x88] sm:$0xff] %vm1908_vm2, %v1861_v35  ;;  %v1373_v39 = vadd.f32 %v2907_v16, %v1372_v37  ;;  %v1374_v40 = vpop.f32.mrb[37].mxu1 }
 0x163   : > { %v1375_v41 = vpop.f32.mrb[38].mxu1 }
 0x164   : > { %v1662_v42 = vadd.f32 %v1661_v33, %v1373_v39  ;;  %v1376_v43 = vadd.f32 %v2907_v16, %v1375_v41  ;;  %v1377_v44 = vpop.f32.mrb[39].mxu1 }
 0x165   : > { %v1669_v47 = vpop.f32.mrb[40].mxu0 }
 0x166   : > { %v1862_v45 = vmax.f32 %v1662_v42, 0.0  ;;  %v1665_v46 = vadd.f32 %v1664_v36, %v1376_v43  ;;  %v1671_v48 = vpop.f32.mrb[41].mxu0 }
 0x167   : > { %v1672_v50 = vpop.f32.mrb[42].mxu0 }
 0x168   : > { %1927 = vst.msk [vmem:[%s2920_s10 + $0x90] sm:$0xff] %vm1908_vm2, %v1862_v45  ;;  %v1863_v49 = vmax.f32 %v1665_v46, 0.0  ;;  %v1674_v52 = vpop.f32.mrb[43].mxu0 }
 0x169   : > { %v1380_v51 = vpop.f32.mrb[40].mxu1 }
 0x16a   : > { %1928 = vst.msk [vmem:[%s2920_s10 + $0x98] sm:$0xff] %vm1908_vm2, %v1863_v49  ;;  %v1381_v53 = vadd.f32 %v2907_v16, %v1380_v51  ;;  %v1382_v54 = vpop.f32.mrb[41].mxu1 }
 0x16b   : > { %v1383_v55 = vpop.f32.mrb[42].mxu1 }
 0x16c   : > { %v1670_v56 = vadd.f32 %v1669_v47, %v1381_v53  ;;  %v1384_v57 = vadd.f32 %v2907_v16, %v1383_v55  ;;  %v1385_v58 = vpop.f32.mrb[43].mxu1 }
 0x16d   : > { %v1677_v61 = vpop.f32.mrb[44].mxu0 }
 0x16e   : > { %v1864_v59 = vmax.f32 %v1670_v56, 0.0  ;;  %v1673_v60 = vadd.f32 %v1672_v50, %v1384_v57  ;;  %v1679_v62 = vpop.f32.mrb[45].mxu0 }
 0x16f   : > { %v1680_v0 = vpop.f32.mrb[46].mxu0 }
 0x170   : > { %1929 = vst.msk [vmem:[%s2920_s10 + $0xa0] sm:$0xff] %vm1908_vm2, %v1864_v59  ;;  %v1865_v63 = vmax.f32 %v1673_v60, 0.0  ;;  %v1682_v2 = vpop.f32.mrb[47].mxu0 }
 0x171   : > { %v1388_v1 = vpop.f32.mrb[44].mxu1 }
 0x172   : > { %1930 = vst.msk [vmem:[%s2920_s10 + $0xa8] sm:$0xff] %vm1908_vm2, %v1865_v63  ;;  %v1389_v3 = vadd.f32 %v2907_v16, %v1388_v1  ;;  %v1390_v4 = vpop.f32.mrb[45].mxu1 }
 0x173   : > { %v1391_v5 = vpop.f32.mrb[46].mxu1 }
 0x174   : > { %v1678_v6 = vadd.f32 %v1677_v61, %v1389_v3  ;;  %v1392_v7 = vadd.f32 %v2907_v16, %v1391_v5  ;;  %v1393_v8 = vpop.f32.mrb[47].mxu1 }
 0x175   : > { %v1685_v11 = vpop.f32.mrb[48].mxu0 }
 0x176   : > { %v1866_v9 = vmax.f32 %v1678_v6, 0.0  ;;  %v1681_v10 = vadd.f32 %v1680_v0, %v1392_v7  ;;  %v1687_v12 = vpop.f32.mrb[49].mxu0 }
 0x177   : > { %v1688_v14 = vpop.f32.mrb[50].mxu0 }
 0x178   : > { %1931 = vst.msk [vmem:[%s2920_s10 + $0xb0] sm:$0xff] %vm1908_vm2, %v1866_v9  ;;  %v1867_v13 = vmax.f32 %v1681_v10, 0.0  ;;  %v1690_v17 = vpop.f32.mrb[51].mxu0 }
 0x179   : > { %v1396_v15 = vpop.f32.mrb[48].mxu1 }
 0x17a   : > { %1932 = vst.msk [vmem:[%s2920_s10 + $0xb8] sm:$0xff] %vm1908_vm2, %v1867_v13  ;;  %v1397_v18 = vadd.f32 %v2907_v16, %v1396_v15  ;;  %v1398_v19 = vpop.f32.mrb[49].mxu1 }
 0x17b   : > { %v1399_v20 = vpop.f32.mrb[50].mxu1 }
 0x17c   : > { %v1686_v21 = vadd.f32 %v1685_v11, %v1397_v18  ;;  %v1400_v22 = vadd.f32 %v2907_v16, %v1399_v20  ;;  %v1401_v23 = vpop.f32.mrb[51].mxu1 }
 0x17d   : > { %v1693_v26 = vpop.f32.mrb[52].mxu0 }
 0x17e   : > { %v1868_v24 = vmax.f32 %v1686_v21, 0.0  ;;  %v1689_v25 = vadd.f32 %v1688_v14, %v1400_v22  ;;  %v1695_v27 = vpop.f32.mrb[53].mxu0 }
 0x17f   : > { %v1696_v29 = vpop.f32.mrb[54].mxu0 }
 0x180   : > { %1933 = vst.msk [vmem:[%s2920_s10 + $0xc0] sm:$0xff] %vm1908_vm2, %v1868_v24  ;;  %v1869_v28 = vmax.f32 %v1689_v25, 0.0  ;;  %v1698_v31 = vpop.f32.mrb[55].mxu0 }
 0x181   : > { %v1404_v30 = vpop.f32.mrb[52].mxu1 }
 0x182   : > { %1934 = vst.msk [vmem:[%s2920_s10 + $0xc8] sm:$0xff] %vm1908_vm2, %v1869_v28  ;;  %v1405_v32 = vadd.f32 %v2907_v16, %v1404_v30  ;;  %v1406_v33 = vpop.f32.mrb[53].mxu1 }
 0x183   : > { %v1407_v34 = vpop.f32.mrb[54].mxu1 }
 0x184   : > { %v1694_v35 = vadd.f32 %v1693_v26, %v1405_v32  ;;  %v1408_v36 = vadd.f32 %v2907_v16, %v1407_v34  ;;  %v1409_v37 = vpop.f32.mrb[55].mxu1 }
 0x185   : > { %v1701_v40 = vpop.f32.mrb[56].mxu0 }
 0x186   : > { %v1870_v38 = vmax.f32 %v1694_v35, 0.0  ;;  %v1697_v39 = vadd.f32 %v1696_v29, %v1408_v36  ;;  %v1703_v41 = vpop.f32.mrb[57].mxu0 }
 0x187   : > { %v1704_v43 = vpop.f32.mrb[58].mxu0 }
 0x188   : > { %1935 = vst.msk [vmem:[%s2920_s10 + $0xd0] sm:$0xff] %vm1908_vm2, %v1870_v38  ;;  %v1871_v42 = vmax.f32 %v1697_v39, 0.0  ;;  %v1706_v45 = vpop.f32.mrb[59].mxu0 }
 0x189   : > { %v1412_v44 = vpop.f32.mrb[56].mxu1 }
 0x18a   : > { %1936 = vst.msk [vmem:[%s2920_s10 + $0xd8] sm:$0xff] %vm1908_vm2, %v1871_v42  ;;  %v1413_v46 = vadd.f32 %v2907_v16, %v1412_v44  ;;  %v1414_v47 = vpop.f32.mrb[57].mxu1 }
 0x18b   : > { %v1415_v48 = vpop.f32.mrb[58].mxu1 }
 0x18c   : > { %v1702_v49 = vadd.f32 %v1701_v40, %v1413_v46  ;;  %v1416_v50 = vadd.f32 %v2907_v16, %v1415_v48  ;;  %v1417_v51 = vpop.f32.mrb[59].mxu1 }
 0x18d   : > { %v1709_v54 = vpop.f32.mrb[60].mxu0 }
 0x18e   : > { %v1872_v52 = vmax.f32 %v1702_v49, 0.0  ;;  %v1705_v53 = vadd.f32 %v1704_v43, %v1416_v50  ;;  %v1711_v55 = vpop.f32.mrb[61].mxu0 }
 0x18f   : > { %v1712_v57 = vpop.f32.mrb[62].mxu0 }
 0x190   : > { %1937 = vst.msk [vmem:[%s2920_s10 + $0xe0] sm:$0xff] %vm1908_vm2, %v1872_v52  ;;  %v1873_v56 = vmax.f32 %v1705_v53, 0.0  ;;  %v1714_v59 = vpop.f32.mrb[63].mxu0 }
 0x191   : > { %v1420_v58 = vpop.f32.mrb[60].mxu1 }
 0x192   : > { %1938 = vst.msk [vmem:[%s2920_s10 + $0xe8] sm:$0xff] %vm1908_vm2, %v1873_v56  ;;  %v1421_v60 = vadd.f32 %v2907_v16, %v1420_v58  ;;  %v1422_v61 = vpop.f32.mrb[61].mxu1 }
 0x193   : > { %v1423_v62 = vpop.f32.mrb[62].mxu1 }
 0x194   : > { %v1710_v63 = vadd.f32 %v1709_v54, %v1421_v60  ;;  %v1424_v0 = vadd.f32 %v2907_v16, %v1423_v62  ;;  %v1425_v1 = vpop.f32.mrb[63].mxu1 }
 0x195   : > { %v1717_v4 = vpop.f32.mrb[64].mxu0 }
 0x196   : > { %v1874_v2 = vmax.f32 %v1710_v63, 0.0  ;;  %v1713_v3 = vadd.f32 %v1712_v57, %v1424_v0  ;;  %v1719_v5 = vpop.f32.mrb[65].mxu0 }
 0x197   : > { %v1720_v7 = vpop.f32.mrb[66].mxu0 }
 0x198   : > { %1939 = vst.msk [vmem:[%s2920_s10 + $0xf0] sm:$0xff] %vm1908_vm2, %v1874_v2  ;;  %v1875_v6 = vmax.f32 %v1713_v3, 0.0  ;;  %v1722_v9 = vpop.f32.mrb[67].mxu0 }
 0x199   : > { %v1428_v8 = vpop.f32.mrb[64].mxu1 }
 0x19a   : > { %1940 = vst.msk [vmem:[%s2920_s10 + $0xf8] sm:$0xff] %vm1908_vm2, %v1875_v6  ;;  %v1429_v10 = vadd.f32 %v2907_v16, %v1428_v8  ;;  %v1430_v11 = vpop.f32.mrb[65].mxu1 }
 0x19b   : > { %v1431_v12 = vpop.f32.mrb[66].mxu1 }
 0x19c   : > { %v1718_v13 = vadd.f32 %v1717_v4, %v1429_v10  ;;  %v1432_v14 = vadd.f32 %v2907_v16, %v1431_v12  ;;  %v1433_v15 = vpop.f32.mrb[67].mxu1 }
 0x19d   : > { %v1725_v19 = vpop.f32.mrb[68].mxu0 }
 0x19e   : > { %v1876_v17 = vmax.f32 %v1718_v13, 0.0  ;;  %v1721_v18 = vadd.f32 %v1720_v7, %v1432_v14  ;;  %v1727_v20 = vpop.f32.mrb[69].mxu0 }
 0x19f   : > { %v1728_v22 = vpop.f32.mrb[70].mxu0 }
 0x1a0   : > { %1941 = vst.msk [vmem:[%s2920_s10 + $0x100] sm:$0xff] %vm1908_vm2, %v1876_v17  ;;  %v1877_v21 = vmax.f32 %v1721_v18, 0.0  ;;  %v1730_v24 = vpop.f32.mrb[71].mxu0 }
 0x1a1   : > { %v1436_v23 = vpop.f32.mrb[68].mxu1 }
 0x1a2   : > { %1942 = vst.msk [vmem:[%s2920_s10 + $0x108] sm:$0xff] %vm1908_vm2, %v1877_v21  ;;  %v1437_v25 = vadd.f32 %v2907_v16, %v1436_v23  ;;  %v1438_v26 = vpop.f32.mrb[69].mxu1 }
 0x1a3   : > { %v1439_v27 = vpop.f32.mrb[70].mxu1 }
 0x1a4   : > { %v1726_v28 = vadd.f32 %v1725_v19, %v1437_v25  ;;  %v1440_v29 = vadd.f32 %v2907_v16, %v1439_v27  ;;  %v1441_v30 = vpop.f32.mrb[71].mxu1 }
 0x1a5   : > { %v1733_v33 = vpop.f32.mrb[72].mxu0 }
 0x1a6   : > { %v1878_v31 = vmax.f32 %v1726_v28, 0.0  ;;  %v1729_v32 = vadd.f32 %v1728_v22, %v1440_v29  ;;  %v1735_v34 = vpop.f32.mrb[73].mxu0 }
 0x1a7   : > { %v1736_v36 = vpop.f32.mrb[74].mxu0 }
 0x1a8   : > { %1943 = vst.msk [vmem:[%s2920_s10 + $0x110] sm:$0xff] %vm1908_vm2, %v1878_v31  ;;  %v1879_v35 = vmax.f32 %v1729_v32, 0.0  ;;  %v1738_v38 = vpop.f32.mrb[75].mxu0 }
 0x1a9   : > { %v1444_v37 = vpop.f32.mrb[72].mxu1 }
 0x1aa   : > { %1944 = vst.msk [vmem:[%s2920_s10 + $0x118] sm:$0xff] %vm1908_vm2, %v1879_v35  ;;  %v1445_v39 = vadd.f32 %v2907_v16, %v1444_v37  ;;  %v1446_v40 = vpop.f32.mrb[73].mxu1 }
 0x1ab   : > { %v1447_v41 = vpop.f32.mrb[74].mxu1 }
 0x1ac   : > { %v1734_v42 = vadd.f32 %v1733_v33, %v1445_v39  ;;  %v1448_v43 = vadd.f32 %v2907_v16, %v1447_v41  ;;  %v1449_v44 = vpop.f32.mrb[75].mxu1 }
 0x1ad   : > { %v1741_v47 = vpop.f32.mrb[76].mxu0 }
 0x1ae   : > { %v1880_v45 = vmax.f32 %v1734_v42, 0.0  ;;  %v1737_v46 = vadd.f32 %v1736_v36, %v1448_v43  ;;  %v1743_v48 = vpop.f32.mrb[77].mxu0 }
 0x1af   : > { %v1744_v50 = vpop.f32.mrb[78].mxu0 }
 0x1b0   : > { %1945 = vst.msk [vmem:[%s2920_s10 + $0x120] sm:$0xff] %vm1908_vm2, %v1880_v45  ;;  %v1881_v49 = vmax.f32 %v1737_v46, 0.0  ;;  %v1746_v52 = vpop.f32.mrb[79].mxu0 }
 0x1b1   : > { %v1452_v51 = vpop.f32.mrb[76].mxu1 }
 0x1b2   : > { %1946 = vst.msk [vmem:[%s2920_s10 + $0x128] sm:$0xff] %vm1908_vm2, %v1881_v49  ;;  %v1453_v53 = vadd.f32 %v2907_v16, %v1452_v51  ;;  %v1454_v54 = vpop.f32.mrb[77].mxu1 }
 0x1b3   : > { %v1455_v55 = vpop.f32.mrb[78].mxu1 }
 0x1b4   : > { %v1742_v56 = vadd.f32 %v1741_v47, %v1453_v53  ;;  %v1456_v57 = vadd.f32 %v2907_v16, %v1455_v55  ;;  %v1457_v58 = vpop.f32.mrb[79].mxu1 }
 0x1b5   : > { %v1749_v61 = vpop.f32.mrb[80].mxu0 }
 0x1b6   : > { %v1882_v59 = vmax.f32 %v1742_v56, 0.0  ;;  %v1745_v60 = vadd.f32 %v1744_v50, %v1456_v57  ;;  %v1751_v62 = vpop.f32.mrb[81].mxu0 }
 0x1b7   : > { %v1752_v0 = vpop.f32.mrb[82].mxu0 }
 0x1b8   : > { %1947 = vst.msk [vmem:[%s2920_s10 + $0x130] sm:$0xff] %vm1908_vm2, %v1882_v59  ;;  %v1883_v63 = vmax.f32 %v1745_v60, 0.0  ;;  %v1754_v2 = vpop.f32.mrb[83].mxu0 }
 0x1b9   : > { %v1460_v1 = vpop.f32.mrb[80].mxu1 }
 0x1ba   : > { %1948 = vst.msk [vmem:[%s2920_s10 + $0x138] sm:$0xff] %vm1908_vm2, %v1883_v63  ;;  %v1461_v3 = vadd.f32 %v2907_v16, %v1460_v1  ;;  %v1462_v4 = vpop.f32.mrb[81].mxu1 }
 0x1bb   : > { %v1463_v5 = vpop.f32.mrb[82].mxu1 }
 0x1bc   : > { %v1750_v6 = vadd.f32 %v1749_v61, %v1461_v3  ;;  %v1464_v7 = vadd.f32 %v2907_v16, %v1463_v5  ;;  %v1465_v8 = vpop.f32.mrb[83].mxu1 }
 0x1bd   : > { %v1757_v11 = vpop.f32.mrb[84].mxu0 }
 0x1be   : > { %v1884_v9 = vmax.f32 %v1750_v6, 0.0  ;;  %v1753_v10 = vadd.f32 %v1752_v0, %v1464_v7  ;;  %v1759_v12 = vpop.f32.mrb[85].mxu0 }
 0x1bf   : > { %v1760_v14 = vpop.f32.mrb[86].mxu0 }
 0x1c0   : > { %1949 = vst.msk [vmem:[%s2920_s10 + $0x140] sm:$0xff] %vm1908_vm2, %v1884_v9  ;;  %v1885_v13 = vmax.f32 %v1753_v10, 0.0  ;;  %v1762_v17 = vpop.f32.mrb[87].mxu0 }
 0x1c1   : > { %v1468_v15 = vpop.f32.mrb[84].mxu1 }
 0x1c2   : > { %1950 = vst.msk [vmem:[%s2920_s10 + $0x148] sm:$0xff] %vm1908_vm2, %v1885_v13  ;;  %v1469_v18 = vadd.f32 %v2907_v16, %v1468_v15  ;;  %v1470_v19 = vpop.f32.mrb[85].mxu1 }
 0x1c3   : > { %v1471_v20 = vpop.f32.mrb[86].mxu1 }
 0x1c4   : > { %v1758_v21 = vadd.f32 %v1757_v11, %v1469_v18  ;;  %v1472_v22 = vadd.f32 %v2907_v16, %v1471_v20  ;;  %v1473_v23 = vpop.f32.mrb[87].mxu1 }
 0x1c5   : > { %v1765_v26 = vpop.f32.mrb[88].mxu0 }
 0x1c6   : > { %v1886_v24 = vmax.f32 %v1758_v21, 0.0  ;;  %v1761_v25 = vadd.f32 %v1760_v14, %v1472_v22  ;;  %v1767_v27 = vpop.f32.mrb[89].mxu0 }
 0x1c7   : > { %v1768_v29 = vpop.f32.mrb[90].mxu0 }
 0x1c8   : > { %1951 = vst.msk [vmem:[%s2920_s10 + $0x150] sm:$0xff] %vm1908_vm2, %v1886_v24  ;;  %v1887_v28 = vmax.f32 %v1761_v25, 0.0  ;;  %v1770_v31 = vpop.f32.mrb[91].mxu0 }
 0x1c9   : > { %v1476_v30 = vpop.f32.mrb[88].mxu1 }
 0x1ca   : > { %1952 = vst.msk [vmem:[%s2920_s10 + $0x158] sm:$0xff] %vm1908_vm2, %v1887_v28  ;;  %v1477_v32 = vadd.f32 %v2907_v16, %v1476_v30  ;;  %v1478_v33 = vpop.f32.mrb[89].mxu1 }
 0x1cb   : > { %v1479_v34 = vpop.f32.mrb[90].mxu1 }
 0x1cc   : > { %v1766_v35 = vadd.f32 %v1765_v26, %v1477_v32  ;;  %v1480_v36 = vadd.f32 %v2907_v16, %v1479_v34  ;;  %v1481_v37 = vpop.f32.mrb[91].mxu1 }
 0x1cd   : > { %v1773_v40 = vpop.f32.mrb[92].mxu0 }
 0x1ce   : > { %v1888_v38 = vmax.f32 %v1766_v35, 0.0  ;;  %v1769_v39 = vadd.f32 %v1768_v29, %v1480_v36  ;;  %v1775_v41 = vpop.f32.mrb[93].mxu0 }
 0x1cf   : > { %v1776_v43 = vpop.f32.mrb[94].mxu0 }
 0x1d0   : > { %1953 = vst.msk [vmem:[%s2920_s10 + $0x160] sm:$0xff] %vm1908_vm2, %v1888_v38  ;;  %v1889_v42 = vmax.f32 %v1769_v39, 0.0  ;;  %v1778_v45 = vpop.f32.mrb[95].mxu0 }
 0x1d1   : > { %v1484_v44 = vpop.f32.mrb[92].mxu1 }
 0x1d2   : > { %1954 = vst.msk [vmem:[%s2920_s10 + $0x168] sm:$0xff] %vm1908_vm2, %v1889_v42  ;;  %v1485_v46 = vadd.f32 %v2907_v16, %v1484_v44  ;;  %v1486_v47 = vpop.f32.mrb[93].mxu1 }
 0x1d3   : > { %v1487_v48 = vpop.f32.mrb[94].mxu1 }
 0x1d4   : > { %v1774_v49 = vadd.f32 %v1773_v40, %v1485_v46  ;;  %v1488_v50 = vadd.f32 %v2907_v16, %v1487_v48  ;;  %v1489_v51 = vpop.f32.mrb[95].mxu1 }
 0x1d5   : > { %v1781_v54 = vpop.f32.mrb[96].mxu0 }
 0x1d6   : > { %v1890_v52 = vmax.f32 %v1774_v49, 0.0  ;;  %v1777_v53 = vadd.f32 %v1776_v43, %v1488_v50  ;;  %v1783_v55 = vpop.f32.mrb[97].mxu0 }
 0x1d7   : > { %v1784_v57 = vpop.f32.mrb[98].mxu0 }
 0x1d8   : > { %1955 = vst.msk [vmem:[%s2920_s10 + $0x170] sm:$0xff] %vm1908_vm2, %v1890_v52  ;;  %v1891_v56 = vmax.f32 %v1777_v53, 0.0  ;;  %v1786_v59 = vpop.f32.mrb[99].mxu0 }
 0x1d9   : > { %v1492_v58 = vpop.f32.mrb[96].mxu1 }
 0x1da   : > { %1956 = vst.msk [vmem:[%s2920_s10 + $0x178] sm:$0xff] %vm1908_vm2, %v1891_v56  ;;  %v1493_v60 = vadd.f32 %v2907_v16, %v1492_v58  ;;  %v1494_v61 = vpop.f32.mrb[97].mxu1 }
 0x1db   : > { %v1495_v62 = vpop.f32.mrb[98].mxu1 }
 0x1dc   : > { %v1782_v63 = vadd.f32 %v1781_v54, %v1493_v60  ;;  %v1496_v0 = vadd.f32 %v2907_v16, %v1495_v62  ;;  %v1497_v1 = vpop.f32.mrb[99].mxu1 }
 0x1dd   : > { %v1789_v4 = vpop.f32.mrb[100].mxu0 }
 0x1de   : > { %v1892_v2 = vmax.f32 %v1782_v63, 0.0  ;;  %v1785_v3 = vadd.f32 %v1784_v57, %v1496_v0  ;;  %v1791_v5 = vpop.f32.mrb[101].mxu0 }
 0x1df   : > { %v1792_v7 = vpop.f32.mrb[102].mxu0 }
 0x1e0   : > { %1957 = vst.msk [vmem:[%s2920_s10 + $0x180] sm:$0xff] %vm1908_vm2, %v1892_v2  ;;  %v1893_v6 = vmax.f32 %v1785_v3, 0.0  ;;  %v1794_v9 = vpop.f32.mrb[103].mxu0 }
 0x1e1   : > { %v1500_v8 = vpop.f32.mrb[100].mxu1 }
 0x1e2   : > { %1958 = vst.msk [vmem:[%s2920_s10 + $0x188] sm:$0xff] %vm1908_vm2, %v1893_v6  ;;  %v1501_v10 = vadd.f32 %v2907_v16, %v1500_v8  ;;  %v1502_v11 = vpop.f32.mrb[101].mxu1 }
 0x1e3   : > { %v1503_v12 = vpop.f32.mrb[102].mxu1 }
 0x1e4   : > { %v1790_v13 = vadd.f32 %v1789_v4, %v1501_v10  ;;  %v1504_v14 = vadd.f32 %v2907_v16, %v1503_v12  ;;  %v1505_v15 = vpop.f32.mrb[103].mxu1 }
 0x1e5   : > { %v1797_v19 = vpop.f32.mrb[104].mxu0 }
 0x1e6   : > { %v1894_v17 = vmax.f32 %v1790_v13, 0.0  ;;  %v1793_v18 = vadd.f32 %v1792_v7, %v1504_v14  ;;  %v1799_v20 = vpop.f32.mrb[105].mxu0  ;;  %v2594_v7 = vld [vmem:[%s3132_s2] ss:$0 sm:$0xff] }
 0x1e7   : > { %v1800_v22 = vpop.f32.mrb[106].mxu0 }
 0x1e8   : > { %1959 = vst.msk [vmem:[%s2920_s10 + $0x190] sm:$0xff] %vm1908_vm2, %v1894_v17  ;;  %v1895_v21 = vmax.f32 %v1793_v18, 0.0  ;;  %v1802_v24 = vpop.f32.mrb[107].mxu0 }
 0x1e9   : > { %v1508_v23 = vpop.f32.mrb[104].mxu1 }
 0x1ea   : > { %1960 = vst.msk [vmem:[%s2920_s10 + $0x198] sm:$0xff] %vm1908_vm2, %v1895_v21  ;;  %v1509_v25 = vadd.f32 %v2907_v16, %v1508_v23  ;;  %v1510_v26 = vpop.f32.mrb[105].mxu1 }
 0x1eb   : > { %v1511_v27 = vpop.f32.mrb[106].mxu1 }
 0x1ec   : > { %v1798_v28 = vadd.f32 %v1797_v19, %v1509_v25  ;;  %v1512_v29 = vadd.f32 %v2907_v16, %v1511_v27  ;;  %v1513_v30 = vpop.f32.mrb[107].mxu1 }
 0x1ed   : > { %v1805_v33 = vpop.f32.mrb[108].mxu0 }
 0x1ee   : > { %v1896_v31 = vmax.f32 %v1798_v28, 0.0  ;;  %v1801_v32 = vadd.f32 %v1800_v22, %v1512_v29  ;;  %v1807_v34 = vpop.f32.mrb[109].mxu0 }
 0x1ef   : > { %v1808_v36 = vpop.f32.mrb[110].mxu0 }
 0x1f0   : > { %1961 = vst.msk [vmem:[%s2920_s10 + $0x1a0] sm:$0xff] %vm1908_vm2, %v1896_v31  ;;  %v1897_v35 = vmax.f32 %v1801_v32, 0.0  ;;  %v1810_v38 = vpop.f32.mrb[111].mxu0 }
 0x1f1   : > { %v1516_v37 = vpop.f32.mrb[108].mxu1 }
 0x1f2   : > { %1962 = vst.msk [vmem:[%s2920_s10 + $0x1a8] sm:$0xff] %vm1908_vm2, %v1897_v35  ;;  %v1517_v39 = vadd.f32 %v2907_v16, %v1516_v37  ;;  %v1518_v40 = vpop.f32.mrb[109].mxu1 }
 0x1f3   : > { %v1519_v41 = vpop.f32.mrb[110].mxu1 }
 0x1f4   : > { %v1806_v42 = vadd.f32 %v1805_v33, %v1517_v39  ;;  %v1520_v43 = vadd.f32 %v2907_v16, %v1519_v41  ;;  %v1521_v44 = vpop.f32.mrb[111].mxu1 }
 0x1f5   : > { %v1813_v47 = vpop.f32.mrb[112].mxu0 }
 0x1f6   : > { %v1898_v45 = vmax.f32 %v1806_v42, 0.0  ;;  %v1809_v46 = vadd.f32 %v1808_v36, %v1520_v43  ;;  %v1815_v48 = vpop.f32.mrb[113].mxu0 }
 0x1f7   : > { %v1816_v50 = vpop.f32.mrb[114].mxu0 }
 0x1f8   : > { %1963 = vst.msk [vmem:[%s2920_s10 + $0x1b0] sm:$0xff] %vm1908_vm2, %v1898_v45  ;;  %v1899_v49 = vmax.f32 %v1809_v46, 0.0  ;;  %v1818_v52 = vpop.f32.mrb[115].mxu0 }
 0x1f9   : > { %v1524_v51 = vpop.f32.mrb[112].mxu1 }
 0x1fa   : > { %1964 = vst.msk [vmem:[%s2920_s10 + $0x1b8] sm:$0xff] %vm1908_vm2, %v1899_v49  ;;  %v1525_v53 = vadd.f32 %v2907_v16, %v1524_v51  ;;  %v1526_v54 = vpop.f32.mrb[113].mxu1 }
 0x1fb   : > { %v1527_v55 = vpop.f32.mrb[114].mxu1 }
 0x1fc   : > { %v1814_v56 = vadd.f32 %v1813_v47, %v1525_v53  ;;  %v1528_v57 = vadd.f32 %v2907_v16, %v1527_v55  ;;  %v1529_v58 = vpop.f32.mrb[115].mxu1 }
 0x1fd   : > { %v1821_v61 = vpop.f32.mrb[116].mxu0 }
 0x1fe   : > { %v1900_v59 = vmax.f32 %v1814_v56, 0.0  ;;  %v1817_v60 = vadd.f32 %v1816_v50, %v1528_v57  ;;  %v1823_v62 = vpop.f32.mrb[117].mxu0 }
 0x1ff   : > { %v1824_v0 = vpop.f32.mrb[118].mxu0 }
 0x200   : > { %1965 = vst.msk [vmem:[%s2920_s10 + $0x1c0] sm:$0xff] %vm1908_vm2, %v1900_v59  ;;  %v1901_v63 = vmax.f32 %v1817_v60, 0.0  ;;  %v1826_v2 = vpop.f32.mrb[119].mxu0 }
 0x201   : > { %v1532_v1 = vpop.f32.mrb[116].mxu1 }
 0x202   : > { %1966 = vst.msk [vmem:[%s2920_s10 + $0x1c8] sm:$0xff] %vm1908_vm2, %v1901_v63  ;;  %v1533_v3 = vadd.f32 %v2907_v16, %v1532_v1  ;;  %v1534_v4 = vpop.f32.mrb[117].mxu1 }
 0x203   : > { %v1535_v5 = vpop.f32.mrb[118].mxu1 }
 0x204   : > { %v1822_v6 = vadd.f32 %v1821_v61, %v1533_v3  ;;  %v1536_v8 = vadd.f32 %v2594_v7, %v1535_v5  ;;  %v1537_v9 = vpop.f32.mrb[119].mxu1 }
 0x205   : > { %v1829_v12 = vpop.f32.mrb[120].mxu0 }
 0x206   : > { %v1902_v10 = vmax.f32 %v1822_v6, 0.0  ;;  %v1825_v11 = vadd.f32 %v1824_v0, %v1536_v8  ;;  %v1831_v13 = vpop.f32.mrb[121].mxu0 }
 0x207   : > { %v1832_v15 = vpop.f32.mrb[122].mxu0 }
 0x208   : > { %1967 = vst.msk [vmem:[%s2920_s10 + $0x1d0] sm:$0xff] %vm1908_vm2, %v1902_v10  ;;  %v1903_v14 = vmax.f32 %v1825_v11, 0.0  ;;  %v1834_v17 = vpop.f32.mrb[123].mxu0 }
 0x209   : > { %v1540_v16 = vpop.f32.mrb[120].mxu1 }
 0x20a   : > { %1968 = vst.msk [vmem:[%s2920_s10 + $0x1d8] sm:$0xff] %vm1908_vm2, %v1903_v14  ;;  %v1541_v18 = vadd.f32 %v2594_v7, %v1540_v16  ;;  %v1542_v19 = vpop.f32.mrb[121].mxu1 }
 0x20b   : > { %v1543_v20 = vpop.f32.mrb[122].mxu1 }
 0x20c   : > { %v1830_v21 = vadd.f32 %v1829_v12, %v1541_v18  ;;  %v1544_v22 = vadd.f32 %v2594_v7, %v1543_v20  ;;  %v1545_v23 = vpop.f32.mrb[123].mxu1 }
 0x20d   : > { %v1837_v26 = vpop.f32.mrb[124].mxu0 }
 0x20e   : > { %v1904_v24 = vmax.f32 %v1830_v21, 0.0  ;;  %v1833_v25 = vadd.f32 %v1832_v15, %v1544_v22  ;;  %v1839_v27 = vpop.f32.mrb[125].mxu0 }
 0x20f   : > { %v1840_v29 = vpop.f32.mrb[126].mxu0 }
 0x210   : > { %1969 = vst.msk [vmem:[%s2920_s10 + $0x1e0] sm:$0xff] %vm1908_vm2, %v1904_v24  ;;  %v1905_v28 = vmax.f32 %v1833_v25, 0.0  ;;  %v1842_v31 = vpop.f32.mrb[127].mxu0 }
 0x211   : > { %v1548_v30 = vpop.f32.mrb[124].mxu1 }
 0x212   : > { %1970 = vst.msk [vmem:[%s2920_s10 + $0x1e8] sm:$0xff] %vm1908_vm2, %v1905_v28  ;;  %v1549_v32 = vadd.f32 %v2594_v7, %v1548_v30  ;;  %v1550_v33 = vpop.f32.mrb[125].mxu1 }
 0x213   : > { %v1551_v34 = vpop.f32.mrb[126].mxu1 }
 0x214   : > { %v1838_v35 = vadd.f32 %v1837_v26, %v1549_v32  ;;  %v1552_v36 = vadd.f32 %v2594_v7, %v1551_v34  ;;  %v1553_v37 = vpop.f32.mrb[127].mxu1 }
 0x216   : > { %v1906_v38 = vmax.f32 %v1838_v35, 0.0  ;;  %v1841_v39 = vadd.f32 %v1840_v29, %v1552_v36 }
 0x218   : > { %1971 = vst.msk [vmem:[%s2920_s10 + $0x1f0] sm:$0xff] %vm1908_vm2, %v1906_v38  ;;  %v1907_v40 = vmax.f32 %v1841_v39, 0.0 }
 0x21a   : > { %1972 = vst.msk [vmem:[%s2920_s10 + $0x1f8] sm:$0xff] %vm1908_vm2, %v1907_v40 }
 0x21b PF: > { %s13_s12 = sadd.s32 1, %s2601_s12  }
 0x21c   : > { %p10_p4 = scmp.ge.s32.totalorder %s13_s12, 4  }
 0x21e   :  { %12 = sbr.rel (!%p10_p4) target bundleno = 1 (0x1), region = 62 }

// kernel: deeplab3d_forward.6
= control target key start
LH: loop header
LB: loop body
LE: loop exit
PB: predicated region body
PF: predicated region fallthrough
CT: control target
= control target key end

     0   :  { %s2584_s12 = smov 0   ;;  %s3073_s0 = inlined_call_operand.vmem [shape: bf16[1024,432], index: 0, kind: input, shape index: {}]   ;;  %s3074_s1 = inlined_call_operand.vmem [shape: bf16[432,16], index: 1, kind: input, shape index: {}]   ;;  %s3075_s2 = inlined_call_operand.vmem [shape: f32[1,16], index: 2, kind: input, shape index: {}]   ;;  %s3076_s3 = inlined_call_operand.vmem [shape: f32[1024,16], index: 3, kind: output, shape index: {}]  }
   0x1 LB: > { %s1997_s13 = sadd.s32 4294967295, %s2561_s12   ;;  %p2001_p0 = scmp.ge.s32.totalorder %s2561_s12, 1  ;;  %s2561_s12 = sphi %s2584_s12, %s13_s12  }
   0x2   : > { %p139_p1 = scmp.lt.s32.totalorder %s2561_s12, 3 }
   0x4   : > { %p140_p2 = pnand %p2001_p0, %p139_p1 }
   0x5   : > { %v2335_v0 = vld [vmem:[%s3074_s1] sm:$0xff] (!%p140_p2)   ;;  %v2563_v1 = vmov (!%p140_p2), 0   ;;  %v2336_v2 = vld [vmem:[%s3074_s1 + $0x8] sm:$0xff] (!%p140_p2)   ;;  %v2337_v4 = vld [vmem:[%s3074_s1 + $0x10] sm:$0xff] (!%p140_p2)   ;;  %s2002_s28 = sshll.u32 (!%p140_p2), %s1997_s13, 6  ;;  %vm1137_vm0 = vcmask (!%p140_p2), 392192  }
   0x6   : > { %143 = sbr.rel (%p140_p2) target bundleno = 539 (0x21b), region = 32  ;;  %1234 = vmatprep.subr.bf16.mxu1 (!%p140_p2), %v2563_v1  ;;  %1523 = vmatprep.subr.bf16.mxu0 (!%p140_p2), %v2563_v1  ;;  %v2340_v3 = vld [vmem:[%s3074_s1 + $0x80] sm:$0xff] (!%p140_p2)   ;;  %v2342_v5 = vld [vmem:[%s3074_s1 + $0x88] sm:$0xff] (!%p140_p2)   ;;  %v2338_v6 = vld [vmem:[%s3074_s1 + $0x18] sm:$0xff] (!%p140_p2)   ;;  %p165_p3 = scmp.lt.s32.totalorder (!%p140_p2), %s2002_s28, 127  ;;  %vm1876_vm1 = vcmask (!%p140_p2), 130048  }
   0x7   : > { %1235 = vmatpush1.bf16.msra.mxu1 (!%p140_p2), %v2335_v0  ;;  %1524 = vmatpush1.bf16.msra.mxu0 (!%p140_p2), %v2340_v3  ;;  %v2344_v7 = vld [vmem:[%s3074_s1 + $0x90] sm:$0xff] (!%p140_p2)   ;;  %v2339_v8 = vld [vmem:[%s3074_s1 + $0x20] sm:$0xff] (!%p140_p2)   ;;  %v2346_v9 = vld [vmem:[%s3074_s1 + $0x98] sm:$0xff] (!%p140_p2)  }
   0x8   : > { %1236 = vmatprep.subr.bf16.mxu1 (!%p140_p2), %v2563_v1  ;;  %1525 = vmatprep.subr.bf16.mxu0 (!%p140_p2), %v2563_v1  ;;  %v2341_v10 = vld [vmem:[%s3074_s1 + $0x28] sm:$0xff] (!%p140_p2)   ;;  %v2348_v11 = vld [vmem:[%s3074_s1 + $0xa0] sm:$0xff] (!%p140_p2)   ;;  %v2343_v12 = vld [vmem:[%s3074_s1 + $0x30] sm:$0xff] (!%p140_p2)  }
   0x9   : > { %v2350_v13 = vld [vmem:[%s3074_s1 + $0xa8] sm:$0xff] (!%p140_p2)   ;;  %v2345_v14 = vld [vmem:[%s3074_s1 + $0x38] sm:$0xff] (!%p140_p2)   ;;  %v2352_v15 = vld [vmem:[%s3074_s1 + $0xb0] sm:$0xff] (!%p140_p2)  }
   0xa   : > { %v2347_v18 = vld [vmem:[%s3074_s1 + $0x40] sm:$0xff] (!%p140_p2)   ;;  %v2354_v19 = vld [vmem:[%s3074_s1 + $0xb8] sm:$0xff] (!%p140_p2)   ;;  %v2349_v20 = vld [vmem:[%s3074_s1 + $0x48] sm:$0xff] (!%p140_p2)  }
   0xb   : > { %1237 = vmatpush1.bf16.msra.mxu1 (!%p140_p2), %v2336_v2  ;;  %1526 = vmatpush1.bf16.msra.mxu0 (!%p140_p2), %v2342_v5  ;;  %v2356_v21 = vld [vmem:[%s3074_s1 + $0xc0] sm:$0xff] (!%p140_p2)   ;;  %v2351_v22 = vld [vmem:[%s3074_s1 + $0x50] sm:$0xff] (!%p140_p2)   ;;  %v2358_v23 = vld [vmem:[%s3074_s1 + $0xc8] sm:$0xff] (!%p140_p2)  }
   0xc   : > { %1238 = vmatprep.subr.bf16.mxu1 (!%p140_p2), %v2563_v1  ;;  %1527 = vmatprep.subr.bf16.mxu0 (!%p140_p2), %v2563_v1  ;;  %v2353_v24 = vld [vmem:[%s3074_s1 + $0x58] sm:$0xff] (!%p140_p2)   ;;  %v2360_v25 = vld [vmem:[%s3074_s1 + $0xd0] sm:$0xff] (!%p140_p2)   ;;  %v2355_v26 = vld [vmem:[%s3074_s1 + $0x60] sm:$0xff] (!%p140_p2)  }
   0xd   : > { %s3078_s28 = smov (!%p165_p3, %s2002_s28), 127  ;;  %v2357_v29 = vld [vmem:[%s3074_s1 + $0x68] sm:$0xff]   ;;  %v2359_v30 = vld [vmem:[%s3074_s1 + $0x70] sm:$0xff]   ;;  %v2361_v33 = vld [vmem:[%s3074_s1 + $0x78] sm:$0xff]  }
   0xe   : > { %s2197_s13 = sshll.u32 %s3078_s28, 4  ;;  %s2006_s25 = sshll.u32 %s3078_s28, 3 }
   0xf   : > { %1239 = vmatpush1.bf16.msra.mxu1 %v2337_v4  ;;  %1528 = vmatpush1.bf16.msra.mxu0 %v2344_v7  ;;  %s2650_s18 = scalar_lea.vmem %s3073_s0, %s2197_s13  ;;  %s2867_s28 = scalar_lea.vmem %s3076_s3, %s2006_s25 }
  0x10   : > { %1240 = vmatprep.subr.bf16.mxu1 %v2563_v1  ;;  %1529 = vmatprep.subr.bf16.mxu0 %v2563_v1  ;;  %v2364_v16 = vld [vmem:[%s2650_s18 + $0xc] ss:$16 sps:$4 sm:$0xff]   ;;  %v2367_v17 = vld [vmem:[%s2650_s18 + $0x4] ss:$16 sps:$4 sm:$0xff]   ;;  %v2362_v27 = vld [vmem:[%s2650_s18 + $0x8] ss:$16 sps:$4 sm:$0xff]  }
  0x11   : > { %2163 = vmatprep.mubr.msk.bf16.mxu0 %vm1137_vm0, %v2364_v16  ;;  %1266 = vmatprep.mubr.bf16.mxu1 %v2367_v17  ;;  %v2368_v28 = vld [vmem:[%s2650_s18 + $0x2c] ss:$16 sps:$4 sm:$0xff]   ;;  %v2372_v31 = vld [vmem:[%s2650_s18 + $0x28] ss:$16 sps:$4 sm:$0xff]   ;;  %v2365_v34 = vld [vmem:[%s2650_s18] ss:$16 sps:$4 sm:$0xff]  }
  0x12   : > { %v2374_v32 = vld [vmem:[%s2650_s18 + $0x4c] ss:$16 sps:$4 sm:$0xff]   ;;  %v2370_v35 = vld [vmem:[%s2650_s18 + $0x24] ss:$16 sps:$4 sm:$0xff]   ;;  %v2378_v36 = vld [vmem:[%s2650_s18 + $0x48] ss:$16 sps:$4 sm:$0xff]  }
  0x13   : > { %1241 = vmatpush1.bf16.msra.mxu1 %v2338_v6  ;;  %1530 = vmatpush1.bf16.msra.mxu0 %v2346_v9  ;;  %v2380_v37 = vld [vmem:[%s2650_s18 + $0x6c] ss:$16 sps:$4 sm:$0xff]   ;;  %v2373_v38 = vld [vmem:[%s2650_s18 + $0x20] ss:$16 sps:$4 sm:$0xff]   ;;  %v2376_v39 = vld [vmem:[%s2650_s18 + $0x44] ss:$16 sps:$4 sm:$0xff]  }
  0x14   : > { %1242 = vmatprep.subr.bf16.mxu1 %v2563_v1  ;;  %1531 = vmatprep.subr.bf16.mxu0 %v2563_v1  ;;  %v2384_v40 = vld [vmem:[%s2650_s18 + $0x68] ss:$16 sps:$4 sm:$0xff]   ;;  %v2386_v41 = vld [vmem:[%s2650_s18 + $0x8c] ss:$16 sps:$4 sm:$0xff]   ;;  %v2379_v42 = vld [vmem:[%s2650_s18 + $0x40] ss:$16 sps:$4 sm:$0xff]  }
  0x15   : > { %v2382_v43 = vld [vmem:[%s2650_s18 + $0x64] ss:$16 sps:$4 sm:$0xff]   ;;  %v2390_v44 = vld [vmem:[%s2650_s18 + $0x88] ss:$16 sps:$4 sm:$0xff]   ;;  %v2392_v45 = vld [vmem:[%s2650_s18 + $0xac] ss:$16 sps:$4 sm:$0xff]  }
  0x16   : > { %v2385_v46 = vld [vmem:[%s2650_s18 + $0x60] ss:$16 sps:$4 sm:$0xff]   ;;  %v2388_v47 = vld [vmem:[%s2650_s18 + $0x84] ss:$16 sps:$4 sm:$0xff]   ;;  %v2396_v48 = vld [vmem:[%s2650_s18 + $0xa8] ss:$16 sps:$4 sm:$0xff]  }
  0x17   : > { %1243 = vmatpush1.bf16.msra.mxu1 %v2339_v8  ;;  %1532 = vmatpush1.bf16.msra.mxu0 %v2348_v11  ;;  %v2398_v49 = vld [vmem:[%s2650_s18 + $0xcc] ss:$16 sps:$4 sm:$0xff]   ;;  %v2391_v50 = vld [vmem:[%s2650_s18 + $0x80] ss:$16 sps:$4 sm:$0xff]   ;;  %v2394_v51 = vld [vmem:[%s2650_s18 + $0xa4] ss:$16 sps:$4 sm:$0xff]  }
  0x18   : > { %1244 = vmatprep.subr.bf16.mxu1 %v2563_v1  ;;  %1533 = vmatprep.subr.bf16.mxu0 %v2563_v1  ;;  %v2402_v52 = vld [vmem:[%s2650_s18 + $0xc8] ss:$16 sps:$4 sm:$0xff]   ;;  %v2404_v53 = vld [vmem:[%s2650_s18 + $0xec] ss:$16 sps:$4 sm:$0xff]   ;;  %v2397_v54 = vld [vmem:[%s2650_s18 + $0xa0] ss:$16 sps:$4 sm:$0xff]  }
  0x19   : > { %v2400_v55 = vld [vmem:[%s2650_s18 + $0xc4] ss:$16 sps:$4 sm:$0xff]   ;;  %v2408_v56 = vld [vmem:[%s2650_s18 + $0xe8] ss:$16 sps:$4 sm:$0xff]   ;;  %v2410_v57 = vld [vmem:[%s2650_s18 + $0x10c] ss:$16 sps:$4 sm:$0xff]  }
  0x1a   : > { %v2403_v58 = vld [vmem:[%s2650_s18 + $0xc0] ss:$16 sps:$4 sm:$0xff]   ;;  %v2406_v59 = vld [vmem:[%s2650_s18 + $0xe4] ss:$16 sps:$4 sm:$0xff]   ;;  %v2414_v60 = vld [vmem:[%s2650_s18 + $0x108] ss:$16 sps:$4 sm:$0xff]  }
  0x1b   : > { %1245 = vmatpush1.bf16.msra.mxu1 %v2341_v10  ;;  %1534 = vmatpush1.bf16.msra.mxu0 %v2350_v13  ;;  %v2416_v61 = vld [vmem:[%s2650_s18 + $0x12c] ss:$16 sps:$4 sm:$0xff]   ;;  %v2409_v62 = vld [vmem:[%s2650_s18 + $0xe0] ss:$16 sps:$4 sm:$0xff]   ;;  %v2412_v63 = vld [vmem:[%s2650_s18 + $0x104] ss:$16 sps:$4 sm:$0xff]  }
  0x1c   : > { %1246 = vmatprep.subr.bf16.mxu1 %v2563_v1  ;;  %1535 = vmatprep.subr.bf16.mxu0 %v2563_v1  ;;  %v2420_v0 = vld [vmem:[%s2650_s18 + $0x128] ss:$16 sps:$4 sm:$0xff]   ;;  %v2415_v2 = vld [vmem:[%s2650_s18 + $0x100] ss:$16 sps:$4 sm:$0xff]   ;;  %v2418_v3 = vld [vmem:[%s2650_s18 + $0x124] ss:$16 sps:$4 sm:$0xff]  }
  0x1d   : > { %v2426_v4 = vld [vmem:[%s2650_s18 + $0x148] ss:$16 sps:$4 sm:$0xff]   ;;  %v2428_v5 = vld [vmem:[%s2650_s18 + $0x16c] ss:$16 sps:$4 sm:$0xff]   ;;  %v2421_v6 = vld [vmem:[%s2650_s18 + $0x120] ss:$16 sps:$4 sm:$0xff]  }
  0x1e   : > { %v2424_v7 = vld [vmem:[%s2650_s18 + $0x144] ss:$16 sps:$4 sm:$0xff]   ;;  %v2432_v8 = vld [vmem:[%s2650_s18 + $0x168] ss:$16 sps:$4 sm:$0xff]   ;;  %v2434_v9 = vld [vmem:[%s2650_s18 + $0x18c] ss:$16 sps:$4 sm:$0xff]  }
  0x1f   : > { %1247 = vmatpush1.bf16.msra.mxu1 %v2343_v12  ;;  %1536 = vmatpush1.bf16.msra.mxu0 %v2352_v15  ;;  %v2427_v10 = vld [vmem:[%s2650_s18 + $0x140] ss:$16 sps:$4 sm:$0xff]   ;;  %v2430_v11 = vld [vmem:[%s2650_s18 + $0x164] ss:$16 sps:$4 sm:$0xff]   ;;  %v2438_v12 = vld [vmem:[%s2650_s18 + $0x188] ss:$16 sps:$4 sm:$0xff]  }
  0x20   : > { %1248 = vmatprep.subr.bf16.mxu1 %v2563_v1  ;;  %1537 = vmatprep.subr.bf16.mxu0 %v2563_v1  ;;  %v2440_v13 = vld [vmem:[%s2650_s18 + $0x1ac] ss:$16 sps:$4 sm:$0xff]   ;;  %v2436_v15 = vld [vmem:[%s2650_s18 + $0x184] ss:$16 sps:$4 sm:$0xff]   ;;  %v2444_v16 = vld [vmem:[%s2650_s18 + $0x1a8] ss:$16 sps:$4 sm:$0xff]  }
  0x21   : > { %v2446_v17 = vld [vmem:[%s2650_s18 + $0x1cc] ss:$16 sps:$4 sm:$0xff]  }
  0x23   : > { %1249 = vmatpush1.bf16.msra.mxu1 %v2345_v14  ;;  %1538 = vmatpush1.bf16.msra.mxu0 %v2354_v19  ;;  %v2433_v14 = vld [vmem:[%s2650_s18 + $0x160] ss:$16 sps:$4 sm:$0xff]   ;;  %v2442_v19 = vld [vmem:[%s2650_s18 + $0x1a4] ss:$16 sps:$4 sm:$0xff]  }
  0x24   : > { %1250 = vmatprep.subr.bf16.mxu1 %v2563_v1  ;;  %1539 = vmatprep.subr.bf16.mxu0 %v2563_v1 }
  0x27   : > { %1251 = vmatpush1.bf16.msra.mxu1 %v2347_v18  ;;  %1540 = vmatpush1.bf16.msra.mxu0 %v2356_v21  ;;  %v2439_v18 = vld [vmem:[%s2650_s18 + $0x180] ss:$16 sps:$4 sm:$0xff]   ;;  %v2452_v21 = vld [vmem:[%s2650_s18 + $0x1ec] ss:$16 sps:$4 sm:$0xff]  }
  0x28   : > { %1252 = vmatprep.subr.bf16.mxu1 %v2563_v1  ;;  %1541 = vmatprep.subr.bf16.mxu0 %v2563_v1 }
  0x2b   : > { %1253 = vmatpush1.bf16.msra.mxu1 %v2349_v20  ;;  %1542 = vmatpush1.bf16.msra.mxu0 %v2358_v23  ;;  %v2450_v20 = vld [vmem:[%s2650_s18 + $0x1c8] ss:$16 sps:$4 sm:$0xff]   ;;  %v2448_v23 = vld [vmem:[%s2650_s18 + $0x1c4] ss:$16 sps:$4 sm:$0xff]  }
  0x2c   : > { %1254 = vmatprep.subr.bf16.mxu1 %v2563_v1  ;;  %1543 = vmatprep.subr.bf16.mxu0 %v2563_v1 }
  0x2f   : > { %1255 = vmatpush1.bf16.msra.mxu1 %v2351_v22  ;;  %1544 = vmatpush1.bf16.msra.mxu0 %v2360_v25  ;;  %v2445_v22 = vld [vmem:[%s2650_s18 + $0x1a0] ss:$16 sps:$4 sm:$0xff]   ;;  %v2458_v25 = vld [vmem:[%s2650_s18 + $0x20c] ss:$16 sps:$4 sm:$0xff]  }
  0x30   : > { %1256 = vmatprep.subr.bf16.mxu1 %v2563_v1 }
  0x32   : > { %1556 = vmatmul.mubr.bf16.vlgmr.msra.gmra.mrb[0].mxu0 %v2362_v27  ;;  %v2454_v27 = vld [vmem:[%s2650_s18 + $0x1e4] ss:$16 sps:$4 sm:$0xff]  }
  0x33   : > { %1257 = vmatpush1.bf16.msra.mxu1 %v2353_v24  ;;  %2164 = vmatprep.mubr.msk.bf16.mxu0 %vm1137_vm0, %v2368_v28  ;;  %v2456_v24 = vld [vmem:[%s2650_s18 + $0x1e8] ss:$16 sps:$4 sm:$0xff]  }
  0x34   : > { %1258 = vmatprep.subr.bf16.mxu1 %v2563_v1  ;;  %v2462_v28 = vld [vmem:[%s2650_s18 + $0x208] ss:$16 sps:$4 sm:$0xff]  }
  0x37   : > { %1259 = vmatpush1.bf16.msra.mxu1 %v2355_v26  ;;  %v2451_v26 = vld [vmem:[%s2650_s18 + $0x1c0] ss:$16 sps:$4 sm:$0xff]  }
  0x38   : > { %1260 = vmatprep.subr.bf16.mxu1 %v2563_v1 }
  0x3a   : > { %1564 = vmatmul.mubr.bf16.gmra.mrb[4].mxu0 %v2372_v31  ;;  %v2460_v31 = vld [vmem:[%s2650_s18 + $0x204] ss:$16 sps:$4 sm:$0xff]  }
  0x3b   : > { %1261 = vmatpush1.bf16.msra.mxu1 %v2357_v29  ;;  %2165 = vmatprep.mubr.msk.bf16.mxu0 %vm1137_vm0, %v2374_v32  ;;  %v2464_v29 = vld [vmem:[%s2650_s18 + $0x22c] ss:$16 sps:$4 sm:$0xff]   ;;  %v2468_v32 = vld [vmem:[%s2650_s18 + $0x228] ss:$16 sps:$4 sm:$0xff]  }
  0x3c   : > { %1262 = vmatprep.subr.bf16.mxu1 %v2563_v1 }
  0x3f   : > { %1263 = vmatpush1.bf16.msra.mxu1 %v2359_v30  ;;  %v2457_v30 = vld [vmem:[%s2650_s18 + $0x1e0] ss:$16 sps:$4 sm:$0xff]  }
  0x40   : > { %1264 = vmatprep.subr.bf16.mxu1 %v2563_v1  ;;  %v2422_v1 = vld [vmem:[%s2650_s18 + $0x14c] ss:$16 sps:$4 sm:$0xff]  }
  0x42   : > { %1572 = vmatmul.mubr.bf16.gmra.mrb[8].mxu0 %v2378_v36  ;;  %v2474_v36 = vld [vmem:[%s2650_s18 + $0x248] ss:$16 sps:$4 sm:$0xff]  }
  0x43   : > { %1265 = vmatpush1.bf16.msra.mxu1 %v2361_v33  ;;  %2166 = vmatprep.mubr.msk.bf16.mxu0 %vm1137_vm0, %v2380_v37  ;;  %v2470_v33 = vld [vmem:[%s2650_s18 + $0x24c] ss:$16 sps:$4 sm:$0xff]  }
  0x44   : > { %v2476_v37 = vld [vmem:[%s2650_s18 + $0x26c] ss:$16 sps:$4 sm:$0xff]  }
  0x46   : > { %1267 = vmatmul.mubr.bf16.vlgmr.msra.gmra.mrb[0].mxu1 %v2365_v34  ;;  %v2463_v34 = vld [vmem:[%s2650_s18 + $0x200] ss:$16 sps:$4 sm:$0xff]  }
  0x47   : > { %1274 = vmatprep.mubr.bf16.mxu1 %v2370_v35  ;;  %v2466_v35 = vld [vmem:[%s2650_s18 + $0x224] ss:$16 sps:$4 sm:$0xff]  }
  0x4a   : > { %1580 = vmatmul.mubr.bf16.gmra.mrb[12].mxu0 %v2384_v40  ;;  %v2480_v40 = vld [vmem:[%s2650_s18 + $0x268] ss:$16 sps:$4 sm:$0xff]  }
  0x4b   : > { %2167 = vmatprep.mubr.msk.bf16.mxu0 %vm1137_vm0, %v2386_v41  ;;  %v2482_v41 = vld [vmem:[%s2650_s18 + $0x28c] ss:$16 sps:$4 sm:$0xff]  }
  0x4e   : > { %1275 = vmatmul.mubr.bf16.gmra.mrb[4].mxu1 %v2373_v38  ;;  %v2469_v38 = vld [vmem:[%s2650_s18 + $0x220] ss:$16 sps:$4 sm:$0xff]  }
  0x4f   : > { %1282 = vmatprep.mubr.bf16.mxu1 %v2376_v39  ;;  %v2472_v39 = vld [vmem:[%s2650_s18 + $0x244] ss:$16 sps:$4 sm:$0xff]  }
  0x52   : > { %1588 = vmatmul.mubr.bf16.gmra.mrb[16].mxu0 %v2390_v44  ;;  %v2486_v44 = vld [vmem:[%s2650_s18 + $0x288] ss:$16 sps:$4 sm:$0xff]  }
  0x53   : > { %2168 = vmatprep.mubr.msk.bf16.mxu0 %vm1137_vm0, %v2392_v45  ;;  %v2488_v45 = vld [vmem:[%s2650_s18 + $0x2ac] ss:$16 sps:$4 sm:$0xff]  }
  0x56   : > { %1283 = vmatmul.mubr.bf16.gmra.mrb[8].mxu1 %v2379_v42  ;;  %v2475_v42 = vld [vmem:[%s2650_s18 + $0x240] ss:$16 sps:$4 sm:$0xff]  }
  0x57   : > { %1290 = vmatprep.mubr.bf16.mxu1 %v2382_v43  ;;  %v2478_v43 = vld [vmem:[%s2650_s18 + $0x264] ss:$16 sps:$4 sm:$0xff]  }
  0x5a   : > { %1596 = vmatmul.mubr.bf16.gmra.mrb[20].mxu0 %v2396_v48  ;;  %v2492_v48 = vld [vmem:[%s2650_s18 + $0x2a8] ss:$16 sps:$4 sm:$0xff]  }
  0x5b   : > { %2169 = vmatprep.mubr.msk.bf16.mxu0 %vm1137_vm0, %v2398_v49  ;;  %v2494_v49 = vld [vmem:[%s2650_s18 + $0x2cc] ss:$16 sps:$4 sm:$0xff]  }
  0x5e   : > { %1291 = vmatmul.mubr.bf16.gmra.mrb[12].mxu1 %v2385_v46  ;;  %v2481_v46 = vld [vmem:[%s2650_s18 + $0x260] ss:$16 sps:$4 sm:$0xff]  }
  0x5f   : > { %1298 = vmatprep.mubr.bf16.mxu1 %v2388_v47  ;;  %v2484_v47 = vld [vmem:[%s2650_s18 + $0x284] ss:$16 sps:$4 sm:$0xff]  }
  0x62   : > { %1604 = vmatmul.mubr.bf16.gmra.mrb[24].mxu0 %v2402_v52  ;;  %v2498_v52 = vld [vmem:[%s2650_s18 + $0x2c8] ss:$16 sps:$4 sm:$0xff]  }
  0x63   : > { %2170 = vmatprep.mubr.msk.bf16.mxu0 %vm1137_vm0, %v2404_v53  ;;  %v2500_v53 = vld [vmem:[%s2650_s18 + $0x2ec] ss:$16 sps:$4 sm:$0xff]  }
  0x66   : > { %1299 = vmatmul.mubr.bf16.gmra.mrb[16].mxu1 %v2391_v50  ;;  %v2487_v50 = vld [vmem:[%s2650_s18 + $0x280] ss:$16 sps:$4 sm:$0xff]  }
  0x67   : > { %1306 = vmatprep.mubr.bf16.mxu1 %v2394_v51  ;;  %v2490_v51 = vld [vmem:[%s2650_s18 + $0x2a4] ss:$16 sps:$4 sm:$0xff]  }
  0x6a   : > { %1612 = vmatmul.mubr.bf16.gmra.mrb[28].mxu0 %v2408_v56  ;;  %v2504_v56 = vld [vmem:[%s2650_s18 + $0x2e8] ss:$16 sps:$4 sm:$0xff]  }
  0x6b   : > { %2171 = vmatprep.mubr.msk.bf16.mxu0 %vm1137_vm0, %v2410_v57  ;;  %v2506_v57 = vld [vmem:[%s2650_s18 + $0x30c] ss:$16 sps:$4 sm:$0xff]  }
  0x6e   : > { %1307 = vmatmul.mubr.bf16.gmra.mrb[20].mxu1 %v2397_v54  ;;  %v2493_v54 = vld [vmem:[%s2650_s18 + $0x2a0] ss:$16 sps:$4 sm:$0xff]  }
  0x6f   : > { %1314 = vmatprep.mubr.bf16.mxu1 %v2400_v55  ;;  %v2496_v55 = vld [vmem:[%s2650_s18 + $0x2c4] ss:$16 sps:$4 sm:$0xff]  }
  0x72   : > { %1620 = vmatmul.mubr.bf16.gmra.mrb[32].mxu0 %v2414_v60  ;;  %v2510_v60 = vld [vmem:[%s2650_s18 + $0x308] ss:$16 sps:$4 sm:$0xff]  }
  0x73   : > { %2172 = vmatprep.mubr.msk.bf16.mxu0 %vm1137_vm0, %v2416_v61  ;;  %v2512_v61 = vld [vmem:[%s2650_s18 + $0x32c] ss:$16 sps:$4 sm:$0xff]  }
  0x76   : > { %1315 = vmatmul.mubr.bf16.gmra.mrb[24].mxu1 %v2403_v58  ;;  %v2499_v58 = vld [vmem:[%s2650_s18 + $0x2c0] ss:$16 sps:$4 sm:$0xff]  }
  0x77   : > { %1322 = vmatprep.mubr.bf16.mxu1 %v2406_v59  ;;  %v2502_v59 = vld [vmem:[%s2650_s18 + $0x2e4] ss:$16 sps:$4 sm:$0xff]  }
  0x7a   : > { %1628 = vmatmul.mubr.bf16.gmra.mrb[36].mxu0 %v2420_v0  ;;  %v2516_v0 = vld [vmem:[%s2650_s18 + $0x328] ss:$16 sps:$4 sm:$0xff]  }
  0x7b   : > { %2173 = vmatprep.mubr.msk.bf16.mxu0 %vm1137_vm0, %v2422_v1  ;;  %v2518_v1 = vld [vmem:[%s2650_s18 + $0x34c] ss:$16 sps:$4 sm:$0xff]  }
  0x7e   : > { %1323 = vmatmul.mubr.bf16.gmra.mrb[28].mxu1 %v2409_v62  ;;  %v2505_v62 = vld [vmem:[%s2650_s18 + $0x2e0] ss:$16 sps:$4 sm:$0xff]  }
  0x7f   : > { %1330 = vmatprep.mubr.bf16.mxu1 %v2412_v63  ;;  %v2508_v63 = vld [vmem:[%s2650_s18 + $0x304] ss:$16 sps:$4 sm:$0xff]  }
  0x82   : > { %1636 = vmatmul.mubr.bf16.gmra.mrb[40].mxu0 %v2426_v4  ;;  %v2522_v4 = vld [vmem:[%s2650_s18 + $0x348] ss:$16 sps:$4 sm:$0xff]  }
  0x83   : > { %2174 = vmatprep.mubr.msk.bf16.mxu0 %vm1137_vm0, %v2428_v5  ;;  %v2524_v5 = vld [vmem:[%s2650_s18 + $0x36c] ss:$16 sps:$4 sm:$0xff]  }
  0x86   : > { %1331 = vmatmul.mubr.bf16.gmra.mrb[32].mxu1 %v2415_v2  ;;  %v2511_v2 = vld [vmem:[%s2650_s18 + $0x300] ss:$16 sps:$4 sm:$0xff]  }
  0x87   : > { %1338 = vmatprep.mubr.bf16.mxu1 %v2418_v3  ;;  %v2514_v3 = vld [vmem:[%s2650_s18 + $0x324] ss:$16 sps:$4 sm:$0xff]  }
  0x8a   : > { %1644 = vmatmul.mubr.bf16.gmra.mrb[44].mxu0 %v2432_v8  ;;  %v2520_v8 = vld [vmem:[%s2650_s18 + $0x344] ss:$16 sps:$4 sm:$0xff]  }
  0x8b   : > { %2175 = vmatprep.mubr.msk.bf16.mxu0 %vm1137_vm0, %v2434_v9 }
  0x8e   : > { %1339 = vmatmul.mubr.bf16.gmra.mrb[36].mxu1 %v2421_v6  ;;  %v2517_v6 = vld [vmem:[%s2650_s18 + $0x320] ss:$16 sps:$4 sm:$0xff]  }
  0x8f   : > { %1346 = vmatprep.mubr.bf16.mxu1 %v2424_v7 }
  0x92   : > { %1652 = vmatmul.mubr.bf16.gmra.mrb[48].mxu0 %v2438_v12  ;;  %v2530_v12 = vld [vmem:[%s2650_s18 + $0x38c] ss:$16 sps:$4 sm:$0xff]  }
  0x93   : > { %2176 = vmatprep.mubr.msk.bf16.mxu0 %vm1137_vm0, %v2440_v13 }
  0x96   : > { %1347 = vmatmul.mubr.bf16.gmra.mrb[40].mxu1 %v2427_v10  ;;  %v2528_v10 = vld [vmem:[%s2650_s18 + $0x368] ss:$16 sps:$4 sm:$0xff]  }
  0x97   : > { %1354 = vmatprep.mubr.bf16.mxu1 %v2430_v11 }
  0x9a   : > { %1660 = vmatmul.mubr.bf16.gmra.mrb[52].mxu0 %v2444_v16  ;;  %v2526_v16 = vld [vmem:[%s2650_s18 + $0x364] ss:$16 sps:$4 sm:$0xff]  }
  0x9b   : > { %2177 = vmatprep.mubr.msk.bf16.mxu0 %vm1137_vm0, %v2446_v17 }
  0x9e   : > { %1355 = vmatmul.mubr.bf16.gmra.mrb[44].mxu1 %v2433_v14  ;;  %v2523_v14 = vld [vmem:[%s2650_s18 + $0x340] ss:$16 sps:$4 sm:$0xff]  }
  0x9f   : > { %1362 = vmatprep.mubr.bf16.mxu1 %v2436_v15 }
  0xa2   : > { %1668 = vmatmul.mubr.bf16.gmra.mrb[56].mxu0 %v2450_v20  ;;  %v2536_v20 = vld [vmem:[%s2650_s18 + $0x3ac] ss:$16 sps:$4 sm:$0xff]  }
  0xa3   : > { %2178 = vmatprep.mubr.msk.bf16.mxu0 %vm1137_vm0, %v2452_v21 }
  0xa6   : > { %1363 = vmatmul.mubr.bf16.gmra.mrb[48].mxu1 %v2439_v18  ;;  %v2534_v18 = vld [vmem:[%s2650_s18 + $0x388] ss:$16 sps:$4 sm:$0xff]  }
  0xa7   : > { %1370 = vmatprep.mubr.bf16.mxu1 %v2442_v19 }
  0xaa   : > { %1676 = vmatmul.mubr.bf16.gmra.mrb[60].mxu0 %v2456_v24 }
  0xab   : > { %2179 = vmatprep.mubr.msk.bf16.mxu0 %vm1137_vm0, %v2458_v25 }
  0xae   : > { %1371 = vmatmul.mubr.bf16.gmra.mrb[52].mxu1 %v2445_v22  ;;  %v2854_v22 = vld [vmem:[%s3075_s2] ss:$0 sm:$0xff] }
  0xaf   : > { %1378 = vmatprep.mubr.bf16.mxu1 %v2448_v23 }
  0xb2   : > { %1684 = vmatmul.mubr.bf16.gmra.mrb[64].mxu0 %v2462_v28 }
  0xb3   : > { %2180 = vmatprep.mubr.msk.bf16.mxu0 %vm1137_vm0, %v2464_v29  ;;  %v2532_v29 = vld [vmem:[%s2650_s18 + $0x384] ss:$16 sps:$4 sm:$0xff]  }
  0xb6   : > { %1379 = vmatmul.mubr.bf16.gmra.mrb[56].mxu1 %v2451_v26  ;;  %v2529_v26 = vld [vmem:[%s2650_s18 + $0x360] ss:$16 sps:$4 sm:$0xff]  }
  0xb7   : > { %1386 = vmatprep.mubr.bf16.mxu1 %v2454_v27 }
  0xba   : > { %1692 = vmatmul.mubr.bf16.gmra.mrb[68].mxu0 %v2468_v32 }
  0xbb   : > { %2181 = vmatprep.mubr.msk.bf16.mxu0 %vm1137_vm0, %v2470_v33 }
  0xbe   : > { %1387 = vmatmul.mubr.bf16.gmra.mrb[60].mxu1 %v2457_v30 }
  0xbf   : > { %1394 = vmatprep.mubr.bf16.mxu1 %v2460_v31  ;;  %v2540_v31 = vld [vmem:[%s2650_s18 + $0x3a8] ss:$16 sps:$4 sm:$0xff]  }
  0xc2   : > { %1700 = vmatmul.mubr.bf16.gmra.mrb[72].mxu0 %v2474_v36  ;;  %v2542_v36 = vld [vmem:[%s2650_s18 + $0x3cc] ss:$16 sps:$4 sm:$0xff]  }
  0xc3   : > { %2182 = vmatprep.mubr.msk.bf16.mxu0 %vm1137_vm0, %v2476_v37 }
  0xc6   : > { %1395 = vmatmul.mubr.bf16.gmra.mrb[64].mxu1 %v2463_v34 }
  0xc7   : > { %1402 = vmatprep.mubr.bf16.mxu1 %v2466_v35 }
  0xca   : > { %1708 = vmatmul.mubr.bf16.gmra.mrb[76].mxu0 %v2480_v40 }
  0xcb   : > { %2183 = vmatprep.mubr.msk.bf16.mxu0 %vm1137_vm0, %v2482_v41 }
  0xce   : > { %1403 = vmatmul.mubr.bf16.gmra.mrb[68].mxu1 %v2469_v38 }
  0xcf   : > { %1410 = vmatprep.mubr.bf16.mxu1 %v2472_v39 }
  0xd2   : > { %1716 = vmatmul.mubr.bf16.gmra.mrb[80].mxu0 %v2486_v44  ;;  %v2535_v44 = vld [vmem:[%s2650_s18 + $0x380] ss:$16 sps:$4 sm:$0xff]  }
  0xd3   : > { %2184 = vmatprep.mubr.msk.bf16.mxu0 %vm1137_vm0, %v2488_v45 }
  0xd6   : > { %1411 = vmatmul.mubr.bf16.gmra.mrb[72].mxu1 %v2475_v42 }
  0xd7   : > { %1418 = vmatprep.mubr.bf16.mxu1 %v2478_v43 }
  0xda   : > { %1724 = vmatmul.mubr.bf16.gmra.mrb[84].mxu0 %v2492_v48 }
  0xdb   : > { %2185 = vmatprep.mubr.msk.bf16.mxu0 %vm1137_vm0, %v2494_v49  ;;  %v2546_v49 = vld [vmem:[%s2650_s18 + $0x3c8] ss:$16 sps:$4 sm:$0xff]  }
  0xde   : > { %1419 = vmatmul.mubr.bf16.gmra.mrb[76].mxu1 %v2481_v46 }
  0xdf   : > { %1426 = vmatprep.mubr.bf16.mxu1 %v2484_v47  ;;  %v2538_v47 = vld [vmem:[%s2650_s18 + $0x3a4] ss:$16 sps:$4 sm:$0xff]  }
  0xe2   : > { %1732 = vmatmul.mubr.bf16.gmra.mrb[88].mxu0 %v2498_v52 }
  0xe3   : > { %2186 = vmatprep.mubr.msk.bf16.mxu0 %vm1137_vm0, %v2500_v53 }
  0xe6   : > { %1427 = vmatmul.mubr.bf16.gmra.mrb[80].mxu1 %v2487_v50 }
  0xe7   : > { %1434 = vmatprep.mubr.bf16.mxu1 %v2490_v51 }
  0xea   : > { %1740 = vmatmul.mubr.bf16.gmra.mrb[92].mxu0 %v2504_v56 }
  0xeb   : > { %2187 = vmatprep.mubr.msk.bf16.mxu0 %vm1137_vm0, %v2506_v57 }
  0xee   : > { %1435 = vmatmul.mubr.bf16.gmra.mrb[84].mxu1 %v2493_v54  ;;  %v2548_v54 = vld [vmem:[%s2650_s18 + $0x3ec] ss:$16 sps:$4 sm:$0xff]  }
  0xef   : > { %1442 = vmatprep.mubr.bf16.mxu1 %v2496_v55 }
  0xf2   : > { %1748 = vmatmul.mubr.bf16.gmra.mrb[96].mxu0 %v2510_v60 }
  0xf3   : > { %2188 = vmatprep.mubr.msk.bf16.mxu0 %vm1137_vm0, %v2512_v61 }
  0xf6   : > { %1443 = vmatmul.mubr.bf16.gmra.mrb[88].mxu1 %v2499_v58 }
  0xf7   : > { %1450 = vmatprep.mubr.bf16.mxu1 %v2502_v59 }
  0xfa   : > { %1756 = vmatmul.mubr.bf16.gmra.mrb[100].mxu0 %v2516_v0 }
  0xfb   : > { %2189 = vmatprep.mubr.msk.bf16.mxu0 %vm1137_vm0, %v2518_v1  ;;  %v2544_v1 = vld [vmem:[%s2650_s18 + $0x3c4] ss:$16 sps:$4 sm:$0xff]  }
  0xfe   : > { %1451 = vmatmul.mubr.bf16.gmra.mrb[92].mxu1 %v2505_v62  ;;  %v2541_v62 = vld [vmem:[%s2650_s18 + $0x3a0] ss:$16 sps:$4 sm:$0xff]  }
  0xff   : > { %1458 = vmatprep.mubr.bf16.mxu1 %v2508_v63 }
 0x102   : > { %1764 = vmatmul.mubr.bf16.gmra.mrb[104].mxu0 %v2522_v4 }
 0x103   : > { %2190 = vmatprep.mubr.msk.bf16.mxu0 %vm1137_vm0, %v2524_v5 }
 0x105   : > { %v1557_v7 = vpop.f32.mrb[0].mxu0 }
 0x106   : > { %1459 = vmatmul.mubr.bf16.gmra.mrb[96].mxu1 %v2511_v2  ;;  %v1559_v9 = vpop.f32.mrb[1].mxu0 }
 0x107   : > { %1466 = vmatprep.mubr.bf16.mxu1 %v2514_v3  ;;  %v1560_v11 = vpop.f32.mrb[2].mxu0  ;;  %v2552_v3 = vld [vmem:[%s2650_s18 + $0x3e8] ss:$16 sps:$4 sm:$0xff]  }
 0x108   : > { %v1562_v13 = vpop.f32.mrb[3].mxu0 }
 0x10a   : > { %1772 = vmatmul.mubr.bf16.gmra.mrb[108].mxu0 %v2528_v10 }
 0x10b   : > { %2191 = vmatprep.mubr.msk.bf16.mxu0 %vm1137_vm0, %v2530_v12 }
 0x10d   : > { %v1565_v15 = vpop.f32.mrb[4].mxu0 }
 0x10e   : > { %1467 = vmatmul.mubr.bf16.gmra.mrb[100].mxu1 %v2517_v6  ;;  %v1567_v17 = vpop.f32.mrb[5].mxu0 }
 0x10f   : > { %1474 = vmatprep.mubr.bf16.mxu1 %v2520_v8  ;;  %v1568_v19 = vpop.f32.mrb[6].mxu0 }
 0x110   : > { %v1570_v21 = vpop.f32.mrb[7].mxu0 }
 0x112   : > { %1780 = vmatmul.mubr.bf16.gmra.mrb[112].mxu0 %v2534_v18  ;;  %v2550_v18 = vld [vmem:[%s2650_s18 + $0x3e4] ss:$16 sps:$4 sm:$0xff]  }
 0x113   : > { %2192 = vmatprep.mubr.msk.bf16.mxu0 %vm1137_vm0, %v2536_v20 }
 0x115   : > { %v1573_v27 = vpop.f32.mrb[8].mxu0 }
 0x116   : > { %1475 = vmatmul.mubr.bf16.gmra.mrb[104].mxu1 %v2523_v14  ;;  %v1575_v30 = vpop.f32.mrb[9].mxu0 }
 0x117   : > { %1482 = vmatprep.mubr.bf16.mxu1 %v2526_v16  ;;  %v1576_v35 = vpop.f32.mrb[10].mxu0 }
 0x118   : > { %v1578_v37 = vpop.f32.mrb[11].mxu0 }
 0x119   : > { %v1268_v23 = vpop.f32.mrb[0].mxu1 }
 0x11a   : > { %v1269_v24 = vadd.f32 %v2854_v22, %v1268_v23  ;;  %v1270_v25 = vpop.f32.mrb[1].mxu1  ;;  %1788 = vmatmul.mubr.bf16.gmra.mrb[116].mxu0 %v2540_v31 }
 0x11b   : > { %v1271_v28 = vpop.f32.mrb[2].mxu1  ;;  %2193 = vmatprep.mubr.msk.bf16.mxu0 %vm1137_vm0, %v2542_v36 }
 0x11c   : > { %v1558_v32 = vadd.f32 %v1557_v7, %v1269_v24  ;;  %v1272_v33 = vadd.f32 %v2854_v22, %v1271_v28  ;;  %v1273_v34 = vpop.f32.mrb[3].mxu1 }
 0x11d   : > { %v1581_v45 = vpop.f32.mrb[12].mxu0 }
 0x11e   : > { %v1812_v38 = vmax.f32 %v1558_v32, 0.0  ;;  %v1561_v39 = vadd.f32 %v1560_v11, %v1272_v33  ;;  %1483 = vmatmul.mubr.bf16.gmra.mrb[108].mxu1 %v2529_v26  ;;  %v1583_v48 = vpop.f32.mrb[13].mxu0  ;;  %v2553_v32 = vld [vmem:[%s2650_s18 + $0x3e0] ss:$16 sps:$4 sm:$0xff]  }
 0x11f   : > { %1490 = vmatprep.mubr.bf16.mxu1 %v2532_v29  ;;  %v1584_v53 = vpop.f32.mrb[14].mxu0 }
 0x120   : > { %1877 = vst.msk [vmem:[%s2867_s28] sm:$0xff] %vm1876_vm1, %v1812_v38  ;;  %v1813_v40 = vmax.f32 %v1561_v39, 0.0  ;;  %v1586_v55 = vpop.f32.mrb[15].mxu0 }
 0x121   : > { %v1276_v41 = vpop.f32.mrb[4].mxu1 }
 0x122   : > { %1878 = vst.msk [vmem:[%s2867_s28 + $0x8] sm:$0xff] %vm1876_vm1, %v1813_v40  ;;  %v1277_v42 = vadd.f32 %v2854_v22, %v1276_v41  ;;  %v1278_v43 = vpop.f32.mrb[5].mxu1  ;;  %1796 = vmatmul.mubr.bf16.gmra.mrb[120].mxu0 %v2546_v49 }
 0x123   : > { %v1279_v46 = vpop.f32.mrb[6].mxu1  ;;  %2194 = vmatprep.mubr.msk.bf16.mxu0 %vm1137_vm0, %v2548_v54 }
 0x124   : > { %v1566_v50 = vadd.f32 %v1565_v15, %v1277_v42  ;;  %v1280_v51 = vadd.f32 %v2854_v22, %v1279_v46  ;;  %v1281_v52 = vpop.f32.mrb[7].mxu1  ;;  %v2547_v15 = vld [vmem:[%s2650_s18 + $0x3c0] ss:$16 sps:$4 sm:$0xff]  }
 0x125   : > { %v1589_v63 = vpop.f32.mrb[16].mxu0 }
 0x126   : > { %v1814_v56 = vmax.f32 %v1566_v50, 0.0  ;;  %v1569_v57 = vadd.f32 %v1568_v19, %v1280_v51  ;;  %1491 = vmatmul.mubr.bf16.gmra.mrb[112].mxu1 %v2535_v44  ;;  %v1591_v2 = vpop.f32.mrb[17].mxu0 }
 0x127   : > { %1498 = vmatprep.mubr.bf16.mxu1 %v2538_v47  ;;  %v1592_v7 = vpop.f32.mrb[18].mxu0 }
 0x128   : > { %1879 = vst.msk [vmem:[%s2867_s28 + $0x10] sm:$0xff] %vm1876_vm1, %v1814_v56  ;;  %v1815_v58 = vmax.f32 %v1569_v57, 0.0  ;;  %v1594_v8 = vpop.f32.mrb[19].mxu0 }
 0x129   : > { %v1284_v59 = vpop.f32.mrb[8].mxu1 }
 0x12a   : > { %1880 = vst.msk [vmem:[%s2867_s28 + $0x18] sm:$0xff] %vm1876_vm1, %v1815_v58  ;;  %v1285_v60 = vadd.f32 %v2854_v22, %v1284_v59  ;;  %v1286_v61 = vpop.f32.mrb[9].mxu1  ;;  %1804 = vmatmul.mubr.bf16.gmra.mrb[124].mxu0 %v2552_v3 }
 0x12b   : > { %v1287_v0 = vpop.f32.mrb[10].mxu1 }
 0x12c   : > { %v1574_v4 = vadd.f32 %v1573_v27, %v1285_v60  ;;  %v1288_v5 = vadd.f32 %v2854_v22, %v1287_v0  ;;  %v1289_v6 = vpop.f32.mrb[11].mxu1 }
 0x12d   : > { %v1597_v16 = vpop.f32.mrb[20].mxu0 }
 0x12e   : > { %v1816_v9 = vmax.f32 %v1574_v4, 0.0  ;;  %v1577_v10 = vadd.f32 %v1576_v35, %v1288_v5  ;;  %1499 = vmatmul.mubr.bf16.gmra.mrb[116].mxu1 %v2541_v62  ;;  %v1599_v19 = vpop.f32.mrb[21].mxu0 }
 0x12f   : > { %1506 = vmatprep.mubr.bf16.mxu1 %v2544_v1  ;;  %v1600_v24 = vpop.f32.mrb[22].mxu0 }
 0x130   : > { %1881 = vst.msk [vmem:[%s2867_s28 + $0x20] sm:$0xff] %vm1876_vm1, %v1816_v9  ;;  %v1817_v11 = vmax.f32 %v1577_v10, 0.0  ;;  %v1602_v25 = vpop.f32.mrb[23].mxu0 }
 0x131   : > { %v1292_v12 = vpop.f32.mrb[12].mxu1 }
 0x132   : > { %1882 = vst.msk [vmem:[%s2867_s28 + $0x28] sm:$0xff] %vm1876_vm1, %v1817_v11  ;;  %v1293_v13 = vadd.f32 %v2854_v22, %v1292_v12  ;;  %v1294_v14 = vpop.f32.mrb[13].mxu1 }
 0x133   : > { %v1295_v17 = vpop.f32.mrb[14].mxu1 }
 0x134   : > { %v1582_v20 = vadd.f32 %v1581_v45, %v1293_v13  ;;  %v1296_v21 = vadd.f32 %v2854_v22, %v1295_v17  ;;  %v1297_v23 = vpop.f32.mrb[15].mxu1 }
 0x135   : > { %v1605_v33 = vpop.f32.mrb[24].mxu0 }
 0x136   : > { %v1818_v26 = vmax.f32 %v1582_v20, 0.0  ;;  %v1585_v27 = vadd.f32 %v1584_v53, %v1296_v21  ;;  %1507 = vmatmul.mubr.bf16.gmra.mrb[120].mxu1 %v2547_v15  ;;  %v1607_v35 = vpop.f32.mrb[25].mxu0 }
 0x137   : > { %1514 = vmatprep.mubr.bf16.mxu1 %v2550_v18  ;;  %v1608_v39 = vpop.f32.mrb[26].mxu0 }
 0x138   : > { %1883 = vst.msk [vmem:[%s2867_s28 + $0x30] sm:$0xff] %vm1876_vm1, %v1818_v26  ;;  %v1819_v28 = vmax.f32 %v1585_v27, 0.0  ;;  %v1610_v40 = vpop.f32.mrb[27].mxu0 }
 0x139   : > { %v1300_v29 = vpop.f32.mrb[16].mxu1 }
 0x13a   : > { %1884 = vst.msk [vmem:[%s2867_s28 + $0x38] sm:$0xff] %vm1876_vm1, %v1819_v28  ;;  %v1301_v30 = vadd.f32 %v2854_v22, %v1300_v29  ;;  %v1302_v31 = vpop.f32.mrb[17].mxu1 }
 0x13b   : > { %v1303_v34 = vpop.f32.mrb[18].mxu1 }
 0x13c   : > { %v1590_v36 = vadd.f32 %v1589_v63, %v1301_v30  ;;  %v1304_v37 = vadd.f32 %v2854_v22, %v1303_v34  ;;  %v1305_v38 = vpop.f32.mrb[19].mxu1 }
 0x13d   : > { %v1613_v47 = vpop.f32.mrb[28].mxu0 }
 0x13e   : > { %v1820_v41 = vmax.f32 %v1590_v36, 0.0  ;;  %v1593_v42 = vadd.f32 %v1592_v7, %v1304_v37  ;;  %1515 = vmatmul.mubr.bf16.gmra.mrb[124].mxu1 %v2553_v32  ;;  %v1615_v49 = vpop.f32.mrb[29].mxu0 }
 0x13f   : > { %v1616_v53 = vpop.f32.mrb[30].mxu0 }
 0x140   : > { %1885 = vst.msk [vmem:[%s2867_s28 + $0x40] sm:$0xff] %vm1876_vm1, %v1820_v41  ;;  %v1821_v43 = vmax.f32 %v1593_v42, 0.0  ;;  %v1618_v54 = vpop.f32.mrb[31].mxu0 }
 0x141   : > { %v1308_v44 = vpop.f32.mrb[20].mxu1 }
 0x142   : > { %1886 = vst.msk [vmem:[%s2867_s28 + $0x48] sm:$0xff] %vm1876_vm1, %v1821_v43  ;;  %v1309_v45 = vadd.f32 %v2854_v22, %v1308_v44  ;;  %v1310_v46 = vpop.f32.mrb[21].mxu1 }
 0x143   : > { %v1311_v48 = vpop.f32.mrb[22].mxu1 }
 0x144   : > { %v1598_v50 = vadd.f32 %v1597_v16, %v1309_v45  ;;  %v1312_v51 = vadd.f32 %v2854_v22, %v1311_v48  ;;  %v1313_v52 = vpop.f32.mrb[23].mxu1 }
 0x145   : > { %v1621_v61 = vpop.f32.mrb[32].mxu0 }
 0x146   : > { %v1822_v55 = vmax.f32 %v1598_v50, 0.0  ;;  %v1601_v56 = vadd.f32 %v1600_v24, %v1312_v51  ;;  %v1623_v63 = vpop.f32.mrb[33].mxu0 }
 0x147   : > { %v1624_v3 = vpop.f32.mrb[34].mxu0 }
 0x148   : > { %1887 = vst.msk [vmem:[%s2867_s28 + $0x50] sm:$0xff] %vm1876_vm1, %v1822_v55  ;;  %v1823_v57 = vmax.f32 %v1601_v56, 0.0  ;;  %v1626_v4 = vpop.f32.mrb[35].mxu0 }
 0x149   : > { %v1316_v58 = vpop.f32.mrb[24].mxu1 }
 0x14a   : > { %1888 = vst.msk [vmem:[%s2867_s28 + $0x58] sm:$0xff] %vm1876_vm1, %v1823_v57  ;;  %v1317_v59 = vadd.f32 %v2854_v22, %v1316_v58  ;;  %v1318_v60 = vpop.f32.mrb[25].mxu1 }
 0x14b   : > { %v1319_v62 = vpop.f32.mrb[26].mxu1 }
 0x14c   : > { %v1606_v0 = vadd.f32 %v1605_v33, %v1317_v59  ;;  %v1320_v1 = vadd.f32 %v2854_v22, %v1319_v62  ;;  %v1321_v2 = vpop.f32.mrb[27].mxu1 }
 0x14d   : > { %v1629_v11 = vpop.f32.mrb[36].mxu0 }
 0x14e   : > { %v1824_v5 = vmax.f32 %v1606_v0, 0.0  ;;  %v1609_v6 = vadd.f32 %v1608_v39, %v1320_v1  ;;  %v1631_v13 = vpop.f32.mrb[37].mxu0 }
 0x14f   : > { %v1632_v17 = vpop.f32.mrb[38].mxu0 }
 0x150   : > { %1889 = vst.msk [vmem:[%s2867_s28 + $0x60] sm:$0xff] %vm1876_vm1, %v1824_v5  ;;  %v1825_v7 = vmax.f32 %v1609_v6, 0.0  ;;  %v1634_v18 = vpop.f32.mrb[39].mxu0 }
 0x151   : > { %v1324_v8 = vpop.f32.mrb[28].mxu1 }
 0x152   : > { %1890 = vst.msk [vmem:[%s2867_s28 + $0x68] sm:$0xff] %vm1876_vm1, %v1825_v7  ;;  %v1325_v9 = vadd.f32 %v2854_v22, %v1324_v8  ;;  %v1326_v10 = vpop.f32.mrb[29].mxu1 }
 0x153   : > { %v1327_v12 = vpop.f32.mrb[30].mxu1 }
 0x154   : > { %v1614_v14 = vadd.f32 %v1613_v47, %v1325_v9  ;;  %v1328_v15 = vadd.f32 %v2854_v22, %v1327_v12  ;;  %v1329_v16 = vpop.f32.mrb[31].mxu1 }
 0x155   : > { %v1637_v26 = vpop.f32.mrb[40].mxu0 }
 0x156   : > { %v1826_v19 = vmax.f32 %v1614_v14, 0.0  ;;  %v1617_v20 = vadd.f32 %v1616_v53, %v1328_v15  ;;  %v1639_v28 = vpop.f32.mrb[41].mxu0 }
 0x157   : > { %v1640_v32 = vpop.f32.mrb[42].mxu0 }
 0x158   : > { %1891 = vst.msk [vmem:[%s2867_s28 + $0x70] sm:$0xff] %vm1876_vm1, %v1826_v19  ;;  %v1827_v21 = vmax.f32 %v1617_v20, 0.0  ;;  %v1642_v33 = vpop.f32.mrb[43].mxu0 }
 0x159   : > { %v1332_v23 = vpop.f32.mrb[32].mxu1 }
 0x15a   : > { %1892 = vst.msk [vmem:[%s2867_s28 + $0x78] sm:$0xff] %vm1876_vm1, %v1827_v21  ;;  %v1333_v24 = vadd.f32 %v2854_v22, %v1332_v23  ;;  %v1334_v25 = vpop.f32.mrb[33].mxu1 }
 0x15b   : > { %v1335_v27 = vpop.f32.mrb[34].mxu1 }
 0x15c   : > { %v1622_v29 = vadd.f32 %v1621_v61, %v1333_v24  ;;  %v1336_v30 = vadd.f32 %v2854_v22, %v1335_v27  ;;  %v1337_v31 = vpop.f32.mrb[35].mxu1 }
 0x15d   : > { %v1645_v40 = vpop.f32.mrb[44].mxu0 }
 0x15e   : > { %v1828_v34 = vmax.f32 %v1622_v29, 0.0  ;;  %v1625_v35 = vadd.f32 %v1624_v3, %v1336_v30  ;;  %v1647_v42 = vpop.f32.mrb[45].mxu0 }
 0x15f   : > { %v1648_v46 = vpop.f32.mrb[46].mxu0 }
 0x160   : > { %1893 = vst.msk [vmem:[%s2867_s28 + $0x80] sm:$0xff] %vm1876_vm1, %v1828_v34  ;;  %v1829_v36 = vmax.f32 %v1625_v35, 0.0  ;;  %v1650_v47 = vpop.f32.mrb[47].mxu0 }
 0x161   : > { %v1340_v37 = vpop.f32.mrb[36].mxu1 }
 0x162   : > { %1894 = vst.msk [vmem:[%s2867_s28 + $0x88] sm:$0xff] %vm1876_vm1, %v1829_v36  ;;  %v1341_v38 = vadd.f32 %v2854_v22, %v1340_v37  ;;  %v1342_v39 = vpop.f32.mrb[37].mxu1 }
 0x163   : > { %v1343_v41 = vpop.f32.mrb[38].mxu1 }
 0x164   : > { %v1630_v43 = vadd.f32 %v1629_v11, %v1341_v38  ;;  %v1344_v44 = vadd.f32 %v2854_v22, %v1343_v41  ;;  %v1345_v45 = vpop.f32.mrb[39].mxu1 }
 0x165   : > { %v1653_v54 = vpop.f32.mrb[48].mxu0 }
 0x166   : > { %v1830_v48 = vmax.f32 %v1630_v43, 0.0  ;;  %v1633_v49 = vadd.f32 %v1632_v17, %v1344_v44  ;;  %v1655_v56 = vpop.f32.mrb[49].mxu0 }
 0x167   : > { %v1656_v60 = vpop.f32.mrb[50].mxu0 }
 0x168   : > { %1895 = vst.msk [vmem:[%s2867_s28 + $0x90] sm:$0xff] %vm1876_vm1, %v1830_v48  ;;  %v1831_v50 = vmax.f32 %v1633_v49, 0.0  ;;  %v1658_v61 = vpop.f32.mrb[51].mxu0 }
 0x169   : > { %v1348_v51 = vpop.f32.mrb[40].mxu1 }
 0x16a   : > { %1896 = vst.msk [vmem:[%s2867_s28 + $0x98] sm:$0xff] %vm1876_vm1, %v1831_v50  ;;  %v1349_v52 = vadd.f32 %v2854_v22, %v1348_v51  ;;  %v1350_v53 = vpop.f32.mrb[41].mxu1 }
 0x16b   : > { %v1351_v55 = vpop.f32.mrb[42].mxu1 }
 0x16c   : > { %v1638_v57 = vadd.f32 %v1637_v26, %v1349_v52  ;;  %v1352_v58 = vadd.f32 %v2854_v22, %v1351_v55  ;;  %v1353_v59 = vpop.f32.mrb[43].mxu1 }
 0x16d   : > { %v1661_v4 = vpop.f32.mrb[52].mxu0 }
 0x16e   : > { %v1832_v62 = vmax.f32 %v1638_v57, 0.0  ;;  %v1641_v63 = vadd.f32 %v1640_v32, %v1352_v58  ;;  %v1663_v6 = vpop.f32.mrb[53].mxu0 }
 0x16f   : > { %v1664_v10 = vpop.f32.mrb[54].mxu0 }
 0x170   : > { %1897 = vst.msk [vmem:[%s2867_s28 + $0xa0] sm:$0xff] %vm1876_vm1, %v1832_v62  ;;  %v1833_v0 = vmax.f32 %v1641_v63, 0.0  ;;  %v1666_v11 = vpop.f32.mrb[55].mxu0 }
 0x171   : > { %v1356_v1 = vpop.f32.mrb[44].mxu1 }
 0x172   : > { %1898 = vst.msk [vmem:[%s2867_s28 + $0xa8] sm:$0xff] %vm1876_vm1, %v1833_v0  ;;  %v1357_v2 = vadd.f32 %v2854_v22, %v1356_v1  ;;  %v1358_v3 = vpop.f32.mrb[45].mxu1 }
 0x173   : > { %v1359_v5 = vpop.f32.mrb[46].mxu1 }
 0x174   : > { %v1646_v7 = vadd.f32 %v1645_v40, %v1357_v2  ;;  %v1360_v8 = vadd.f32 %v2854_v22, %v1359_v5  ;;  %v1361_v9 = vpop.f32.mrb[47].mxu1 }
 0x175   : > { %v1669_v18 = vpop.f32.mrb[56].mxu0 }
 0x176   : > { %v1834_v12 = vmax.f32 %v1646_v7, 0.0  ;;  %v1649_v13 = vadd.f32 %v1648_v46, %v1360_v8  ;;  %v1671_v20 = vpop.f32.mrb[57].mxu0 }
 0x177   : > { %v1672_v25 = vpop.f32.mrb[58].mxu0 }
 0x178   : > { %1899 = vst.msk [vmem:[%s2867_s28 + $0xb0] sm:$0xff] %vm1876_vm1, %v1834_v12  ;;  %v1835_v14 = vmax.f32 %v1649_v13, 0.0  ;;  %v1674_v26 = vpop.f32.mrb[59].mxu0 }
 0x179   : > { %v1364_v15 = vpop.f32.mrb[48].mxu1 }
 0x17a   : > { %1900 = vst.msk [vmem:[%s2867_s28 + $0xb8] sm:$0xff] %vm1876_vm1, %v1835_v14  ;;  %v1365_v16 = vadd.f32 %v2854_v22, %v1364_v15  ;;  %v1366_v17 = vpop.f32.mrb[49].mxu1 }
 0x17b   : > { %v1367_v19 = vpop.f32.mrb[50].mxu1 }
 0x17c   : > { %v1654_v21 = vadd.f32 %v1653_v54, %v1365_v16  ;;  %v1368_v23 = vadd.f32 %v2854_v22, %v1367_v19  ;;  %v1369_v24 = vpop.f32.mrb[51].mxu1 }
 0x17d   : > { %v1677_v33 = vpop.f32.mrb[60].mxu0 }
 0x17e   : > { %v1836_v27 = vmax.f32 %v1654_v21, 0.0  ;;  %v1657_v28 = vadd.f32 %v1656_v60, %v1368_v23  ;;  %v1679_v35 = vpop.f32.mrb[61].mxu0 }
 0x17f   : > { %v1680_v39 = vpop.f32.mrb[62].mxu0 }
 0x180   : > { %1901 = vst.msk [vmem:[%s2867_s28 + $0xc0] sm:$0xff] %vm1876_vm1, %v1836_v27  ;;  %v1837_v29 = vmax.f32 %v1657_v28, 0.0  ;;  %v1682_v40 = vpop.f32.mrb[63].mxu0 }
 0x181   : > { %v1372_v30 = vpop.f32.mrb[52].mxu1 }
 0x182   : > { %1902 = vst.msk [vmem:[%s2867_s28 + $0xc8] sm:$0xff] %vm1876_vm1, %v1837_v29  ;;  %v1373_v31 = vadd.f32 %v2854_v22, %v1372_v30  ;;  %v1374_v32 = vpop.f32.mrb[53].mxu1 }
 0x183   : > { %v1375_v34 = vpop.f32.mrb[54].mxu1 }
 0x184   : > { %v1662_v36 = vadd.f32 %v1661_v4, %v1373_v31  ;;  %v1376_v37 = vadd.f32 %v2854_v22, %v1375_v34  ;;  %v1377_v38 = vpop.f32.mrb[55].mxu1 }
 0x185   : > { %v1685_v47 = vpop.f32.mrb[64].mxu0 }
 0x186   : > { %v1838_v41 = vmax.f32 %v1662_v36, 0.0  ;;  %v1665_v42 = vadd.f32 %v1664_v10, %v1376_v37  ;;  %v1687_v49 = vpop.f32.mrb[65].mxu0 }
 0x187   : > { %v1688_v53 = vpop.f32.mrb[66].mxu0 }
 0x188   : > { %1903 = vst.msk [vmem:[%s2867_s28 + $0xd0] sm:$0xff] %vm1876_vm1, %v1838_v41  ;;  %v1839_v43 = vmax.f32 %v1665_v42, 0.0  ;;  %v1690_v54 = vpop.f32.mrb[67].mxu0 }
 0x189   : > { %v1380_v44 = vpop.f32.mrb[56].mxu1 }
 0x18a   : > { %1904 = vst.msk [vmem:[%s2867_s28 + $0xd8] sm:$0xff] %vm1876_vm1, %v1839_v43  ;;  %v1381_v45 = vadd.f32 %v2854_v22, %v1380_v44  ;;  %v1382_v46 = vpop.f32.mrb[57].mxu1 }
 0x18b   : > { %v1383_v48 = vpop.f32.mrb[58].mxu1 }
 0x18c   : > { %v1670_v50 = vadd.f32 %v1669_v18, %v1381_v45  ;;  %v1384_v51 = vadd.f32 %v2854_v22, %v1383_v48  ;;  %v1385_v52 = vpop.f32.mrb[59].mxu1 }
 0x18d   : > { %v1693_v61 = vpop.f32.mrb[68].mxu0 }
 0x18e   : > { %v1840_v55 = vmax.f32 %v1670_v50, 0.0  ;;  %v1673_v56 = vadd.f32 %v1672_v25, %v1384_v51  ;;  %v1695_v63 = vpop.f32.mrb[69].mxu0 }
 0x18f   : > { %v1696_v3 = vpop.f32.mrb[70].mxu0 }
 0x190   : > { %1905 = vst.msk [vmem:[%s2867_s28 + $0xe0] sm:$0xff] %vm1876_vm1, %v1840_v55  ;;  %v1841_v57 = vmax.f32 %v1673_v56, 0.0  ;;  %v1698_v4 = vpop.f32.mrb[71].mxu0 }
 0x191   : > { %v1388_v58 = vpop.f32.mrb[60].mxu1 }
 0x192   : > { %1906 = vst.msk [vmem:[%s2867_s28 + $0xe8] sm:$0xff] %vm1876_vm1, %v1841_v57  ;;  %v1389_v59 = vadd.f32 %v2854_v22, %v1388_v58  ;;  %v1390_v60 = vpop.f32.mrb[61].mxu1 }
 0x193   : > { %v1391_v62 = vpop.f32.mrb[62].mxu1 }
 0x194   : > { %v1678_v0 = vadd.f32 %v1677_v33, %v1389_v59  ;;  %v1392_v1 = vadd.f32 %v2854_v22, %v1391_v62  ;;  %v1393_v2 = vpop.f32.mrb[63].mxu1 }
 0x195   : > { %v1701_v11 = vpop.f32.mrb[72].mxu0 }
 0x196   : > { %v1842_v5 = vmax.f32 %v1678_v0, 0.0  ;;  %v1681_v6 = vadd.f32 %v1680_v39, %v1392_v1  ;;  %v1703_v13 = vpop.f32.mrb[73].mxu0 }
 0x197   : > { %v1704_v17 = vpop.f32.mrb[74].mxu0 }
 0x198   : > { %1907 = vst.msk [vmem:[%s2867_s28 + $0xf0] sm:$0xff] %vm1876_vm1, %v1842_v5  ;;  %v1843_v7 = vmax.f32 %v1681_v6, 0.0  ;;  %v1706_v18 = vpop.f32.mrb[75].mxu0 }
 0x199   : > { %v1396_v8 = vpop.f32.mrb[64].mxu1 }
 0x19a   : > { %1908 = vst.msk [vmem:[%s2867_s28 + $0xf8] sm:$0xff] %vm1876_vm1, %v1843_v7  ;;  %v1397_v9 = vadd.f32 %v2854_v22, %v1396_v8  ;;  %v1398_v10 = vpop.f32.mrb[65].mxu1 }
 0x19b   : > { %v1399_v12 = vpop.f32.mrb[66].mxu1 }
 0x19c   : > { %v1686_v14 = vadd.f32 %v1685_v47, %v1397_v9  ;;  %v1400_v15 = vadd.f32 %v2854_v22, %v1399_v12  ;;  %v1401_v16 = vpop.f32.mrb[67].mxu1 }
 0x19d   : > { %v1709_v26 = vpop.f32.mrb[76].mxu0 }
 0x19e   : > { %v1844_v19 = vmax.f32 %v1686_v14, 0.0  ;;  %v1689_v20 = vadd.f32 %v1688_v53, %v1400_v15  ;;  %v1711_v28 = vpop.f32.mrb[77].mxu0 }
 0x19f   : > { %v1712_v32 = vpop.f32.mrb[78].mxu0 }
 0x1a0   : > { %1909 = vst.msk [vmem:[%s2867_s28 + $0x100] sm:$0xff] %vm1876_vm1, %v1844_v19  ;;  %v1845_v21 = vmax.f32 %v1689_v20, 0.0  ;;  %v1714_v33 = vpop.f32.mrb[79].mxu0 }
 0x1a1   : > { %v1404_v23 = vpop.f32.mrb[68].mxu1 }
 0x1a2   : > { %1910 = vst.msk [vmem:[%s2867_s28 + $0x108] sm:$0xff] %vm1876_vm1, %v1845_v21  ;;  %v1405_v24 = vadd.f32 %v2854_v22, %v1404_v23  ;;  %v1406_v25 = vpop.f32.mrb[69].mxu1 }
 0x1a3   : > { %v1407_v27 = vpop.f32.mrb[70].mxu1 }
 0x1a4   : > { %v1694_v29 = vadd.f32 %v1693_v61, %v1405_v24  ;;  %v1408_v30 = vadd.f32 %v2854_v22, %v1407_v27  ;;  %v1409_v31 = vpop.f32.mrb[71].mxu1 }
 0x1a5   : > { %v1717_v40 = vpop.f32.mrb[80].mxu0 }
 0x1a6   : > { %v1846_v34 = vmax.f32 %v1694_v29, 0.0  ;;  %v1697_v35 = vadd.f32 %v1696_v3, %v1408_v30  ;;  %v1719_v42 = vpop.f32.mrb[81].mxu0 }
 0x1a7   : > { %v1720_v46 = vpop.f32.mrb[82].mxu0 }
 0x1a8   : > { %1911 = vst.msk [vmem:[%s2867_s28 + $0x110] sm:$0xff] %vm1876_vm1, %v1846_v34  ;;  %v1847_v36 = vmax.f32 %v1697_v35, 0.0  ;;  %v1722_v47 = vpop.f32.mrb[83].mxu0 }
 0x1a9   : > { %v1412_v37 = vpop.f32.mrb[72].mxu1 }
 0x1aa   : > { %1912 = vst.msk [vmem:[%s2867_s28 + $0x118] sm:$0xff] %vm1876_vm1, %v1847_v36  ;;  %v1413_v38 = vadd.f32 %v2854_v22, %v1412_v37  ;;  %v1414_v39 = vpop.f32.mrb[73].mxu1 }
 0x1ab   : > { %v1415_v41 = vpop.f32.mrb[74].mxu1 }
 0x1ac   : > { %v1702_v43 = vadd.f32 %v1701_v11, %v1413_v38  ;;  %v1416_v44 = vadd.f32 %v2854_v22, %v1415_v41  ;;  %v1417_v45 = vpop.f32.mrb[75].mxu1 }
 0x1ad   : > { %v1725_v54 = vpop.f32.mrb[84].mxu0 }
 0x1ae   : > { %v1848_v48 = vmax.f32 %v1702_v43, 0.0  ;;  %v1705_v49 = vadd.f32 %v1704_v17, %v1416_v44  ;;  %v1727_v56 = vpop.f32.mrb[85].mxu0 }
 0x1af   : > { %v1728_v60 = vpop.f32.mrb[86].mxu0 }
 0x1b0   : > { %1913 = vst.msk [vmem:[%s2867_s28 + $0x120] sm:$0xff] %vm1876_vm1, %v1848_v48  ;;  %v1849_v50 = vmax.f32 %v1705_v49, 0.0  ;;  %v1730_v61 = vpop.f32.mrb[87].mxu0 }
 0x1b1   : > { %v1420_v51 = vpop.f32.mrb[76].mxu1 }
 0x1b2   : > { %1914 = vst.msk [vmem:[%s2867_s28 + $0x128] sm:$0xff] %vm1876_vm1, %v1849_v50  ;;  %v1421_v52 = vadd.f32 %v2854_v22, %v1420_v51  ;;  %v1422_v53 = vpop.f32.mrb[77].mxu1 }
 0x1b3   : > { %v1423_v55 = vpop.f32.mrb[78].mxu1 }
 0x1b4   : > { %v1710_v57 = vadd.f32 %v1709_v26, %v1421_v52  ;;  %v1424_v58 = vadd.f32 %v2854_v22, %v1423_v55  ;;  %v1425_v59 = vpop.f32.mrb[79].mxu1 }
 0x1b5   : > { %v1733_v4 = vpop.f32.mrb[88].mxu0 }
 0x1b6   : > { %v1850_v62 = vmax.f32 %v1710_v57, 0.0  ;;  %v1713_v63 = vadd.f32 %v1712_v32, %v1424_v58  ;;  %v1735_v6 = vpop.f32.mrb[89].mxu0 }
 0x1b7   : > { %v1736_v10 = vpop.f32.mrb[90].mxu0 }
 0x1b8   : > { %1915 = vst.msk [vmem:[%s2867_s28 + $0x130] sm:$0xff] %vm1876_vm1, %v1850_v62  ;;  %v1851_v0 = vmax.f32 %v1713_v63, 0.0  ;;  %v1738_v11 = vpop.f32.mrb[91].mxu0 }
 0x1b9   : > { %v1428_v1 = vpop.f32.mrb[80].mxu1 }
 0x1ba   : > { %1916 = vst.msk [vmem:[%s2867_s28 + $0x138] sm:$0xff] %vm1876_vm1, %v1851_v0  ;;  %v1429_v2 = vadd.f32 %v2854_v22, %v1428_v1  ;;  %v1430_v3 = vpop.f32.mrb[81].mxu1 }
 0x1bb   : > { %v1431_v5 = vpop.f32.mrb[82].mxu1 }
 0x1bc   : > { %v1718_v7 = vadd.f32 %v1717_v40, %v1429_v2  ;;  %v1432_v8 = vadd.f32 %v2854_v22, %v1431_v5  ;;  %v1433_v9 = vpop.f32.mrb[83].mxu1 }
 0x1bd   : > { %v1741_v18 = vpop.f32.mrb[92].mxu0 }
 0x1be   : > { %v1852_v12 = vmax.f32 %v1718_v7, 0.0  ;;  %v1721_v13 = vadd.f32 %v1720_v46, %v1432_v8  ;;  %v1743_v20 = vpop.f32.mrb[93].mxu0 }
 0x1bf   : > { %v1744_v25 = vpop.f32.mrb[94].mxu0 }
 0x1c0   : > { %1917 = vst.msk [vmem:[%s2867_s28 + $0x140] sm:$0xff] %vm1876_vm1, %v1852_v12  ;;  %v1853_v14 = vmax.f32 %v1721_v13, 0.0  ;;  %v1746_v26 = vpop.f32.mrb[95].mxu0 }
 0x1c1   : > { %v1436_v15 = vpop.f32.mrb[84].mxu1 }
 0x1c2   : > { %1918 = vst.msk [vmem:[%s2867_s28 + $0x148] sm:$0xff] %vm1876_vm1, %v1853_v14  ;;  %v1437_v16 = vadd.f32 %v2854_v22, %v1436_v15  ;;  %v1438_v17 = vpop.f32.mrb[85].mxu1 }
 0x1c3   : > { %v1439_v19 = vpop.f32.mrb[86].mxu1 }
 0x1c4   : > { %v1726_v21 = vadd.f32 %v1725_v54, %v1437_v16  ;;  %v1440_v23 = vadd.f32 %v2854_v22, %v1439_v19  ;;  %v1441_v24 = vpop.f32.mrb[87].mxu1 }
 0x1c5   : > { %v1749_v33 = vpop.f32.mrb[96].mxu0 }
 0x1c6   : > { %v1854_v27 = vmax.f32 %v1726_v21, 0.0  ;;  %v1729_v28 = vadd.f32 %v1728_v60, %v1440_v23  ;;  %v1751_v35 = vpop.f32.mrb[97].mxu0 }
 0x1c7   : > { %v1752_v39 = vpop.f32.mrb[98].mxu0 }
 0x1c8   : > { %1919 = vst.msk [vmem:[%s2867_s28 + $0x150] sm:$0xff] %vm1876_vm1, %v1854_v27  ;;  %v1855_v29 = vmax.f32 %v1729_v28, 0.0  ;;  %v1754_v40 = vpop.f32.mrb[99].mxu0 }
 0x1c9   : > { %v1444_v30 = vpop.f32.mrb[88].mxu1 }
 0x1ca   : > { %1920 = vst.msk [vmem:[%s2867_s28 + $0x158] sm:$0xff] %vm1876_vm1, %v1855_v29  ;;  %v1445_v31 = vadd.f32 %v2854_v22, %v1444_v30  ;;  %v1446_v32 = vpop.f32.mrb[89].mxu1 }
 0x1cb   : > { %v1447_v34 = vpop.f32.mrb[90].mxu1 }
 0x1cc   : > { %v1734_v36 = vadd.f32 %v1733_v4, %v1445_v31  ;;  %v1448_v37 = vadd.f32 %v2854_v22, %v1447_v34  ;;  %v1449_v38 = vpop.f32.mrb[91].mxu1 }
 0x1cd   : > { %v1757_v47 = vpop.f32.mrb[100].mxu0 }
 0x1ce   : > { %v1856_v41 = vmax.f32 %v1734_v36, 0.0  ;;  %v1737_v42 = vadd.f32 %v1736_v10, %v1448_v37  ;;  %v1759_v49 = vpop.f32.mrb[101].mxu0 }
 0x1cf   : > { %v1760_v53 = vpop.f32.mrb[102].mxu0 }
 0x1d0   : > { %1921 = vst.msk [vmem:[%s2867_s28 + $0x160] sm:$0xff] %vm1876_vm1, %v1856_v41  ;;  %v1857_v43 = vmax.f32 %v1737_v42, 0.0  ;;  %v1762_v54 = vpop.f32.mrb[103].mxu0 }
 0x1d1   : > { %v1452_v44 = vpop.f32.mrb[92].mxu1 }
 0x1d2   : > { %1922 = vst.msk [vmem:[%s2867_s28 + $0x168] sm:$0xff] %vm1876_vm1, %v1857_v43  ;;  %v1453_v45 = vadd.f32 %v2854_v22, %v1452_v44  ;;  %v1454_v46 = vpop.f32.mrb[93].mxu1 }
 0x1d3   : > { %v1455_v48 = vpop.f32.mrb[94].mxu1 }
 0x1d4   : > { %v1742_v50 = vadd.f32 %v1741_v18, %v1453_v45  ;;  %v1456_v51 = vadd.f32 %v2854_v22, %v1455_v48  ;;  %v1457_v52 = vpop.f32.mrb[95].mxu1 }
 0x1d5   : > { %v1765_v61 = vpop.f32.mrb[104].mxu0 }
 0x1d6   : > { %v1858_v55 = vmax.f32 %v1742_v50, 0.0  ;;  %v1745_v56 = vadd.f32 %v1744_v25, %v1456_v51  ;;  %v1767_v63 = vpop.f32.mrb[105].mxu0 }
 0x1d7   : > { %v1768_v3 = vpop.f32.mrb[106].mxu0 }
 0x1d8   : > { %1923 = vst.msk [vmem:[%s2867_s28 + $0x170] sm:$0xff] %vm1876_vm1, %v1858_v55  ;;  %v1859_v57 = vmax.f32 %v1745_v56, 0.0  ;;  %v1770_v4 = vpop.f32.mrb[107].mxu0 }
 0x1d9   : > { %v1460_v58 = vpop.f32.mrb[96].mxu1 }
 0x1da   : > { %1924 = vst.msk [vmem:[%s2867_s28 + $0x178] sm:$0xff] %vm1876_vm1, %v1859_v57  ;;  %v1461_v59 = vadd.f32 %v2854_v22, %v1460_v58  ;;  %v1462_v60 = vpop.f32.mrb[97].mxu1 }
 0x1db   : > { %v1463_v62 = vpop.f32.mrb[98].mxu1 }
 0x1dc   : > { %v1750_v0 = vadd.f32 %v1749_v33, %v1461_v59  ;;  %v1464_v1 = vadd.f32 %v2854_v22, %v1463_v62  ;;  %v1465_v2 = vpop.f32.mrb[99].mxu1 }
 0x1dd   : > { %v1773_v11 = vpop.f32.mrb[108].mxu0 }
 0x1de   : > { %v1860_v5 = vmax.f32 %v1750_v0, 0.0  ;;  %v1753_v6 = vadd.f32 %v1752_v39, %v1464_v1  ;;  %v1775_v13 = vpop.f32.mrb[109].mxu0 }
 0x1df   : > { %v1776_v17 = vpop.f32.mrb[110].mxu0 }
 0x1e0   : > { %1925 = vst.msk [vmem:[%s2867_s28 + $0x180] sm:$0xff] %vm1876_vm1, %v1860_v5  ;;  %v1861_v7 = vmax.f32 %v1753_v6, 0.0  ;;  %v1778_v18 = vpop.f32.mrb[111].mxu0 }
 0x1e1   : > { %v1468_v8 = vpop.f32.mrb[100].mxu1 }
 0x1e2   : > { %1926 = vst.msk [vmem:[%s2867_s28 + $0x188] sm:$0xff] %vm1876_vm1, %v1861_v7  ;;  %v1469_v9 = vadd.f32 %v2854_v22, %v1468_v8  ;;  %v1470_v10 = vpop.f32.mrb[101].mxu1 }
 0x1e3   : > { %v1471_v12 = vpop.f32.mrb[102].mxu1 }
 0x1e4   : > { %v1758_v14 = vadd.f32 %v1757_v47, %v1469_v9  ;;  %v1472_v15 = vadd.f32 %v2854_v22, %v1471_v12  ;;  %v1473_v16 = vpop.f32.mrb[103].mxu1 }
 0x1e5   : > { %v1781_v26 = vpop.f32.mrb[112].mxu0  ;;  %v2554_v16 = vld [vmem:[%s3075_s2] ss:$0 sm:$0xff] }
 0x1e6   : > { %v1862_v19 = vmax.f32 %v1758_v14, 0.0  ;;  %v1761_v20 = vadd.f32 %v1760_v53, %v1472_v15  ;;  %v1783_v28 = vpop.f32.mrb[113].mxu0 }
 0x1e7   : > { %v1784_v32 = vpop.f32.mrb[114].mxu0 }
 0x1e8   : > { %1927 = vst.msk [vmem:[%s2867_s28 + $0x190] sm:$0xff] %vm1876_vm1, %v1862_v19  ;;  %v1863_v21 = vmax.f32 %v1761_v20, 0.0  ;;  %v1786_v33 = vpop.f32.mrb[115].mxu0 }
 0x1e9   : > { %v1476_v23 = vpop.f32.mrb[104].mxu1 }
 0x1ea   : > { %1928 = vst.msk [vmem:[%s2867_s28 + $0x198] sm:$0xff] %vm1876_vm1, %v1863_v21  ;;  %v1477_v24 = vadd.f32 %v2854_v22, %v1476_v23  ;;  %v1478_v25 = vpop.f32.mrb[105].mxu1 }
 0x1eb   : > { %v1479_v27 = vpop.f32.mrb[106].mxu1 }
 0x1ec   : > { %v1766_v29 = vadd.f32 %v1765_v61, %v1477_v24  ;;  %v1480_v30 = vadd.f32 %v2854_v22, %v1479_v27  ;;  %v1481_v31 = vpop.f32.mrb[107].mxu1 }
 0x1ed   : > { %v1789_v40 = vpop.f32.mrb[116].mxu0 }
 0x1ee   : > { %v1864_v34 = vmax.f32 %v1766_v29, 0.0  ;;  %v1769_v35 = vadd.f32 %v1768_v3, %v1480_v30  ;;  %v1791_v42 = vpop.f32.mrb[117].mxu0 }
 0x1ef   : > { %v1792_v46 = vpop.f32.mrb[118].mxu0 }
 0x1f0   : > { %1929 = vst.msk [vmem:[%s2867_s28 + $0x1a0] sm:$0xff] %vm1876_vm1, %v1864_v34  ;;  %v1865_v36 = vmax.f32 %v1769_v35, 0.0  ;;  %v1794_v47 = vpop.f32.mrb[119].mxu0 }
 0x1f1   : > { %v1484_v37 = vpop.f32.mrb[108].mxu1 }
 0x1f2   : > { %1930 = vst.msk [vmem:[%s2867_s28 + $0x1a8] sm:$0xff] %vm1876_vm1, %v1865_v36  ;;  %v1485_v38 = vadd.f32 %v2854_v22, %v1484_v37  ;;  %v1486_v39 = vpop.f32.mrb[109].mxu1 }
 0x1f3   : > { %v1487_v41 = vpop.f32.mrb[110].mxu1 }
 0x1f4   : > { %v1774_v43 = vadd.f32 %v1773_v11, %v1485_v38  ;;  %v1488_v44 = vadd.f32 %v2854_v22, %v1487_v41  ;;  %v1489_v45 = vpop.f32.mrb[111].mxu1 }
 0x1f5   : > { %v1797_v54 = vpop.f32.mrb[120].mxu0 }
 0x1f6   : > { %v1866_v48 = vmax.f32 %v1774_v43, 0.0  ;;  %v1777_v49 = vadd.f32 %v1776_v17, %v1488_v44  ;;  %v1799_v56 = vpop.f32.mrb[121].mxu0 }
 0x1f7   : > { %v1800_v60 = vpop.f32.mrb[122].mxu0 }
 0x1f8   : > { %1931 = vst.msk [vmem:[%s2867_s28 + $0x1b0] sm:$0xff] %vm1876_vm1, %v1866_v48  ;;  %v1867_v50 = vmax.f32 %v1777_v49, 0.0  ;;  %v1802_v61 = vpop.f32.mrb[123].mxu0 }
 0x1f9   : > { %v1492_v51 = vpop.f32.mrb[112].mxu1 }
 0x1fa   : > { %1932 = vst.msk [vmem:[%s2867_s28 + $0x1b8] sm:$0xff] %vm1876_vm1, %v1867_v50  ;;  %v1493_v52 = vadd.f32 %v2854_v22, %v1492_v51  ;;  %v1494_v53 = vpop.f32.mrb[113].mxu1 }
 0x1fb   : > { %v1495_v55 = vpop.f32.mrb[114].mxu1 }
 0x1fc   : > { %v1782_v57 = vadd.f32 %v1781_v26, %v1493_v52  ;;  %v1496_v58 = vadd.f32 %v2854_v22, %v1495_v55  ;;  %v1497_v59 = vpop.f32.mrb[115].mxu1 }
 0x1fd   : > { %v1805_v4 = vpop.f32.mrb[124].mxu0 }
 0x1fe   : > { %v1868_v62 = vmax.f32 %v1782_v57, 0.0  ;;  %v1785_v63 = vadd.f32 %v1784_v32, %v1496_v58  ;;  %v1807_v6 = vpop.f32.mrb[125].mxu0 }
 0x1ff   : > { %v1808_v10 = vpop.f32.mrb[126].mxu0 }
 0x200   : > { %1933 = vst.msk [vmem:[%s2867_s28 + $0x1c0] sm:$0xff] %vm1876_vm1, %v1868_v62  ;;  %v1869_v0 = vmax.f32 %v1785_v63, 0.0  ;;  %v1810_v11 = vpop.f32.mrb[127].mxu0 }
 0x201   : > { %v1500_v1 = vpop.f32.mrb[116].mxu1 }
 0x202   : > { %1934 = vst.msk [vmem:[%s2867_s28 + $0x1c8] sm:$0xff] %vm1876_vm1, %v1869_v0  ;;  %v1501_v2 = vadd.f32 %v2854_v22, %v1500_v1  ;;  %v1502_v3 = vpop.f32.mrb[117].mxu1 }
 0x203   : > { %v1503_v5 = vpop.f32.mrb[118].mxu1 }
 0x204   : > { %v1790_v7 = vadd.f32 %v1789_v40, %v1501_v2  ;;  %v1504_v8 = vadd.f32 %v2854_v22, %v1503_v5  ;;  %v1505_v9 = vpop.f32.mrb[119].mxu1 }
 0x206   : > { %v1870_v12 = vmax.f32 %v1790_v7, 0.0  ;;  %v1793_v13 = vadd.f32 %v1792_v46, %v1504_v8 }
 0x208   : > { %1935 = vst.msk [vmem:[%s2867_s28 + $0x1d0] sm:$0xff] %vm1876_vm1, %v1870_v12  ;;  %v1871_v14 = vmax.f32 %v1793_v13, 0.0 }
 0x209   : > { %v1508_v15 = vpop.f32.mrb[120].mxu1 }
 0x20a   : > { %1936 = vst.msk [vmem:[%s2867_s28 + $0x1d8] sm:$0xff] %vm1876_vm1, %v1871_v14  ;;  %v1509_v17 = vadd.f32 %v2554_v16, %v1508_v15  ;;  %v1510_v18 = vpop.f32.mrb[121].mxu1 }
 0x20b   : > { %v1511_v22 = vpop.f32.mrb[122].mxu1 }
 0x20c   : > { %v1798_v19 = vadd.f32 %v1797_v54, %v1509_v17  ;;  %v1512_v20 = vadd.f32 %v2554_v16, %v1511_v22  ;;  %v1513_v21 = vpop.f32.mrb[123].mxu1 }
 0x20e   : > { %v1872_v23 = vmax.f32 %v1798_v19, 0.0  ;;  %v1801_v24 = vadd.f32 %v1800_v60, %v1512_v20 }
 0x210   : > { %1937 = vst.msk [vmem:[%s2867_s28 + $0x1e0] sm:$0xff] %vm1876_vm1, %v1872_v23  ;;  %v1873_v25 = vmax.f32 %v1801_v24, 0.0 }
 0x211   : > { %v1516_v26 = vpop.f32.mrb[124].mxu1 }
 0x212   : > { %1938 = vst.msk [vmem:[%s2867_s28 + $0x1e8] sm:$0xff] %vm1876_vm1, %v1873_v25  ;;  %v1517_v27 = vadd.f32 %v2554_v16, %v1516_v26  ;;  %v1518_v28 = vpop.f32.mrb[125].mxu1 }
 0x213   : > { %v1519_v29 = vpop.f32.mrb[126].mxu1 }
 0x214   : > { %v1806_v30 = vadd.f32 %v1805_v4, %v1517_v27  ;;  %v1520_v31 = vadd.f32 %v2554_v16, %v1519_v29  ;;  %v1521_v32 = vpop.f32.mrb[127].mxu1 }
 0x216   : > { %v1874_v33 = vmax.f32 %v1806_v30, 0.0  ;;  %v1809_v34 = vadd.f32 %v1808_v10, %v1520_v31 }
 0x218   : > { %1939 = vst.msk [vmem:[%s2867_s28 + $0x1f0] sm:$0xff] %vm1876_vm1, %v1874_v33  ;;  %v1875_v35 = vmax.f32 %v1809_v34, 0.0 }
 0x21a   : > { %1940 = vst.msk [vmem:[%s2867_s28 + $0x1f8] sm:$0xff] %vm1876_vm1, %v1875_v35 }
 0x21b PF: > { %s13_s12 = sadd.s32 1, %s2561_s12  }
 0x21c   : > { %p10_p4 = scmp.ge.s32.totalorder %s13_s12, 4  }
 0x21e   :  { %12 = sbr.rel (!%p10_p4) target bundleno = 1 (0x1), region = 62 }

// kernel: deeplab3d_forward.7
= control target key start
LH: loop header
LB: loop body
LE: loop exit
PB: predicated region body
PF: predicated region fallthrough
CT: control target
= control target key end

     0   :  { %s2612_s12 = smov 0   ;;  %s3109_s0 = inlined_call_operand.vmem [shape: bf16[8192,459], index: 0, kind: input, shape index: {}]   ;;  %s3110_s1 = inlined_call_operand.vmem [shape: bf16[459,32], index: 1, kind: input, shape index: {}]   ;;  %s3111_s2 = inlined_call_operand.vmem [shape: f32[1,32], index: 2, kind: input, shape index: {}]   ;;  %s3112_s3 = inlined_call_operand.vmem [shape: f32[8192,32], index: 3, kind: output, shape index: {}]  }
   0x1 LB: > { %s2019_s13 = sadd.s32 4294967295, %s2588_s12   ;;  %p2023_p0 = scmp.ge.s32.totalorder %s2588_s12, 1  ;;  %s2588_s12 = sphi %s2612_s12, %s13_s12  }
   0x2   : > { %p139_p1 = scmp.lt.s32.totalorder %s2588_s12, 17 }
   0x4   : > { %p140_p2 = pnand %p2023_p0, %p139_p1 }
   0x5   : > { %v2360_v0 = vld [vmem:[%s3110_s1] sm:$0xff] (!%p140_p2)   ;;  %v2590_v1 = vmov (!%p140_p2), 0   ;;  %v2361_v2 = vld [vmem:[%s3110_s1 + $0x8] sm:$0xff] (!%p140_p2)   ;;  %v2362_v5 = vld [vmem:[%s3110_s1 + $0x10] sm:$0xff] (!%p140_p2)   ;;  %s2024_s30 = sshll.u32 (!%p140_p2), %s2019_s13, 6  ;;  %vm1152_vm0 = vcmask (!%p140_p2), 613376  }
   0x6   : > { %143 = sbr.rel (%p140_p2) target bundleno = 539 (0x21b), region = 32  ;;  %1256 = vmatprep.subr.bf16.mxu1 (!%p140_p2), %v2590_v1  ;;  %1545 = vmatprep.subr.bf16.mxu0 (!%p140_p2), %v2590_v1  ;;  %v2363_v3 = vld [vmem:[%s3110_s1 + $0x80] sm:$0xff] (!%p140_p2)   ;;  %v2365_v4 = vld [vmem:[%s3110_s1 + $0x88] sm:$0xff] (!%p140_p2)   ;;  %v2367_v6 = vld [vmem:[%s3110_s1 + $0x90] sm:$0xff] (!%p140_p2)   ;;  %p165_p3 = scmp.lt.s32.totalorder (!%p140_p2), %s2024_s30, 1023  ;;  %vm1249_vm1 = vcmask (!%p140_p2), 1044480  }
   0x7   : > { %1257 = vmatpush1.bf16.msra.mxu1 (!%p140_p2), %v2360_v0  ;;  %1546 = vmatpush1.bf16.msra.mxu0 (!%p140_p2), %v2363_v3  ;;  %v2364_v7 = vld [vmem:[%s3110_s1 + $0x18] sm:$0xff] (!%p140_p2)   ;;  %v2366_v9 = vld [vmem:[%s3110_s1 + $0x20] sm:$0xff] (!%p140_p2)   ;;  %v2368_v11 = vld [vmem:[%s3110_s1 + $0x28] sm:$0xff] (!%p140_p2)   ;;  %vm1250_vm2 = vcmask (!%p140_p2), 1045504   ;;  %v2591_v26 = vmov (!%p140_p2), 65535   ;;  %vm1898_vm3 = vcmask (!%p140_p2), 261120  }
   0x8   : > { %1258 = vmatprep.subr.bf16.mxu1 (!%p140_p2), %v2590_v1  ;;  %1547 = vmatprep.subr.bf16.mxu0 (!%p140_p2), %v2590_v1  ;;  %v2369_v8 = vld [vmem:[%s3110_s1 + $0x98] sm:$0xff] (!%p140_p2)   ;;  %v2371_v10 = vld [vmem:[%s3110_s1 + $0xa0] sm:$0xff] (!%p140_p2)   ;;  %v2373_v12 = vld [vmem:[%s3110_s1 + $0xa8] sm:$0xff] (!%p140_p2)   ;;  %v1251_v27 = vsel (!%p140_p2), %vm1249_vm1, 4294967295, %v2591_v26 }
   0x9   : > { %v2370_v13 = vld [vmem:[%s3110_s1 + $0x30] sm:$0xff] (!%p140_p2)   ;;  %v2372_v15 = vld [vmem:[%s3110_s1 + $0x38] sm:$0xff] (!%p140_p2)   ;;  %v2374_v16 = vld [vmem:[%s3110_s1 + $0x40] sm:$0xff] (!%p140_p2)   ;;  %v1252_v31 = vsel (!%p140_p2), %vm1250_vm2, %v1251_v27, 0 }
   0xa   : > { %v2375_v14 = vld [vmem:[%s3110_s1 + $0xb0] sm:$0xff] (!%p140_p2)   ;;  %v2377_v17 = vld [vmem:[%s3110_s1 + $0xb8] sm:$0xff] (!%p140_p2)   ;;  %v2379_v20 = vld [vmem:[%s3110_s1 + $0xc0] sm:$0xff] (!%p140_p2)  }
   0xb   : > { %1259 = vmatpush1.bf16.msra.mxu1 (!%p140_p2), %v2361_v2  ;;  %1548 = vmatpush1.bf16.msra.mxu0 (!%p140_p2), %v2365_v4  ;;  %v2376_v21 = vld [vmem:[%s3110_s1 + $0x48] sm:$0xff] (!%p140_p2)   ;;  %v2378_v23 = vld [vmem:[%s3110_s1 + $0x50] sm:$0xff] (!%p140_p2)   ;;  %v2380_v25 = vld [vmem:[%s3110_s1 + $0x58] sm:$0xff] (!%p140_p2)  }
   0xc   : > { %1260 = vmatprep.subr.bf16.mxu1 (!%p140_p2), %v2590_v1  ;;  %1549 = vmatprep.subr.bf16.mxu0 (!%p140_p2), %v2590_v1  ;;  %v2381_v22 = vld [vmem:[%s3110_s1 + $0xc8] sm:$0xff] (!%p140_p2)   ;;  %v2383_v24 = vld [vmem:[%s3110_s1 + $0xd0] sm:$0xff] (!%p140_p2)   ;;  %v2385_v28 = vld [vmem:[%s3110_s1 + $0xd8] sm:$0xff] (!%p140_p2)  }
   0xd   : > { %s3114_s30 = smov (!%p165_p3, %s2024_s30), 1023  ;;  %v2387_v29 = vld [vmem:[%s3110_s1 + $0xe0] sm:$0x3f]   ;;  %v2384_v33 = vld [vmem:[%s3110_s1 + $0x68] sm:$0xff]   ;;  %v2386_v36 = vld [vmem:[%s3110_s1 + $0x70] sm:$0xff]  }
   0xe   : > { %s2221_s15 = sshll.u32 %s3114_s30, 4  ;;  %v2382_v30 = vld [vmem:[%s3110_s1 + $0x60] sm:$0xff]   ;;  %v1254_v32 = vand.u32 %v2387_v29, %v1252_v31  ;;  %v2388_v37 = vld [vmem:[%s3110_s1 + $0x78] sm:$0xff]   ;;  %s2028_s29 = sshll.u32 %s3114_s30, 3 }
   0xf   : > { %1261 = vmatpush1.bf16.msra.mxu1 %v2362_v5  ;;  %1550 = vmatpush1.bf16.msra.mxu0 %v2367_v6  ;;  %s2686_s22 = scalar_lea.vmem %s3109_s0, %s2221_s15  ;;  %s2900_s30 = scalar_lea.vmem %s3112_s3, %s2028_s29 }
  0x10   : > { %1262 = vmatprep.subr.bf16.mxu1 %v2590_v1  ;;  %1551 = vmatprep.subr.bf16.mxu0 %v2590_v1  ;;  %v2391_v18 = vld [vmem:[%s2686_s22 + $0xc] ss:$16 sps:$4 sm:$0xff]   ;;  %v2394_v19 = vld [vmem:[%s2686_s22 + $0x4] ss:$16 sps:$4 sm:$0xff]   ;;  %v2389_v34 = vld [vmem:[%s2686_s22 + $0x8] ss:$16 sps:$4 sm:$0xff]  }
  0x11   : > { %2187 = vmatprep.mubr.msk.bf16.mxu0 %vm1152_vm0, %v2391_v18  ;;  %1288 = vmatprep.mubr.bf16.mxu1 %v2394_v19  ;;  %v2395_v35 = vld [vmem:[%s2686_s22 + $0x2c] ss:$16 sps:$4 sm:$0xff]   ;;  %v2392_v38 = vld [vmem:[%s2686_s22] ss:$16 sps:$4 sm:$0xff]   ;;  %v2399_v39 = vld [vmem:[%s2686_s22 + $0x28] ss:$16 sps:$4 sm:$0xff]  }
  0x12   : > { %v2401_v40 = vld [vmem:[%s2686_s22 + $0x4c] ss:$16 sps:$4 sm:$0xff]   ;;  %v2397_v41 = vld [vmem:[%s2686_s22 + $0x24] ss:$16 sps:$4 sm:$0xff]   ;;  %v2400_v42 = vld [vmem:[%s2686_s22 + $0x20] ss:$16 sps:$4 sm:$0xff]  }
  0x13   : > { %1263 = vmatpush1.bf16.msra.mxu1 %v2364_v7  ;;  %1552 = vmatpush1.bf16.msra.mxu0 %v2369_v8  ;;  %v2405_v43 = vld [vmem:[%s2686_s22 + $0x48] ss:$16 sps:$4 sm:$0xff]   ;;  %v2407_v44 = vld [vmem:[%s2686_s22 + $0x6c] ss:$16 sps:$4 sm:$0xff]   ;;  %v2403_v45 = vld [vmem:[%s2686_s22 + $0x44] ss:$16 sps:$4 sm:$0xff]  }
  0x14   : > { %1264 = vmatprep.subr.bf16.mxu1 %v2590_v1  ;;  %1553 = vmatprep.subr.bf16.mxu0 %v2590_v1  ;;  %v2406_v46 = vld [vmem:[%s2686_s22 + $0x40] ss:$16 sps:$4 sm:$0xff]   ;;  %v2411_v47 = vld [vmem:[%s2686_s22 + $0x68] ss:$16 sps:$4 sm:$0xff]   ;;  %v2413_v48 = vld [vmem:[%s2686_s22 + $0x8c] ss:$16 sps:$4 sm:$0xff]  }
  0x15   : > { %v2409_v49 = vld [vmem:[%s2686_s22 + $0x64] ss:$16 sps:$4 sm:$0xff]   ;;  %v2417_v50 = vld [vmem:[%s2686_s22 + $0x88] ss:$16 sps:$4 sm:$0xff]   ;;  %v2412_v51 = vld [vmem:[%s2686_s22 + $0x60] ss:$16 sps:$4 sm:$0xff]  }
  0x16   : > { %v2419_v52 = vld [vmem:[%s2686_s22 + $0xac] ss:$16 sps:$4 sm:$0xff]   ;;  %v2415_v53 = vld [vmem:[%s2686_s22 + $0x84] ss:$16 sps:$4 sm:$0xff]   ;;  %v2423_v54 = vld [vmem:[%s2686_s22 + $0xa8] ss:$16 sps:$4 sm:$0xff]  }
  0x17   : > { %1265 = vmatpush1.bf16.msra.mxu1 %v2366_v9  ;;  %1554 = vmatpush1.bf16.msra.mxu0 %v2371_v10  ;;  %v2418_v55 = vld [vmem:[%s2686_s22 + $0x80] ss:$16 sps:$4 sm:$0xff]   ;;  %v2425_v56 = vld [vmem:[%s2686_s22 + $0xcc] ss:$16 sps:$4 sm:$0xff]   ;;  %v2421_v57 = vld [vmem:[%s2686_s22 + $0xa4] ss:$16 sps:$4 sm:$0xff]  }
  0x18   : > { %1266 = vmatprep.subr.bf16.mxu1 %v2590_v1  ;;  %1555 = vmatprep.subr.bf16.mxu0 %v2590_v1  ;;  %v2429_v58 = vld [vmem:[%s2686_s22 + $0xc8] ss:$16 sps:$4 sm:$0xff]   ;;  %v2424_v59 = vld [vmem:[%s2686_s22 + $0xa0] ss:$16 sps:$4 sm:$0xff]   ;;  %v2431_v60 = vld [vmem:[%s2686_s22 + $0xec] ss:$16 sps:$4 sm:$0xff]  }
  0x19   : > { %v2427_v61 = vld [vmem:[%s2686_s22 + $0xc4] ss:$16 sps:$4 sm:$0xff]   ;;  %v2435_v62 = vld [vmem:[%s2686_s22 + $0xe8] ss:$16 sps:$4 sm:$0xff]   ;;  %v2430_v63 = vld [vmem:[%s2686_s22 + $0xc0] ss:$16 sps:$4 sm:$0xff]  }
  0x1a   : > { %v2437_v0 = vld [vmem:[%s2686_s22 + $0x10c] ss:$16 sps:$4 sm:$0xff]   ;;  %v2441_v2 = vld [vmem:[%s2686_s22 + $0x108] ss:$16 sps:$4 sm:$0xff]   ;;  %v2436_v3 = vld [vmem:[%s2686_s22 + $0xe0] ss:$16 sps:$4 sm:$0xff]  }
  0x1b   : > { %1267 = vmatpush1.bf16.msra.mxu1 %v2368_v11  ;;  %1556 = vmatpush1.bf16.msra.mxu0 %v2373_v12  ;;  %v2443_v4 = vld [vmem:[%s2686_s22 + $0x12c] ss:$16 sps:$4 sm:$0xff]   ;;  %v2439_v5 = vld [vmem:[%s2686_s22 + $0x104] ss:$16 sps:$4 sm:$0xff]   ;;  %v2447_v6 = vld [vmem:[%s2686_s22 + $0x128] ss:$16 sps:$4 sm:$0xff]  }
  0x1c   : > { %1268 = vmatprep.subr.bf16.mxu1 %v2590_v1  ;;  %1557 = vmatprep.subr.bf16.mxu0 %v2590_v1  ;;  %v2442_v7 = vld [vmem:[%s2686_s22 + $0x100] ss:$16 sps:$4 sm:$0xff]   ;;  %v2449_v8 = vld [vmem:[%s2686_s22 + $0x14c] ss:$16 sps:$4 sm:$0xff]   ;;  %v2445_v9 = vld [vmem:[%s2686_s22 + $0x124] ss:$16 sps:$4 sm:$0xff]  }
  0x1d   : > { %v2453_v10 = vld [vmem:[%s2686_s22 + $0x148] ss:$16 sps:$4 sm:$0xff]   ;;  %v2448_v11 = vld [vmem:[%s2686_s22 + $0x120] ss:$16 sps:$4 sm:$0xff]   ;;  %v2455_v12 = vld [vmem:[%s2686_s22 + $0x16c] ss:$16 sps:$4 sm:$0xff]  }
  0x1e   : > { %v2465_v18 = vld [vmem:[%s2686_s22 + $0x188] ss:$16 sps:$4 sm:$0xff]   ;;  %v2460_v19 = vld [vmem:[%s2686_s22 + $0x160] ss:$16 sps:$4 sm:$0xff]   ;;  %v2475_v29 = vld [vmem:[%s2686_s22 + $0x1c4] ss:$16 sps:$4 sm:$0xff]  }
  0x1f   : > { %1269 = vmatpush1.bf16.msra.mxu1 %v2370_v13  ;;  %1558 = vmatpush1.bf16.msra.mxu0 %v2375_v14  ;;  %v2451_v13 = vld [vmem:[%s2686_s22 + $0x144] ss:$16 sps:$4 sm:$0xff]   ;;  %v2459_v14 = vld [vmem:[%s2686_s22 + $0x168] ss:$16 sps:$4 sm:$0xff]   ;;  %v2472_v27 = vld [vmem:[%s2686_s22 + $0x1a0] ss:$16 sps:$4 sm:$0xff]  }
  0x20   : > { %1270 = vmatprep.subr.bf16.mxu1 %v2590_v1  ;;  %1559 = vmatprep.subr.bf16.mxu0 %v2590_v1  ;;  %v2477_v26 = vld [vmem:[%s2686_s22 + $0x1c8] ss:$16 sps:$4 sm:$0xff]   ;;  %v2478_v31 = vld [vmem:[%s2686_s22 + $0x1c0] ss:$16 sps:$4 sm:$0xff]  }
  0x23   : > { %1271 = vmatpush1.bf16.msra.mxu1 %v2372_v15  ;;  %1560 = vmatpush1.bf16.msra.mxu0 %v2377_v17  ;;  %v2454_v15 = vld [vmem:[%s2686_s22 + $0x140] ss:$16 sps:$4 sm:$0xff]   ;;  %v2457_v17 = vld [vmem:[%s2686_s22 + $0x164] ss:$16 sps:$4 sm:$0xff]  }
  0x24   : > { %1272 = vmatprep.subr.bf16.mxu1 %v2590_v1  ;;  %1561 = vmatprep.subr.bf16.mxu0 %v2590_v1 }
  0x27   : > { %1273 = vmatpush1.bf16.msra.mxu1 %v2374_v16  ;;  %1562 = vmatpush1.bf16.msra.mxu0 %v2379_v20  ;;  %v2461_v16 = vld [vmem:[%s2686_s22 + $0x18c] ss:$16 sps:$4 sm:$0xff]  }
  0x28   : > { %1274 = vmatprep.subr.bf16.mxu1 %v2590_v1  ;;  %1563 = vmatprep.subr.bf16.mxu0 %v2590_v1  ;;  %v2467_v20 = vld [vmem:[%s2686_s22 + $0x1ac] ss:$16 sps:$4 sm:$0xff]  }
  0x2b   : > { %1275 = vmatpush1.bf16.msra.mxu1 %v2376_v21  ;;  %1564 = vmatpush1.bf16.msra.mxu0 %v2381_v22  ;;  %v2463_v21 = vld [vmem:[%s2686_s22 + $0x184] ss:$16 sps:$4 sm:$0xff]   ;;  %v2471_v22 = vld [vmem:[%s2686_s22 + $0x1a8] ss:$16 sps:$4 sm:$0xff]  }
  0x2c   : > { %1276 = vmatprep.subr.bf16.mxu1 %v2590_v1  ;;  %1565 = vmatprep.subr.bf16.mxu0 %v2590_v1 }
  0x2f   : > { %1277 = vmatpush1.bf16.msra.mxu1 %v2378_v23  ;;  %1566 = vmatpush1.bf16.msra.mxu0 %v2383_v24  ;;  %v2466_v23 = vld [vmem:[%s2686_s22 + $0x180] ss:$16 sps:$4 sm:$0xff]   ;;  %v2473_v24 = vld [vmem:[%s2686_s22 + $0x1cc] ss:$16 sps:$4 sm:$0xff]  }
  0x30   : > { %1278 = vmatprep.subr.bf16.mxu1 %v2590_v1  ;;  %1567 = vmatprep.subr.bf16.mxu0 %v2590_v1 }
  0x33   : > { %1279 = vmatpush1.bf16.msra.mxu1 %v2380_v25  ;;  %1568 = vmatpush1.bf16.msra.mxu0 %v2385_v28  ;;  %v2469_v25 = vld [vmem:[%s2686_s22 + $0x1a4] ss:$16 sps:$4 sm:$0xff]   ;;  %v2479_v28 = vld [vmem:[%s2686_s22 + $0x1ec] ss:$16 sps:$4 sm:$0xff]  }
  0x34   : > { %1280 = vmatprep.subr.bf16.mxu1 %v2590_v1  ;;  %1569 = vmatprep.subr.bf16.mxu0 %v2590_v1 }
  0x37   : > { %1281 = vmatpush1.bf16.msra.mxu1 %v2382_v30  ;;  %1570 = vmatpush1.bf16.msra.mxu0 %v1254_v32  ;;  %v2483_v30 = vld [vmem:[%s2686_s22 + $0x1e8] ss:$16 sps:$4 sm:$0xff]   ;;  %v2485_v32 = vld [vmem:[%s2686_s22 + $0x20c] ss:$16 sps:$4 sm:$0xff]  }
  0x38   : > { %1282 = vmatprep.subr.bf16.mxu1 %v2590_v1 }
  0x3a   : > { %1578 = vmatmul.mubr.bf16.vlgmr.msra.gmra.mrb[0].mxu0 %v2389_v34  ;;  %v2489_v34 = vld [vmem:[%s2686_s22 + $0x208] ss:$16 sps:$4 sm:$0xff]  }
  0x3b   : > { %1283 = vmatpush1.bf16.msra.mxu1 %v2384_v33  ;;  %2188 = vmatprep.mubr.msk.bf16.mxu0 %vm1152_vm0, %v2395_v35  ;;  %v2481_v33 = vld [vmem:[%s2686_s22 + $0x1e4] ss:$16 sps:$4 sm:$0xff]   ;;  %v2484_v35 = vld [vmem:[%s2686_s22 + $0x1e0] ss:$16 sps:$4 sm:$0xff]  }
  0x3c   : > { %1284 = vmatprep.subr.bf16.mxu1 %v2590_v1 }
  0x3f   : > { %1285 = vmatpush1.bf16.msra.mxu1 %v2386_v36  ;;  %v2491_v36 = vld [vmem:[%s2686_s22 + $0x22c] ss:$16 sps:$4 sm:$0xff]  }
  0x40   : > { %1286 = vmatprep.subr.bf16.mxu1 %v2590_v1  ;;  %v2433_v1 = vld [vmem:[%s2686_s22 + $0xe4] ss:$16 sps:$4 sm:$0xff]  }
  0x42   : > { %1586 = vmatmul.mubr.bf16.gmra.mrb[4].mxu0 %v2399_v39  ;;  %v2490_v39 = vld [vmem:[%s2686_s22 + $0x200] ss:$16 sps:$4 sm:$0xff]  }
  0x43   : > { %1287 = vmatpush1.bf16.msra.mxu1 %v2388_v37  ;;  %2189 = vmatprep.mubr.msk.bf16.mxu0 %vm1152_vm0, %v2401_v40  ;;  %v2487_v37 = vld [vmem:[%s2686_s22 + $0x204] ss:$16 sps:$4 sm:$0xff]   ;;  %v2497_v40 = vld [vmem:[%s2686_s22 + $0x24c] ss:$16 sps:$4 sm:$0xff]  }
  0x46   : > { %1289 = vmatmul.mubr.bf16.vlgmr.msra.gmra.mrb[0].mxu1 %v2392_v38  ;;  %v2495_v38 = vld [vmem:[%s2686_s22 + $0x228] ss:$16 sps:$4 sm:$0xff]  }
  0x47   : > { %1296 = vmatprep.mubr.bf16.mxu1 %v2397_v41  ;;  %v2493_v41 = vld [vmem:[%s2686_s22 + $0x224] ss:$16 sps:$4 sm:$0xff]  }
  0x4a   : > { %1594 = vmatmul.mubr.bf16.gmra.mrb[8].mxu0 %v2405_v43  ;;  %v2496_v43 = vld [vmem:[%s2686_s22 + $0x220] ss:$16 sps:$4 sm:$0xff]  }
  0x4b   : > { %2190 = vmatprep.mubr.msk.bf16.mxu0 %vm1152_vm0, %v2407_v44  ;;  %v2503_v44 = vld [vmem:[%s2686_s22 + $0x26c] ss:$16 sps:$4 sm:$0xff]  }
  0x4e   : > { %1297 = vmatmul.mubr.bf16.gmra.mrb[4].mxu1 %v2400_v42  ;;  %v2501_v42 = vld [vmem:[%s2686_s22 + $0x248] ss:$16 sps:$4 sm:$0xff]  }
  0x4f   : > { %1304 = vmatprep.mubr.bf16.mxu1 %v2403_v45  ;;  %v2499_v45 = vld [vmem:[%s2686_s22 + $0x244] ss:$16 sps:$4 sm:$0xff]  }
  0x52   : > { %1602 = vmatmul.mubr.bf16.gmra.mrb[12].mxu0 %v2411_v47  ;;  %v2502_v47 = vld [vmem:[%s2686_s22 + $0x240] ss:$16 sps:$4 sm:$0xff]  }
  0x53   : > { %2191 = vmatprep.mubr.msk.bf16.mxu0 %vm1152_vm0, %v2413_v48  ;;  %v2509_v48 = vld [vmem:[%s2686_s22 + $0x28c] ss:$16 sps:$4 sm:$0xff]  }
  0x56   : > { %1305 = vmatmul.mubr.bf16.gmra.mrb[8].mxu1 %v2406_v46  ;;  %v2507_v46 = vld [vmem:[%s2686_s22 + $0x268] ss:$16 sps:$4 sm:$0xff]  }
  0x57   : > { %1312 = vmatprep.mubr.bf16.mxu1 %v2409_v49  ;;  %v2505_v49 = vld [vmem:[%s2686_s22 + $0x264] ss:$16 sps:$4 sm:$0xff]  }
  0x5a   : > { %1610 = vmatmul.mubr.bf16.gmra.mrb[16].mxu0 %v2417_v50  ;;  %v2513_v50 = vld [vmem:[%s2686_s22 + $0x288] ss:$16 sps:$4 sm:$0xff]  }
  0x5b   : > { %2192 = vmatprep.mubr.msk.bf16.mxu0 %vm1152_vm0, %v2419_v52  ;;  %v2515_v52 = vld [vmem:[%s2686_s22 + $0x2ac] ss:$16 sps:$4 sm:$0xff]  }
  0x5e   : > { %1313 = vmatmul.mubr.bf16.gmra.mrb[12].mxu1 %v2412_v51  ;;  %v2508_v51 = vld [vmem:[%s2686_s22 + $0x260] ss:$16 sps:$4 sm:$0xff]  }
  0x5f   : > { %1320 = vmatprep.mubr.bf16.mxu1 %v2415_v53  ;;  %v2511_v53 = vld [vmem:[%s2686_s22 + $0x284] ss:$16 sps:$4 sm:$0xff]  }
  0x62   : > { %1618 = vmatmul.mubr.bf16.gmra.mrb[20].mxu0 %v2423_v54  ;;  %v2519_v54 = vld [vmem:[%s2686_s22 + $0x2a8] ss:$16 sps:$4 sm:$0xff]  }
  0x63   : > { %2193 = vmatprep.mubr.msk.bf16.mxu0 %vm1152_vm0, %v2425_v56  ;;  %v2521_v56 = vld [vmem:[%s2686_s22 + $0x2cc] ss:$16 sps:$4 sm:$0xff]  }
  0x66   : > { %1321 = vmatmul.mubr.bf16.gmra.mrb[16].mxu1 %v2418_v55  ;;  %v2514_v55 = vld [vmem:[%s2686_s22 + $0x280] ss:$16 sps:$4 sm:$0xff]  }
  0x67   : > { %1328 = vmatprep.mubr.bf16.mxu1 %v2421_v57  ;;  %v2517_v57 = vld [vmem:[%s2686_s22 + $0x2a4] ss:$16 sps:$4 sm:$0xff]  }
  0x6a   : > { %1626 = vmatmul.mubr.bf16.gmra.mrb[24].mxu0 %v2429_v58  ;;  %v2525_v58 = vld [vmem:[%s2686_s22 + $0x2c8] ss:$16 sps:$4 sm:$0xff]  }
  0x6b   : > { %2194 = vmatprep.mubr.msk.bf16.mxu0 %vm1152_vm0, %v2431_v60  ;;  %v2527_v60 = vld [vmem:[%s2686_s22 + $0x2ec] ss:$16 sps:$4 sm:$0xff]  }
  0x6e   : > { %1329 = vmatmul.mubr.bf16.gmra.mrb[20].mxu1 %v2424_v59  ;;  %v2520_v59 = vld [vmem:[%s2686_s22 + $0x2a0] ss:$16 sps:$4 sm:$0xff]  }
  0x6f   : > { %1336 = vmatprep.mubr.bf16.mxu1 %v2427_v61  ;;  %v2523_v61 = vld [vmem:[%s2686_s22 + $0x2c4] ss:$16 sps:$4 sm:$0xff]  }
  0x72   : > { %1634 = vmatmul.mubr.bf16.gmra.mrb[28].mxu0 %v2435_v62  ;;  %v2531_v62 = vld [vmem:[%s2686_s22 + $0x2e8] ss:$16 sps:$4 sm:$0xff]  }
  0x73   : > { %2195 = vmatprep.mubr.msk.bf16.mxu0 %vm1152_vm0, %v2437_v0  ;;  %v2533_v0 = vld [vmem:[%s2686_s22 + $0x30c] ss:$16 sps:$4 sm:$0xff]  }
  0x76   : > { %1337 = vmatmul.mubr.bf16.gmra.mrb[24].mxu1 %v2430_v63  ;;  %v2526_v63 = vld [vmem:[%s2686_s22 + $0x2c0] ss:$16 sps:$4 sm:$0xff]  }
  0x77   : > { %1344 = vmatprep.mubr.bf16.mxu1 %v2433_v1  ;;  %v2529_v1 = vld [vmem:[%s2686_s22 + $0x2e4] ss:$16 sps:$4 sm:$0xff]  }
  0x7a   : > { %1642 = vmatmul.mubr.bf16.gmra.mrb[32].mxu0 %v2441_v2  ;;  %v2537_v2 = vld [vmem:[%s2686_s22 + $0x308] ss:$16 sps:$4 sm:$0xff]  }
  0x7b   : > { %2196 = vmatprep.mubr.msk.bf16.mxu0 %vm1152_vm0, %v2443_v4  ;;  %v2539_v4 = vld [vmem:[%s2686_s22 + $0x32c] ss:$16 sps:$4 sm:$0xff]  }
  0x7e   : > { %1345 = vmatmul.mubr.bf16.gmra.mrb[28].mxu1 %v2436_v3  ;;  %v2532_v3 = vld [vmem:[%s2686_s22 + $0x2e0] ss:$16 sps:$4 sm:$0xff]  }
  0x7f   : > { %1352 = vmatprep.mubr.bf16.mxu1 %v2439_v5  ;;  %v2535_v5 = vld [vmem:[%s2686_s22 + $0x304] ss:$16 sps:$4 sm:$0xff]  }
  0x82   : > { %1650 = vmatmul.mubr.bf16.gmra.mrb[36].mxu0 %v2447_v6  ;;  %v2543_v6 = vld [vmem:[%s2686_s22 + $0x328] ss:$16 sps:$4 sm:$0xff]  }
  0x83   : > { %2197 = vmatprep.mubr.msk.bf16.mxu0 %vm1152_vm0, %v2449_v8  ;;  %v2545_v8 = vld [vmem:[%s2686_s22 + $0x34c] ss:$16 sps:$4 sm:$0xff]  }
  0x86   : > { %1353 = vmatmul.mubr.bf16.gmra.mrb[32].mxu1 %v2442_v7  ;;  %v2538_v7 = vld [vmem:[%s2686_s22 + $0x300] ss:$16 sps:$4 sm:$0xff]  }
  0x87   : > { %1360 = vmatprep.mubr.bf16.mxu1 %v2445_v9  ;;  %v2541_v9 = vld [vmem:[%s2686_s22 + $0x324] ss:$16 sps:$4 sm:$0xff]  }
  0x8a   : > { %1658 = vmatmul.mubr.bf16.gmra.mrb[40].mxu0 %v2453_v10  ;;  %v2549_v10 = vld [vmem:[%s2686_s22 + $0x348] ss:$16 sps:$4 sm:$0xff]  }
  0x8b   : > { %2198 = vmatprep.mubr.msk.bf16.mxu0 %vm1152_vm0, %v2455_v12  ;;  %v2551_v12 = vld [vmem:[%s2686_s22 + $0x36c] ss:$16 sps:$4 sm:$0xff]  }
  0x8e   : > { %1361 = vmatmul.mubr.bf16.gmra.mrb[36].mxu1 %v2448_v11  ;;  %v2544_v11 = vld [vmem:[%s2686_s22 + $0x320] ss:$16 sps:$4 sm:$0xff]  }
  0x8f   : > { %1368 = vmatprep.mubr.bf16.mxu1 %v2451_v13  ;;  %v2547_v13 = vld [vmem:[%s2686_s22 + $0x344] ss:$16 sps:$4 sm:$0xff]  }
  0x92   : > { %1666 = vmatmul.mubr.bf16.gmra.mrb[44].mxu0 %v2459_v14 }
  0x93   : > { %2199 = vmatprep.mubr.msk.bf16.mxu0 %vm1152_vm0, %v2461_v16  ;;  %v2555_v16 = vld [vmem:[%s2686_s22 + $0x368] ss:$16 sps:$4 sm:$0xff]  }
  0x96   : > { %1369 = vmatmul.mubr.bf16.gmra.mrb[40].mxu1 %v2454_v15 }
  0x97   : > { %1376 = vmatprep.mubr.bf16.mxu1 %v2457_v17  ;;  %v2550_v17 = vld [vmem:[%s2686_s22 + $0x340] ss:$16 sps:$4 sm:$0xff]  }
  0x9a   : > { %1674 = vmatmul.mubr.bf16.gmra.mrb[48].mxu0 %v2465_v18 }
  0x9b   : > { %2200 = vmatprep.mubr.msk.bf16.mxu0 %vm1152_vm0, %v2467_v20 }
  0x9e   : > { %1377 = vmatmul.mubr.bf16.gmra.mrb[44].mxu1 %v2460_v19  ;;  %v2557_v19 = vld [vmem:[%s2686_s22 + $0x38c] ss:$16 sps:$4 sm:$0xff]  }
  0x9f   : > { %1384 = vmatprep.mubr.bf16.mxu1 %v2463_v21  ;;  %v2553_v21 = vld [vmem:[%s2686_s22 + $0x364] ss:$16 sps:$4 sm:$0xff]  }
  0xa2   : > { %1682 = vmatmul.mubr.bf16.gmra.mrb[52].mxu0 %v2471_v22  ;;  %v2888_v22 = vld [vmem:[%s3111_s2] ss:$0 sm:$0xff] }
  0xa3   : > { %2201 = vmatprep.mubr.msk.bf16.mxu0 %vm1152_vm0, %v2473_v24 }
  0xa6   : > { %1385 = vmatmul.mubr.bf16.gmra.mrb[48].mxu1 %v2466_v23 }
  0xa7   : > { %1392 = vmatprep.mubr.bf16.mxu1 %v2469_v25 }
  0xaa   : > { %1690 = vmatmul.mubr.bf16.gmra.mrb[56].mxu0 %v2477_v26  ;;  %v2561_v26 = vld [vmem:[%s2686_s22 + $0x388] ss:$16 sps:$4 sm:$0xff]  }
  0xab   : > { %2202 = vmatprep.mubr.msk.bf16.mxu0 %vm1152_vm0, %v2479_v28 }
  0xae   : > { %1393 = vmatmul.mubr.bf16.gmra.mrb[52].mxu1 %v2472_v27 }
  0xaf   : > { %1400 = vmatprep.mubr.bf16.mxu1 %v2475_v29  ;;  %v2556_v29 = vld [vmem:[%s2686_s22 + $0x360] ss:$16 sps:$4 sm:$0xff]  }
  0xb2   : > { %1698 = vmatmul.mubr.bf16.gmra.mrb[60].mxu0 %v2483_v30 }
  0xb3   : > { %2203 = vmatprep.mubr.msk.bf16.mxu0 %vm1152_vm0, %v2485_v32 }
  0xb6   : > { %1401 = vmatmul.mubr.bf16.gmra.mrb[56].mxu1 %v2478_v31  ;;  %v2563_v31 = vld [vmem:[%s2686_s22 + $0x3ac] ss:$16 sps:$4 sm:$0xff]  }
  0xb7   : > { %1408 = vmatprep.mubr.bf16.mxu1 %v2481_v33 }
  0xba   : > { %1706 = vmatmul.mubr.bf16.gmra.mrb[64].mxu0 %v2489_v34  ;;  %v2559_v34 = vld [vmem:[%s2686_s22 + $0x384] ss:$16 sps:$4 sm:$0xff]  }
  0xbb   : > { %2204 = vmatprep.mubr.msk.bf16.mxu0 %vm1152_vm0, %v2491_v36 }
  0xbe   : > { %1409 = vmatmul.mubr.bf16.gmra.mrb[60].mxu1 %v2484_v35 }
  0xbf   : > { %1416 = vmatprep.mubr.bf16.mxu1 %v2487_v37 }
  0xc2   : > { %1714 = vmatmul.mubr.bf16.gmra.mrb[68].mxu0 %v2495_v38 }
  0xc3   : > { %2205 = vmatprep.mubr.msk.bf16.mxu0 %vm1152_vm0, %v2497_v40 }
  0xc6   : > { %1417 = vmatmul.mubr.bf16.gmra.mrb[64].mxu1 %v2490_v39 }
  0xc7   : > { %1424 = vmatprep.mubr.bf16.mxu1 %v2493_v41 }
  0xca   : > { %1722 = vmatmul.mubr.bf16.gmra.mrb[72].mxu0 %v2501_v42 }
  0xcb   : > { %2206 = vmatprep.mubr.msk.bf16.mxu0 %vm1152_vm0, %v2503_v44  ;;  %v2567_v44 = vld [vmem:[%s2686_s22 + $0x3a8] ss:$16 sps:$4 sm:$0xff]  }
  0xce   : > { %1425 = vmatmul.mubr.bf16.gmra.mrb[68].mxu1 %v2496_v43 }
  0xcf   : > { %1432 = vmatprep.mubr.bf16.mxu1 %v2499_v45 }
  0xd2   : > { %1730 = vmatmul.mubr.bf16.gmra.mrb[76].mxu0 %v2507_v46 }
  0xd3   : > { %2207 = vmatprep.mubr.msk.bf16.mxu0 %vm1152_vm0, %v2509_v48 }
  0xd6   : > { %1433 = vmatmul.mubr.bf16.gmra.mrb[72].mxu1 %v2502_v47  ;;  %v2562_v47 = vld [vmem:[%s2686_s22 + $0x380] ss:$16 sps:$4 sm:$0xff]  }
  0xd7   : > { %1440 = vmatprep.mubr.bf16.mxu1 %v2505_v49  ;;  %v2569_v49 = vld [vmem:[%s2686_s22 + $0x3cc] ss:$16 sps:$4 sm:$0xff]  }
  0xda   : > { %1738 = vmatmul.mubr.bf16.gmra.mrb[80].mxu0 %v2513_v50 }
  0xdb   : > { %2208 = vmatprep.mubr.msk.bf16.mxu0 %vm1152_vm0, %v2515_v52  ;;  %v2565_v52 = vld [vmem:[%s2686_s22 + $0x3a4] ss:$16 sps:$4 sm:$0xff]  }
  0xde   : > { %1441 = vmatmul.mubr.bf16.gmra.mrb[76].mxu1 %v2508_v51 }
  0xdf   : > { %1448 = vmatprep.mubr.bf16.mxu1 %v2511_v53 }
  0xe2   : > { %1746 = vmatmul.mubr.bf16.gmra.mrb[84].mxu0 %v2519_v54 }
  0xe3   : > { %2209 = vmatprep.mubr.msk.bf16.mxu0 %vm1152_vm0, %v2521_v56 }
  0xe6   : > { %1449 = vmatmul.mubr.bf16.gmra.mrb[80].mxu1 %v2514_v55 }
  0xe7   : > { %1456 = vmatprep.mubr.bf16.mxu1 %v2517_v57 }
  0xea   : > { %1754 = vmatmul.mubr.bf16.gmra.mrb[88].mxu0 %v2525_v58 }
  0xeb   : > { %2210 = vmatprep.mubr.msk.bf16.mxu0 %vm1152_vm0, %v2527_v60 }
  0xee   : > { %1457 = vmatmul.mubr.bf16.gmra.mrb[84].mxu1 %v2520_v59 }
  0xef   : > { %1464 = vmatprep.mubr.bf16.mxu1 %v2523_v61 }
  0xf2   : > { %1762 = vmatmul.mubr.bf16.gmra.mrb[92].mxu0 %v2531_v62  ;;  %v2573_v62 = vld [vmem:[%s2686_s22 + $0x3c8] ss:$16 sps:$4 sm:$0xff]  }
  0xf3   : > { %2211 = vmatprep.mubr.msk.bf16.mxu0 %vm1152_vm0, %v2533_v0 }
  0xf6   : > { %1465 = vmatmul.mubr.bf16.gmra.mrb[88].mxu1 %v2526_v63 }
  0xf7   : > { %1472 = vmatprep.mubr.bf16.mxu1 %v2529_v1  ;;  %v2568_v1 = vld [vmem:[%s2686_s22 + $0x3a0] ss:$16 sps:$4 sm:$0xff]  }
  0xfa   : > { %1770 = vmatmul.mubr.bf16.gmra.mrb[96].mxu0 %v2537_v2 }
  0xfb   : > { %2212 = vmatprep.mubr.msk.bf16.mxu0 %vm1152_vm0, %v2539_v4 }
  0xfe   : > { %1473 = vmatmul.mubr.bf16.gmra.mrb[92].mxu1 %v2532_v3  ;;  %v2575_v3 = vld [vmem:[%s2686_s22 + $0x3ec] ss:$16 sps:$4 sm:$0xff]  }
  0xff   : > { %1480 = vmatprep.mubr.bf16.mxu1 %v2535_v5 }
 0x102   : > { %1778 = vmatmul.mubr.bf16.gmra.mrb[100].mxu0 %v2543_v6  ;;  %v2571_v6 = vld [vmem:[%s2686_s22 + $0x3c4] ss:$16 sps:$4 sm:$0xff]  }
 0x103   : > { %2213 = vmatprep.mubr.msk.bf16.mxu0 %vm1152_vm0, %v2545_v8 }
 0x106   : > { %1481 = vmatmul.mubr.bf16.gmra.mrb[96].mxu1 %v2538_v7 }
 0x107   : > { %1488 = vmatprep.mubr.bf16.mxu1 %v2541_v9 }
 0x10a   : > { %1786 = vmatmul.mubr.bf16.gmra.mrb[104].mxu0 %v2549_v10 }
 0x10b   : > { %2214 = vmatprep.mubr.msk.bf16.mxu0 %vm1152_vm0, %v2551_v12 }
 0x10d   : > { %v1579_v14 = vpop.f32.mrb[0].mxu0 }
 0x10e   : > { %1489 = vmatmul.mubr.bf16.gmra.mrb[100].mxu1 %v2544_v11  ;;  %v1581_v15 = vpop.f32.mrb[1].mxu0 }
 0x10f   : > { %1496 = vmatprep.mubr.bf16.mxu1 %v2547_v13  ;;  %v1582_v18 = vpop.f32.mrb[2].mxu0 }
 0x110   : > { %v1584_v20 = vpop.f32.mrb[3].mxu0 }
 0x112   : > { %1794 = vmatmul.mubr.bf16.gmra.mrb[108].mxu0 %v2555_v16  ;;  %v2579_v16 = vld [vmem:[%s2686_s22 + $0x3e8] ss:$16 sps:$4 sm:$0xff]  }
 0x113   : > { %2215 = vmatprep.mubr.msk.bf16.mxu0 %vm1152_vm0, %v2557_v19  ;;  %v2574_v19 = vld [vmem:[%s2686_s22 + $0x3c0] ss:$16 sps:$4 sm:$0xff]  }
 0x115   : > { %v1587_v23 = vpop.f32.mrb[4].mxu0 }
 0x116   : > { %1497 = vmatmul.mubr.bf16.gmra.mrb[104].mxu1 %v2550_v17  ;;  %v1589_v25 = vpop.f32.mrb[5].mxu0 }
 0x117   : > { %1504 = vmatprep.mubr.bf16.mxu1 %v2553_v21  ;;  %v1590_v30 = vpop.f32.mrb[6].mxu0 }
 0x118   : > { %v1592_v33 = vpop.f32.mrb[7].mxu0 }
 0x119   : > { %v1290_v24 = vpop.f32.mrb[0].mxu1 }
 0x11a   : > { %v1291_v27 = vadd.f32 %v2888_v22, %v1290_v24  ;;  %v1292_v28 = vpop.f32.mrb[1].mxu1  ;;  %1802 = vmatmul.mubr.bf16.gmra.mrb[112].mxu0 %v2561_v26  ;;  %v2577_v24 = vld [vmem:[%s2686_s22 + $0x3e4] ss:$16 sps:$4 sm:$0xff]  }
 0x11b   : > { %v1293_v32 = vpop.f32.mrb[2].mxu1  ;;  %2216 = vmatprep.mubr.msk.bf16.mxu0 %vm1152_vm0, %v2563_v31 }
 0x11c   : > { %v1580_v35 = vadd.f32 %v1579_v14, %v1291_v27  ;;  %v1294_v36 = vadd.f32 %v2888_v22, %v1293_v32  ;;  %v1295_v37 = vpop.f32.mrb[3].mxu1 }
 0x11d   : > { %v1595_v41 = vpop.f32.mrb[8].mxu0 }
 0x11e   : > { %v1834_v38 = vmax.f32 %v1580_v35, 0.0  ;;  %v1583_v39 = vadd.f32 %v1582_v18, %v1294_v36  ;;  %1505 = vmatmul.mubr.bf16.gmra.mrb[108].mxu1 %v2556_v29  ;;  %v1597_v43 = vpop.f32.mrb[9].mxu0  ;;  %v2580_v36 = vld [vmem:[%s2686_s22 + $0x3e0] ss:$16 sps:$4 sm:$0xff]  }
 0x11f   : > { %1512 = vmatprep.mubr.bf16.mxu1 %v2559_v34  ;;  %v1598_v48 = vpop.f32.mrb[10].mxu0 }
 0x120   : > { %1899 = vst.msk [vmem:[%s2900_s30] sm:$0xff] %vm1898_vm3, %v1834_v38  ;;  %v1835_v40 = vmax.f32 %v1583_v39, 0.0  ;;  %v1600_v51 = vpop.f32.mrb[11].mxu0 }
 0x121   : > { %v1298_v42 = vpop.f32.mrb[4].mxu1 }
 0x122   : > { %1900 = vst.msk [vmem:[%s2900_s30 + $0x8] sm:$0xff] %vm1898_vm3, %v1835_v40  ;;  %v1299_v45 = vadd.f32 %v2888_v22, %v1298_v42  ;;  %v1300_v46 = vpop.f32.mrb[5].mxu1  ;;  %1810 = vmatmul.mubr.bf16.gmra.mrb[116].mxu0 %v2567_v44 }
 0x123   : > { %v1301_v50 = vpop.f32.mrb[6].mxu1  ;;  %2217 = vmatprep.mubr.msk.bf16.mxu0 %vm1152_vm0, %v2569_v49 }
 0x124   : > { %v1588_v53 = vadd.f32 %v1587_v23, %v1299_v45  ;;  %v1302_v54 = vadd.f32 %v2888_v22, %v1301_v50  ;;  %v1303_v55 = vpop.f32.mrb[7].mxu1 }
 0x125   : > { %v1603_v59 = vpop.f32.mrb[12].mxu0 }
 0x126   : > { %v1836_v56 = vmax.f32 %v1588_v53, 0.0  ;;  %v1591_v57 = vadd.f32 %v1590_v30, %v1302_v54  ;;  %1513 = vmatmul.mubr.bf16.gmra.mrb[112].mxu1 %v2562_v47  ;;  %v1605_v61 = vpop.f32.mrb[13].mxu0 }
 0x127   : > { %1520 = vmatprep.mubr.bf16.mxu1 %v2565_v52  ;;  %v1606_v2 = vpop.f32.mrb[14].mxu0 }
 0x128   : > { %1901 = vst.msk [vmem:[%s2900_s30 + $0x10] sm:$0xff] %vm1898_vm3, %v1836_v56  ;;  %v1837_v58 = vmax.f32 %v1591_v57, 0.0  ;;  %v1608_v5 = vpop.f32.mrb[15].mxu0 }
 0x129   : > { %v1306_v60 = vpop.f32.mrb[8].mxu1 }
 0x12a   : > { %1902 = vst.msk [vmem:[%s2900_s30 + $0x18] sm:$0xff] %vm1898_vm3, %v1837_v58  ;;  %v1307_v63 = vadd.f32 %v2888_v22, %v1306_v60  ;;  %v1308_v0 = vpop.f32.mrb[9].mxu1  ;;  %1818 = vmatmul.mubr.bf16.gmra.mrb[120].mxu0 %v2573_v62 }
 0x12b   : > { %v1309_v4 = vpop.f32.mrb[10].mxu1  ;;  %2218 = vmatprep.mubr.msk.bf16.mxu0 %vm1152_vm0, %v2575_v3 }
 0x12c   : > { %v1596_v7 = vadd.f32 %v1595_v41, %v1307_v63  ;;  %v1310_v8 = vadd.f32 %v2888_v22, %v1309_v4  ;;  %v1311_v9 = vpop.f32.mrb[11].mxu1 }
 0x12d   : > { %v1611_v13 = vpop.f32.mrb[16].mxu0 }
 0x12e   : > { %v1838_v10 = vmax.f32 %v1596_v7, 0.0  ;;  %v1599_v11 = vadd.f32 %v1598_v48, %v1310_v8  ;;  %1521 = vmatmul.mubr.bf16.gmra.mrb[116].mxu1 %v2568_v1  ;;  %v1613_v15 = vpop.f32.mrb[17].mxu0 }
 0x12f   : > { %1528 = vmatprep.mubr.bf16.mxu1 %v2571_v6  ;;  %v1614_v20 = vpop.f32.mrb[18].mxu0 }
 0x130   : > { %1903 = vst.msk [vmem:[%s2900_s30 + $0x20] sm:$0xff] %vm1898_vm3, %v1838_v10  ;;  %v1839_v12 = vmax.f32 %v1599_v11, 0.0  ;;  %v1616_v23 = vpop.f32.mrb[19].mxu0 }
 0x131   : > { %v1314_v14 = vpop.f32.mrb[12].mxu1 }
 0x132   : > { %1904 = vst.msk [vmem:[%s2900_s30 + $0x28] sm:$0xff] %vm1898_vm3, %v1839_v12  ;;  %v1315_v17 = vadd.f32 %v2888_v22, %v1314_v14  ;;  %v1316_v18 = vpop.f32.mrb[13].mxu1  ;;  %1826 = vmatmul.mubr.bf16.gmra.mrb[124].mxu0 %v2579_v16 }
 0x133   : > { %v1317_v21 = vpop.f32.mrb[14].mxu1 }
 0x134   : > { %v1604_v25 = vadd.f32 %v1603_v59, %v1315_v17  ;;  %v1318_v26 = vadd.f32 %v2888_v22, %v1317_v21  ;;  %v1319_v27 = vpop.f32.mrb[15].mxu1 }
 0x135   : > { %v1619_v31 = vpop.f32.mrb[20].mxu0 }
 0x136   : > { %v1840_v28 = vmax.f32 %v1604_v25, 0.0  ;;  %v1607_v29 = vadd.f32 %v1606_v2, %v1318_v26  ;;  %1529 = vmatmul.mubr.bf16.gmra.mrb[120].mxu1 %v2574_v19  ;;  %v1621_v33 = vpop.f32.mrb[21].mxu0 }
 0x137   : > { %1536 = vmatprep.mubr.bf16.mxu1 %v2577_v24  ;;  %v1622_v37 = vpop.f32.mrb[22].mxu0 }
 0x138   : > { %1905 = vst.msk [vmem:[%s2900_s30 + $0x30] sm:$0xff] %vm1898_vm3, %v1840_v28  ;;  %v1841_v30 = vmax.f32 %v1607_v29, 0.0  ;;  %v1624_v39 = vpop.f32.mrb[23].mxu0 }
 0x139   : > { %v1322_v32 = vpop.f32.mrb[16].mxu1 }
 0x13a   : > { %1906 = vst.msk [vmem:[%s2900_s30 + $0x38] sm:$0xff] %vm1898_vm3, %v1841_v30  ;;  %v1323_v34 = vadd.f32 %v2888_v22, %v1322_v32  ;;  %v1324_v35 = vpop.f32.mrb[17].mxu1 }
 0x13b   : > { %v1325_v38 = vpop.f32.mrb[18].mxu1 }
 0x13c   : > { %v1612_v40 = vadd.f32 %v1611_v13, %v1323_v34  ;;  %v1326_v41 = vadd.f32 %v2888_v22, %v1325_v38  ;;  %v1327_v42 = vpop.f32.mrb[19].mxu1 }
 0x13d   : > { %v1627_v46 = vpop.f32.mrb[24].mxu0 }
 0x13e   : > { %v1842_v43 = vmax.f32 %v1612_v40, 0.0  ;;  %v1615_v44 = vadd.f32 %v1614_v20, %v1326_v41  ;;  %1537 = vmatmul.mubr.bf16.gmra.mrb[124].mxu1 %v2580_v36  ;;  %v1629_v48 = vpop.f32.mrb[25].mxu0 }
 0x13f   : > { %v1630_v51 = vpop.f32.mrb[26].mxu0 }
 0x140   : > { %1907 = vst.msk [vmem:[%s2900_s30 + $0x40] sm:$0xff] %vm1898_vm3, %v1842_v43  ;;  %v1843_v45 = vmax.f32 %v1615_v44, 0.0  ;;  %v1632_v53 = vpop.f32.mrb[27].mxu0 }
 0x141   : > { %v1330_v47 = vpop.f32.mrb[20].mxu1 }
 0x142   : > { %1908 = vst.msk [vmem:[%s2900_s30 + $0x48] sm:$0xff] %vm1898_vm3, %v1843_v45  ;;  %v1331_v49 = vadd.f32 %v2888_v22, %v1330_v47  ;;  %v1332_v50 = vpop.f32.mrb[21].mxu1 }
 0x143   : > { %v1333_v52 = vpop.f32.mrb[22].mxu1 }
 0x144   : > { %v1620_v54 = vadd.f32 %v1619_v31, %v1331_v49  ;;  %v1334_v55 = vadd.f32 %v2888_v22, %v1333_v52  ;;  %v1335_v56 = vpop.f32.mrb[23].mxu1 }
 0x145   : > { %v1635_v60 = vpop.f32.mrb[28].mxu0 }
 0x146   : > { %v1844_v57 = vmax.f32 %v1620_v54, 0.0  ;;  %v1623_v58 = vadd.f32 %v1622_v37, %v1334_v55  ;;  %v1637_v62 = vpop.f32.mrb[29].mxu0 }
 0x147   : > { %v1638_v1 = vpop.f32.mrb[30].mxu0 }
 0x148   : > { %1909 = vst.msk [vmem:[%s2900_s30 + $0x50] sm:$0xff] %vm1898_vm3, %v1844_v57  ;;  %v1845_v59 = vmax.f32 %v1623_v58, 0.0  ;;  %v1640_v3 = vpop.f32.mrb[31].mxu0 }
 0x149   : > { %v1338_v61 = vpop.f32.mrb[24].mxu1 }
 0x14a   : > { %1910 = vst.msk [vmem:[%s2900_s30 + $0x58] sm:$0xff] %vm1898_vm3, %v1845_v59  ;;  %v1339_v63 = vadd.f32 %v2888_v22, %v1338_v61  ;;  %v1340_v0 = vpop.f32.mrb[25].mxu1 }
 0x14b   : > { %v1341_v2 = vpop.f32.mrb[26].mxu1 }
 0x14c   : > { %v1628_v4 = vadd.f32 %v1627_v46, %v1339_v63  ;;  %v1342_v5 = vadd.f32 %v2888_v22, %v1341_v2  ;;  %v1343_v6 = vpop.f32.mrb[27].mxu1 }
 0x14d   : > { %v1643_v10 = vpop.f32.mrb[32].mxu0 }
 0x14e   : > { %v1846_v7 = vmax.f32 %v1628_v4, 0.0  ;;  %v1631_v8 = vadd.f32 %v1630_v51, %v1342_v5  ;;  %v1645_v12 = vpop.f32.mrb[33].mxu0 }
 0x14f   : > { %v1646_v15 = vpop.f32.mrb[34].mxu0 }
 0x150   : > { %1911 = vst.msk [vmem:[%s2900_s30 + $0x60] sm:$0xff] %vm1898_vm3, %v1846_v7  ;;  %v1847_v9 = vmax.f32 %v1631_v8, 0.0  ;;  %v1648_v17 = vpop.f32.mrb[35].mxu0 }
 0x151   : > { %v1346_v11 = vpop.f32.mrb[28].mxu1 }
 0x152   : > { %1912 = vst.msk [vmem:[%s2900_s30 + $0x68] sm:$0xff] %vm1898_vm3, %v1847_v9  ;;  %v1347_v13 = vadd.f32 %v2888_v22, %v1346_v11  ;;  %v1348_v14 = vpop.f32.mrb[29].mxu1 }
 0x153   : > { %v1349_v16 = vpop.f32.mrb[30].mxu1 }
 0x154   : > { %v1636_v18 = vadd.f32 %v1635_v60, %v1347_v13  ;;  %v1350_v19 = vadd.f32 %v2888_v22, %v1349_v16  ;;  %v1351_v20 = vpop.f32.mrb[31].mxu1 }
 0x155   : > { %v1651_v25 = vpop.f32.mrb[36].mxu0 }
 0x156   : > { %v1848_v21 = vmax.f32 %v1636_v18, 0.0  ;;  %v1639_v23 = vadd.f32 %v1638_v1, %v1350_v19  ;;  %v1653_v27 = vpop.f32.mrb[37].mxu0 }
 0x157   : > { %v1654_v30 = vpop.f32.mrb[38].mxu0 }
 0x158   : > { %1913 = vst.msk [vmem:[%s2900_s30 + $0x70] sm:$0xff] %vm1898_vm3, %v1848_v21  ;;  %v1849_v24 = vmax.f32 %v1639_v23, 0.0  ;;  %v1656_v32 = vpop.f32.mrb[39].mxu0 }
 0x159   : > { %v1354_v26 = vpop.f32.mrb[32].mxu1 }
 0x15a   : > { %1914 = vst.msk [vmem:[%s2900_s30 + $0x78] sm:$0xff] %vm1898_vm3, %v1849_v24  ;;  %v1355_v28 = vadd.f32 %v2888_v22, %v1354_v26  ;;  %v1356_v29 = vpop.f32.mrb[33].mxu1 }
 0x15b   : > { %v1357_v31 = vpop.f32.mrb[34].mxu1 }
 0x15c   : > { %v1644_v33 = vadd.f32 %v1643_v10, %v1355_v28  ;;  %v1358_v34 = vadd.f32 %v2888_v22, %v1357_v31  ;;  %v1359_v35 = vpop.f32.mrb[35].mxu1 }
 0x15d   : > { %v1659_v39 = vpop.f32.mrb[40].mxu0 }
 0x15e   : > { %v1850_v36 = vmax.f32 %v1644_v33, 0.0  ;;  %v1647_v37 = vadd.f32 %v1646_v15, %v1358_v34  ;;  %v1661_v41 = vpop.f32.mrb[41].mxu0 }
 0x15f   : > { %v1662_v44 = vpop.f32.mrb[42].mxu0 }
 0x160   : > { %1915 = vst.msk [vmem:[%s2900_s30 + $0x80] sm:$0xff] %vm1898_vm3, %v1850_v36  ;;  %v1851_v38 = vmax.f32 %v1647_v37, 0.0  ;;  %v1664_v46 = vpop.f32.mrb[43].mxu0 }
 0x161   : > { %v1362_v40 = vpop.f32.mrb[36].mxu1 }
 0x162   : > { %1916 = vst.msk [vmem:[%s2900_s30 + $0x88] sm:$0xff] %vm1898_vm3, %v1851_v38  ;;  %v1363_v42 = vadd.f32 %v2888_v22, %v1362_v40  ;;  %v1364_v43 = vpop.f32.mrb[37].mxu1 }
 0x163   : > { %v1365_v45 = vpop.f32.mrb[38].mxu1 }
 0x164   : > { %v1652_v47 = vadd.f32 %v1651_v25, %v1363_v42  ;;  %v1366_v48 = vadd.f32 %v2888_v22, %v1365_v45  ;;  %v1367_v49 = vpop.f32.mrb[39].mxu1 }
 0x165   : > { %v1667_v53 = vpop.f32.mrb[44].mxu0 }
 0x166   : > { %v1852_v50 = vmax.f32 %v1652_v47, 0.0  ;;  %v1655_v51 = vadd.f32 %v1654_v30, %v1366_v48  ;;  %v1669_v55 = vpop.f32.mrb[45].mxu0 }
 0x167   : > { %v1670_v58 = vpop.f32.mrb[46].mxu0 }
 0x168   : > { %1917 = vst.msk [vmem:[%s2900_s30 + $0x90] sm:$0xff] %vm1898_vm3, %v1852_v50  ;;  %v1853_v52 = vmax.f32 %v1655_v51, 0.0  ;;  %v1672_v60 = vpop.f32.mrb[47].mxu0 }
 0x169   : > { %v1370_v54 = vpop.f32.mrb[40].mxu1 }
 0x16a   : > { %1918 = vst.msk [vmem:[%s2900_s30 + $0x98] sm:$0xff] %vm1898_vm3, %v1853_v52  ;;  %v1371_v56 = vadd.f32 %v2888_v22, %v1370_v54  ;;  %v1372_v57 = vpop.f32.mrb[41].mxu1 }
 0x16b   : > { %v1373_v59 = vpop.f32.mrb[42].mxu1 }
 0x16c   : > { %v1660_v61 = vadd.f32 %v1659_v39, %v1371_v56  ;;  %v1374_v62 = vadd.f32 %v2888_v22, %v1373_v59  ;;  %v1375_v63 = vpop.f32.mrb[43].mxu1 }
 0x16d   : > { %v1675_v3 = vpop.f32.mrb[48].mxu0 }
 0x16e   : > { %v1854_v0 = vmax.f32 %v1660_v61, 0.0  ;;  %v1663_v1 = vadd.f32 %v1662_v44, %v1374_v62  ;;  %v1677_v5 = vpop.f32.mrb[49].mxu0 }
 0x16f   : > { %v1678_v8 = vpop.f32.mrb[50].mxu0 }
 0x170   : > { %1919 = vst.msk [vmem:[%s2900_s30 + $0xa0] sm:$0xff] %vm1898_vm3, %v1854_v0  ;;  %v1855_v2 = vmax.f32 %v1663_v1, 0.0  ;;  %v1680_v10 = vpop.f32.mrb[51].mxu0 }
 0x171   : > { %v1378_v4 = vpop.f32.mrb[44].mxu1 }
 0x172   : > { %1920 = vst.msk [vmem:[%s2900_s30 + $0xa8] sm:$0xff] %vm1898_vm3, %v1855_v2  ;;  %v1379_v6 = vadd.f32 %v2888_v22, %v1378_v4  ;;  %v1380_v7 = vpop.f32.mrb[45].mxu1 }
 0x173   : > { %v1381_v9 = vpop.f32.mrb[46].mxu1 }
 0x174   : > { %v1668_v11 = vadd.f32 %v1667_v53, %v1379_v6  ;;  %v1382_v12 = vadd.f32 %v2888_v22, %v1381_v9  ;;  %v1383_v13 = vpop.f32.mrb[47].mxu1 }
 0x175   : > { %v1683_v17 = vpop.f32.mrb[52].mxu0 }
 0x176   : > { %v1856_v14 = vmax.f32 %v1668_v11, 0.0  ;;  %v1671_v15 = vadd.f32 %v1670_v58, %v1382_v12  ;;  %v1685_v19 = vpop.f32.mrb[53].mxu0 }
 0x177   : > { %v1686_v23 = vpop.f32.mrb[54].mxu0 }
 0x178   : > { %1921 = vst.msk [vmem:[%s2900_s30 + $0xb0] sm:$0xff] %vm1898_vm3, %v1856_v14  ;;  %v1857_v16 = vmax.f32 %v1671_v15, 0.0  ;;  %v1688_v25 = vpop.f32.mrb[55].mxu0 }
 0x179   : > { %v1386_v18 = vpop.f32.mrb[48].mxu1 }
 0x17a   : > { %1922 = vst.msk [vmem:[%s2900_s30 + $0xb8] sm:$0xff] %vm1898_vm3, %v1857_v16  ;;  %v1387_v20 = vadd.f32 %v2888_v22, %v1386_v18  ;;  %v1388_v21 = vpop.f32.mrb[49].mxu1 }
 0x17b   : > { %v1389_v24 = vpop.f32.mrb[50].mxu1 }
 0x17c   : > { %v1676_v26 = vadd.f32 %v1675_v3, %v1387_v20  ;;  %v1390_v27 = vadd.f32 %v2888_v22, %v1389_v24  ;;  %v1391_v28 = vpop.f32.mrb[51].mxu1 }
 0x17d   : > { %v1691_v32 = vpop.f32.mrb[56].mxu0 }
 0x17e   : > { %v1858_v29 = vmax.f32 %v1676_v26, 0.0  ;;  %v1679_v30 = vadd.f32 %v1678_v8, %v1390_v27  ;;  %v1693_v34 = vpop.f32.mrb[57].mxu0 }
 0x17f   : > { %v1694_v37 = vpop.f32.mrb[58].mxu0 }
 0x180   : > { %1923 = vst.msk [vmem:[%s2900_s30 + $0xc0] sm:$0xff] %vm1898_vm3, %v1858_v29  ;;  %v1859_v31 = vmax.f32 %v1679_v30, 0.0  ;;  %v1696_v39 = vpop.f32.mrb[59].mxu0 }
 0x181   : > { %v1394_v33 = vpop.f32.mrb[52].mxu1 }
 0x182   : > { %1924 = vst.msk [vmem:[%s2900_s30 + $0xc8] sm:$0xff] %vm1898_vm3, %v1859_v31  ;;  %v1395_v35 = vadd.f32 %v2888_v22, %v1394_v33  ;;  %v1396_v36 = vpop.f32.mrb[53].mxu1 }
 0x183   : > { %v1397_v38 = vpop.f32.mrb[54].mxu1 }
 0x184   : > { %v1684_v40 = vadd.f32 %v1683_v17, %v1395_v35  ;;  %v1398_v41 = vadd.f32 %v2888_v22, %v1397_v38  ;;  %v1399_v42 = vpop.f32.mrb[55].mxu1 }
 0x185   : > { %v1699_v46 = vpop.f32.mrb[60].mxu0 }
 0x186   : > { %v1860_v43 = vmax.f32 %v1684_v40, 0.0  ;;  %v1687_v44 = vadd.f32 %v1686_v23, %v1398_v41  ;;  %v1701_v48 = vpop.f32.mrb[61].mxu0 }
 0x187   : > { %v1702_v51 = vpop.f32.mrb[62].mxu0 }
 0x188   : > { %1925 = vst.msk [vmem:[%s2900_s30 + $0xd0] sm:$0xff] %vm1898_vm3, %v1860_v43  ;;  %v1861_v45 = vmax.f32 %v1687_v44, 0.0  ;;  %v1704_v53 = vpop.f32.mrb[63].mxu0 }
 0x189   : > { %v1402_v47 = vpop.f32.mrb[56].mxu1 }
 0x18a   : > { %1926 = vst.msk [vmem:[%s2900_s30 + $0xd8] sm:$0xff] %vm1898_vm3, %v1861_v45  ;;  %v1403_v49 = vadd.f32 %v2888_v22, %v1402_v47  ;;  %v1404_v50 = vpop.f32.mrb[57].mxu1 }
 0x18b   : > { %v1405_v52 = vpop.f32.mrb[58].mxu1 }
 0x18c   : > { %v1692_v54 = vadd.f32 %v1691_v32, %v1403_v49  ;;  %v1406_v55 = vadd.f32 %v2888_v22, %v1405_v52  ;;  %v1407_v56 = vpop.f32.mrb[59].mxu1 }
 0x18d   : > { %v1707_v60 = vpop.f32.mrb[64].mxu0 }
 0x18e   : > { %v1862_v57 = vmax.f32 %v1692_v54, 0.0  ;;  %v1695_v58 = vadd.f32 %v1694_v37, %v1406_v55  ;;  %v1709_v62 = vpop.f32.mrb[65].mxu0 }
 0x18f   : > { %v1710_v1 = vpop.f32.mrb[66].mxu0 }
 0x190   : > { %1927 = vst.msk [vmem:[%s2900_s30 + $0xe0] sm:$0xff] %vm1898_vm3, %v1862_v57  ;;  %v1863_v59 = vmax.f32 %v1695_v58, 0.0  ;;  %v1712_v3 = vpop.f32.mrb[67].mxu0 }
 0x191   : > { %v1410_v61 = vpop.f32.mrb[60].mxu1 }
 0x192   : > { %1928 = vst.msk [vmem:[%s2900_s30 + $0xe8] sm:$0xff] %vm1898_vm3, %v1863_v59  ;;  %v1411_v63 = vadd.f32 %v2888_v22, %v1410_v61  ;;  %v1412_v0 = vpop.f32.mrb[61].mxu1 }
 0x193   : > { %v1413_v2 = vpop.f32.mrb[62].mxu1 }
 0x194   : > { %v1700_v4 = vadd.f32 %v1699_v46, %v1411_v63  ;;  %v1414_v5 = vadd.f32 %v2888_v22, %v1413_v2  ;;  %v1415_v6 = vpop.f32.mrb[63].mxu1 }
 0x195   : > { %v1715_v10 = vpop.f32.mrb[68].mxu0 }
 0x196   : > { %v1864_v7 = vmax.f32 %v1700_v4, 0.0  ;;  %v1703_v8 = vadd.f32 %v1702_v51, %v1414_v5  ;;  %v1717_v12 = vpop.f32.mrb[69].mxu0 }
 0x197   : > { %v1718_v15 = vpop.f32.mrb[70].mxu0 }
 0x198   : > { %1929 = vst.msk [vmem:[%s2900_s30 + $0xf0] sm:$0xff] %vm1898_vm3, %v1864_v7  ;;  %v1865_v9 = vmax.f32 %v1703_v8, 0.0  ;;  %v1720_v17 = vpop.f32.mrb[71].mxu0 }
 0x199   : > { %v1418_v11 = vpop.f32.mrb[64].mxu1 }
 0x19a   : > { %1930 = vst.msk [vmem:[%s2900_s30 + $0xf8] sm:$0xff] %vm1898_vm3, %v1865_v9  ;;  %v1419_v13 = vadd.f32 %v2888_v22, %v1418_v11  ;;  %v1420_v14 = vpop.f32.mrb[65].mxu1 }
 0x19b   : > { %v1421_v16 = vpop.f32.mrb[66].mxu1 }
 0x19c   : > { %v1708_v18 = vadd.f32 %v1707_v60, %v1419_v13  ;;  %v1422_v19 = vadd.f32 %v2888_v22, %v1421_v16  ;;  %v1423_v20 = vpop.f32.mrb[67].mxu1 }
 0x19d   : > { %v1723_v25 = vpop.f32.mrb[72].mxu0 }
 0x19e   : > { %v1866_v21 = vmax.f32 %v1708_v18, 0.0  ;;  %v1711_v23 = vadd.f32 %v1710_v1, %v1422_v19  ;;  %v1725_v27 = vpop.f32.mrb[73].mxu0 }
 0x19f   : > { %v1726_v30 = vpop.f32.mrb[74].mxu0 }
 0x1a0   : > { %1931 = vst.msk [vmem:[%s2900_s30 + $0x100] sm:$0xff] %vm1898_vm3, %v1866_v21  ;;  %v1867_v24 = vmax.f32 %v1711_v23, 0.0  ;;  %v1728_v32 = vpop.f32.mrb[75].mxu0 }
 0x1a1   : > { %v1426_v26 = vpop.f32.mrb[68].mxu1 }
 0x1a2   : > { %1932 = vst.msk [vmem:[%s2900_s30 + $0x108] sm:$0xff] %vm1898_vm3, %v1867_v24  ;;  %v1427_v28 = vadd.f32 %v2888_v22, %v1426_v26  ;;  %v1428_v29 = vpop.f32.mrb[69].mxu1 }
 0x1a3   : > { %v1429_v31 = vpop.f32.mrb[70].mxu1 }
 0x1a4   : > { %v1716_v33 = vadd.f32 %v1715_v10, %v1427_v28  ;;  %v1430_v34 = vadd.f32 %v2888_v22, %v1429_v31  ;;  %v1431_v35 = vpop.f32.mrb[71].mxu1 }
 0x1a5   : > { %v1731_v39 = vpop.f32.mrb[76].mxu0 }
 0x1a6   : > { %v1868_v36 = vmax.f32 %v1716_v33, 0.0  ;;  %v1719_v37 = vadd.f32 %v1718_v15, %v1430_v34  ;;  %v1733_v41 = vpop.f32.mrb[77].mxu0 }
 0x1a7   : > { %v1734_v44 = vpop.f32.mrb[78].mxu0 }
 0x1a8   : > { %1933 = vst.msk [vmem:[%s2900_s30 + $0x110] sm:$0xff] %vm1898_vm3, %v1868_v36  ;;  %v1869_v38 = vmax.f32 %v1719_v37, 0.0  ;;  %v1736_v46 = vpop.f32.mrb[79].mxu0 }
 0x1a9   : > { %v1434_v40 = vpop.f32.mrb[72].mxu1 }
 0x1aa   : > { %1934 = vst.msk [vmem:[%s2900_s30 + $0x118] sm:$0xff] %vm1898_vm3, %v1869_v38  ;;  %v1435_v42 = vadd.f32 %v2888_v22, %v1434_v40  ;;  %v1436_v43 = vpop.f32.mrb[73].mxu1 }
 0x1ab   : > { %v1437_v45 = vpop.f32.mrb[74].mxu1 }
 0x1ac   : > { %v1724_v47 = vadd.f32 %v1723_v25, %v1435_v42  ;;  %v1438_v48 = vadd.f32 %v2888_v22, %v1437_v45  ;;  %v1439_v49 = vpop.f32.mrb[75].mxu1 }
 0x1ad   : > { %v1739_v53 = vpop.f32.mrb[80].mxu0 }
 0x1ae   : > { %v1870_v50 = vmax.f32 %v1724_v47, 0.0  ;;  %v1727_v51 = vadd.f32 %v1726_v30, %v1438_v48  ;;  %v1741_v55 = vpop.f32.mrb[81].mxu0 }
 0x1af   : > { %v1742_v58 = vpop.f32.mrb[82].mxu0 }
 0x1b0   : > { %1935 = vst.msk [vmem:[%s2900_s30 + $0x120] sm:$0xff] %vm1898_vm3, %v1870_v50  ;;  %v1871_v52 = vmax.f32 %v1727_v51, 0.0  ;;  %v1744_v60 = vpop.f32.mrb[83].mxu0 }
 0x1b1   : > { %v1442_v54 = vpop.f32.mrb[76].mxu1 }
 0x1b2   : > { %1936 = vst.msk [vmem:[%s2900_s30 + $0x128] sm:$0xff] %vm1898_vm3, %v1871_v52  ;;  %v1443_v56 = vadd.f32 %v2888_v22, %v1442_v54  ;;  %v1444_v57 = vpop.f32.mrb[77].mxu1 }
 0x1b3   : > { %v1445_v59 = vpop.f32.mrb[78].mxu1 }
 0x1b4   : > { %v1732_v61 = vadd.f32 %v1731_v39, %v1443_v56  ;;  %v1446_v62 = vadd.f32 %v2888_v22, %v1445_v59  ;;  %v1447_v63 = vpop.f32.mrb[79].mxu1 }
 0x1b5   : > { %v1747_v3 = vpop.f32.mrb[84].mxu0 }
 0x1b6   : > { %v1872_v0 = vmax.f32 %v1732_v61, 0.0  ;;  %v1735_v1 = vadd.f32 %v1734_v44, %v1446_v62  ;;  %v1749_v5 = vpop.f32.mrb[85].mxu0 }
 0x1b7   : > { %v1750_v8 = vpop.f32.mrb[86].mxu0 }
 0x1b8   : > { %1937 = vst.msk [vmem:[%s2900_s30 + $0x130] sm:$0xff] %vm1898_vm3, %v1872_v0  ;;  %v1873_v2 = vmax.f32 %v1735_v1, 0.0  ;;  %v1752_v10 = vpop.f32.mrb[87].mxu0 }
 0x1b9   : > { %v1450_v4 = vpop.f32.mrb[80].mxu1 }
 0x1ba   : > { %1938 = vst.msk [vmem:[%s2900_s30 + $0x138] sm:$0xff] %vm1898_vm3, %v1873_v2  ;;  %v1451_v6 = vadd.f32 %v2888_v22, %v1450_v4  ;;  %v1452_v7 = vpop.f32.mrb[81].mxu1 }
 0x1bb   : > { %v1453_v9 = vpop.f32.mrb[82].mxu1 }
 0x1bc   : > { %v1740_v11 = vadd.f32 %v1739_v53, %v1451_v6  ;;  %v1454_v12 = vadd.f32 %v2888_v22, %v1453_v9  ;;  %v1455_v13 = vpop.f32.mrb[83].mxu1 }
 0x1bd   : > { %v1755_v17 = vpop.f32.mrb[88].mxu0 }
 0x1be   : > { %v1874_v14 = vmax.f32 %v1740_v11, 0.0  ;;  %v1743_v15 = vadd.f32 %v1742_v58, %v1454_v12  ;;  %v1757_v19 = vpop.f32.mrb[89].mxu0 }
 0x1bf   : > { %v1758_v23 = vpop.f32.mrb[90].mxu0 }
 0x1c0   : > { %1939 = vst.msk [vmem:[%s2900_s30 + $0x140] sm:$0xff] %vm1898_vm3, %v1874_v14  ;;  %v1875_v16 = vmax.f32 %v1743_v15, 0.0  ;;  %v1760_v25 = vpop.f32.mrb[91].mxu0 }
 0x1c1   : > { %v1458_v18 = vpop.f32.mrb[84].mxu1 }
 0x1c2   : > { %1940 = vst.msk [vmem:[%s2900_s30 + $0x148] sm:$0xff] %vm1898_vm3, %v1875_v16  ;;  %v1459_v20 = vadd.f32 %v2888_v22, %v1458_v18  ;;  %v1460_v21 = vpop.f32.mrb[85].mxu1 }
 0x1c3   : > { %v1461_v24 = vpop.f32.mrb[86].mxu1 }
 0x1c4   : > { %v1748_v26 = vadd.f32 %v1747_v3, %v1459_v20  ;;  %v1462_v27 = vadd.f32 %v2888_v22, %v1461_v24  ;;  %v1463_v28 = vpop.f32.mrb[87].mxu1 }
 0x1c5   : > { %v1763_v32 = vpop.f32.mrb[92].mxu0 }
 0x1c6   : > { %v1876_v29 = vmax.f32 %v1748_v26, 0.0  ;;  %v1751_v30 = vadd.f32 %v1750_v8, %v1462_v27  ;;  %v1765_v34 = vpop.f32.mrb[93].mxu0 }
 0x1c7   : > { %v1766_v37 = vpop.f32.mrb[94].mxu0 }
 0x1c8   : > { %1941 = vst.msk [vmem:[%s2900_s30 + $0x150] sm:$0xff] %vm1898_vm3, %v1876_v29  ;;  %v1877_v31 = vmax.f32 %v1751_v30, 0.0  ;;  %v1768_v39 = vpop.f32.mrb[95].mxu0 }
 0x1c9   : > { %v1466_v33 = vpop.f32.mrb[88].mxu1 }
 0x1ca   : > { %1942 = vst.msk [vmem:[%s2900_s30 + $0x158] sm:$0xff] %vm1898_vm3, %v1877_v31  ;;  %v1467_v35 = vadd.f32 %v2888_v22, %v1466_v33  ;;  %v1468_v36 = vpop.f32.mrb[89].mxu1 }
 0x1cb   : > { %v1469_v38 = vpop.f32.mrb[90].mxu1 }
 0x1cc   : > { %v1756_v40 = vadd.f32 %v1755_v17, %v1467_v35  ;;  %v1470_v41 = vadd.f32 %v2888_v22, %v1469_v38  ;;  %v1471_v42 = vpop.f32.mrb[91].mxu1 }
 0x1cd   : > { %v1771_v46 = vpop.f32.mrb[96].mxu0 }
 0x1ce   : > { %v1878_v43 = vmax.f32 %v1756_v40, 0.0  ;;  %v1759_v44 = vadd.f32 %v1758_v23, %v1470_v41  ;;  %v1773_v48 = vpop.f32.mrb[97].mxu0 }
 0x1cf   : > { %v1774_v51 = vpop.f32.mrb[98].mxu0 }
 0x1d0   : > { %1943 = vst.msk [vmem:[%s2900_s30 + $0x160] sm:$0xff] %vm1898_vm3, %v1878_v43  ;;  %v1879_v45 = vmax.f32 %v1759_v44, 0.0  ;;  %v1776_v53 = vpop.f32.mrb[99].mxu0 }
 0x1d1   : > { %v1474_v47 = vpop.f32.mrb[92].mxu1 }
 0x1d2   : > { %1944 = vst.msk [vmem:[%s2900_s30 + $0x168] sm:$0xff] %vm1898_vm3, %v1879_v45  ;;  %v1475_v49 = vadd.f32 %v2888_v22, %v1474_v47  ;;  %v1476_v50 = vpop.f32.mrb[93].mxu1 }
 0x1d3   : > { %v1477_v52 = vpop.f32.mrb[94].mxu1 }
 0x1d4   : > { %v1764_v54 = vadd.f32 %v1763_v32, %v1475_v49  ;;  %v1478_v55 = vadd.f32 %v2888_v22, %v1477_v52  ;;  %v1479_v56 = vpop.f32.mrb[95].mxu1 }
 0x1d5   : > { %v1779_v60 = vpop.f32.mrb[100].mxu0 }
 0x1d6   : > { %v1880_v57 = vmax.f32 %v1764_v54, 0.0  ;;  %v1767_v58 = vadd.f32 %v1766_v37, %v1478_v55  ;;  %v1781_v62 = vpop.f32.mrb[101].mxu0 }
 0x1d7   : > { %v1782_v1 = vpop.f32.mrb[102].mxu0 }
 0x1d8   : > { %1945 = vst.msk [vmem:[%s2900_s30 + $0x170] sm:$0xff] %vm1898_vm3, %v1880_v57  ;;  %v1881_v59 = vmax.f32 %v1767_v58, 0.0  ;;  %v1784_v3 = vpop.f32.mrb[103].mxu0 }
 0x1d9   : > { %v1482_v61 = vpop.f32.mrb[96].mxu1 }
 0x1da   : > { %1946 = vst.msk [vmem:[%s2900_s30 + $0x178] sm:$0xff] %vm1898_vm3, %v1881_v59  ;;  %v1483_v63 = vadd.f32 %v2888_v22, %v1482_v61  ;;  %v1484_v0 = vpop.f32.mrb[97].mxu1 }
 0x1db   : > { %v1485_v2 = vpop.f32.mrb[98].mxu1 }
 0x1dc   : > { %v1772_v4 = vadd.f32 %v1771_v46, %v1483_v63  ;;  %v1486_v5 = vadd.f32 %v2888_v22, %v1485_v2  ;;  %v1487_v6 = vpop.f32.mrb[99].mxu1 }
 0x1dd   : > { %v1787_v10 = vpop.f32.mrb[104].mxu0 }
 0x1de   : > { %v1882_v7 = vmax.f32 %v1772_v4, 0.0  ;;  %v1775_v8 = vadd.f32 %v1774_v51, %v1486_v5  ;;  %v1789_v12 = vpop.f32.mrb[105].mxu0 }
 0x1df   : > { %v1790_v15 = vpop.f32.mrb[106].mxu0 }
 0x1e0   : > { %1947 = vst.msk [vmem:[%s2900_s30 + $0x180] sm:$0xff] %vm1898_vm3, %v1882_v7  ;;  %v1883_v9 = vmax.f32 %v1775_v8, 0.0  ;;  %v1792_v17 = vpop.f32.mrb[107].mxu0 }
 0x1e1   : > { %v1490_v11 = vpop.f32.mrb[100].mxu1 }
 0x1e2   : > { %1948 = vst.msk [vmem:[%s2900_s30 + $0x188] sm:$0xff] %vm1898_vm3, %v1883_v9  ;;  %v1491_v13 = vadd.f32 %v2888_v22, %v1490_v11  ;;  %v1492_v14 = vpop.f32.mrb[101].mxu1 }
 0x1e3   : > { %v1493_v16 = vpop.f32.mrb[102].mxu1 }
 0x1e4   : > { %v1780_v18 = vadd.f32 %v1779_v60, %v1491_v13  ;;  %v1494_v19 = vadd.f32 %v2888_v22, %v1493_v16  ;;  %v1495_v20 = vpop.f32.mrb[103].mxu1 }
 0x1e5   : > { %v1795_v25 = vpop.f32.mrb[108].mxu0  ;;  %v2581_v20 = vld [vmem:[%s3111_s2] ss:$0 sm:$0xff] }
 0x1e6   : > { %v1884_v21 = vmax.f32 %v1780_v18, 0.0  ;;  %v1783_v23 = vadd.f32 %v1782_v1, %v1494_v19  ;;  %v1797_v27 = vpop.f32.mrb[109].mxu0 }
 0x1e7   : > { %v1798_v30 = vpop.f32.mrb[110].mxu0 }
 0x1e8   : > { %1949 = vst.msk [vmem:[%s2900_s30 + $0x190] sm:$0xff] %vm1898_vm3, %v1884_v21  ;;  %v1885_v24 = vmax.f32 %v1783_v23, 0.0  ;;  %v1800_v32 = vpop.f32.mrb[111].mxu0 }
 0x1e9   : > { %v1498_v26 = vpop.f32.mrb[104].mxu1 }
 0x1ea   : > { %1950 = vst.msk [vmem:[%s2900_s30 + $0x198] sm:$0xff] %vm1898_vm3, %v1885_v24  ;;  %v1499_v28 = vadd.f32 %v2888_v22, %v1498_v26  ;;  %v1500_v29 = vpop.f32.mrb[105].mxu1 }
 0x1eb   : > { %v1501_v31 = vpop.f32.mrb[106].mxu1 }
 0x1ec   : > { %v1788_v33 = vadd.f32 %v1787_v10, %v1499_v28  ;;  %v1502_v34 = vadd.f32 %v2888_v22, %v1501_v31  ;;  %v1503_v35 = vpop.f32.mrb[107].mxu1 }
 0x1ed   : > { %v1803_v39 = vpop.f32.mrb[112].mxu0 }
 0x1ee   : > { %v1886_v36 = vmax.f32 %v1788_v33, 0.0  ;;  %v1791_v37 = vadd.f32 %v1790_v15, %v1502_v34  ;;  %v1805_v41 = vpop.f32.mrb[113].mxu0 }
 0x1ef   : > { %v1806_v44 = vpop.f32.mrb[114].mxu0 }
 0x1f0   : > { %1951 = vst.msk [vmem:[%s2900_s30 + $0x1a0] sm:$0xff] %vm1898_vm3, %v1886_v36  ;;  %v1887_v38 = vmax.f32 %v1791_v37, 0.0  ;;  %v1808_v46 = vpop.f32.mrb[115].mxu0 }
 0x1f1   : > { %v1506_v40 = vpop.f32.mrb[108].mxu1 }
 0x1f2   : > { %1952 = vst.msk [vmem:[%s2900_s30 + $0x1a8] sm:$0xff] %vm1898_vm3, %v1887_v38  ;;  %v1507_v42 = vadd.f32 %v2888_v22, %v1506_v40  ;;  %v1508_v43 = vpop.f32.mrb[109].mxu1 }
 0x1f3   : > { %v1509_v45 = vpop.f32.mrb[110].mxu1 }
 0x1f4   : > { %v1796_v47 = vadd.f32 %v1795_v25, %v1507_v42  ;;  %v1510_v48 = vadd.f32 %v2888_v22, %v1509_v45  ;;  %v1511_v49 = vpop.f32.mrb[111].mxu1 }
 0x1f5   : > { %v1811_v53 = vpop.f32.mrb[116].mxu0 }
 0x1f6   : > { %v1888_v50 = vmax.f32 %v1796_v47, 0.0  ;;  %v1799_v51 = vadd.f32 %v1798_v30, %v1510_v48  ;;  %v1813_v55 = vpop.f32.mrb[117].mxu0 }
 0x1f7   : > { %v1814_v58 = vpop.f32.mrb[118].mxu0 }
 0x1f8   : > { %1953 = vst.msk [vmem:[%s2900_s30 + $0x1b0] sm:$0xff] %vm1898_vm3, %v1888_v50  ;;  %v1889_v52 = vmax.f32 %v1799_v51, 0.0  ;;  %v1816_v60 = vpop.f32.mrb[119].mxu0 }
 0x1f9   : > { %v1514_v54 = vpop.f32.mrb[112].mxu1 }
 0x1fa   : > { %1954 = vst.msk [vmem:[%s2900_s30 + $0x1b8] sm:$0xff] %vm1898_vm3, %v1889_v52  ;;  %v1515_v56 = vadd.f32 %v2888_v22, %v1514_v54  ;;  %v1516_v57 = vpop.f32.mrb[113].mxu1 }
 0x1fb   : > { %v1517_v59 = vpop.f32.mrb[114].mxu1 }
 0x1fc   : > { %v1804_v61 = vadd.f32 %v1803_v39, %v1515_v56  ;;  %v1518_v62 = vadd.f32 %v2888_v22, %v1517_v59  ;;  %v1519_v63 = vpop.f32.mrb[115].mxu1 }
 0x1fd   : > { %v1819_v3 = vpop.f32.mrb[120].mxu0 }
 0x1fe   : > { %v1890_v0 = vmax.f32 %v1804_v61, 0.0  ;;  %v1807_v1 = vadd.f32 %v1806_v44, %v1518_v62  ;;  %v1821_v5 = vpop.f32.mrb[121].mxu0 }
 0x1ff   : > { %v1822_v8 = vpop.f32.mrb[122].mxu0 }
 0x200   : > { %1955 = vst.msk [vmem:[%s2900_s30 + $0x1c0] sm:$0xff] %vm1898_vm3, %v1890_v0  ;;  %v1891_v2 = vmax.f32 %v1807_v1, 0.0  ;;  %v1824_v10 = vpop.f32.mrb[123].mxu0 }
 0x201   : > { %v1522_v4 = vpop.f32.mrb[116].mxu1 }
 0x202   : > { %1956 = vst.msk [vmem:[%s2900_s30 + $0x1c8] sm:$0xff] %vm1898_vm3, %v1891_v2  ;;  %v1523_v6 = vadd.f32 %v2888_v22, %v1522_v4  ;;  %v1524_v7 = vpop.f32.mrb[117].mxu1 }
 0x203   : > { %v1525_v9 = vpop.f32.mrb[118].mxu1 }
 0x204   : > { %v1812_v11 = vadd.f32 %v1811_v53, %v1523_v6  ;;  %v1526_v12 = vadd.f32 %v2888_v22, %v1525_v9  ;;  %v1527_v13 = vpop.f32.mrb[119].mxu1 }
 0x205   : > { %v1827_v17 = vpop.f32.mrb[124].mxu0 }
 0x206   : > { %v1892_v14 = vmax.f32 %v1812_v11, 0.0  ;;  %v1815_v15 = vadd.f32 %v1814_v58, %v1526_v12  ;;  %v1829_v19 = vpop.f32.mrb[125].mxu0 }
 0x207   : > { %v1830_v22 = vpop.f32.mrb[126].mxu0 }
 0x208   : > { %1957 = vst.msk [vmem:[%s2900_s30 + $0x1d0] sm:$0xff] %vm1898_vm3, %v1892_v14  ;;  %v1893_v16 = vmax.f32 %v1815_v15, 0.0  ;;  %v1832_v25 = vpop.f32.mrb[127].mxu0 }
 0x209   : > { %v1530_v18 = vpop.f32.mrb[120].mxu1 }
 0x20a   : > { %1958 = vst.msk [vmem:[%s2900_s30 + $0x1d8] sm:$0xff] %vm1898_vm3, %v1893_v16  ;;  %v1531_v21 = vadd.f32 %v2581_v20, %v1530_v18  ;;  %v1532_v23 = vpop.f32.mrb[121].mxu1 }
 0x20b   : > { %v1533_v24 = vpop.f32.mrb[122].mxu1 }
 0x20c   : > { %v1820_v26 = vadd.f32 %v1819_v3, %v1531_v21  ;;  %v1534_v27 = vadd.f32 %v2581_v20, %v1533_v24  ;;  %v1535_v28 = vpop.f32.mrb[123].mxu1 }
 0x20e   : > { %v1894_v29 = vmax.f32 %v1820_v26, 0.0  ;;  %v1823_v30 = vadd.f32 %v1822_v8, %v1534_v27 }
 0x210   : > { %1959 = vst.msk [vmem:[%s2900_s30 + $0x1e0] sm:$0xff] %vm1898_vm3, %v1894_v29  ;;  %v1895_v31 = vmax.f32 %v1823_v30, 0.0 }
 0x211   : > { %v1538_v32 = vpop.f32.mrb[124].mxu1 }
 0x212   : > { %1960 = vst.msk [vmem:[%s2900_s30 + $0x1e8] sm:$0xff] %vm1898_vm3, %v1895_v31  ;;  %v1539_v33 = vadd.f32 %v2581_v20, %v1538_v32  ;;  %v1540_v34 = vpop.f32.mrb[125].mxu1 }
 0x213   : > { %v1541_v35 = vpop.f32.mrb[126].mxu1 }
 0x214   : > { %v1828_v36 = vadd.f32 %v1827_v17, %v1539_v33  ;;  %v1542_v37 = vadd.f32 %v2581_v20, %v1541_v35  ;;  %v1543_v38 = vpop.f32.mrb[127].mxu1 }
 0x216   : > { %v1896_v39 = vmax.f32 %v1828_v36, 0.0  ;;  %v1831_v40 = vadd.f32 %v1830_v22, %v1542_v37 }
 0x218   : > { %1961 = vst.msk [vmem:[%s2900_s30 + $0x1f0] sm:$0xff] %vm1898_vm3, %v1896_v39  ;;  %v1897_v41 = vmax.f32 %v1831_v40, 0.0 }
 0x21a   : > { %1962 = vst.msk [vmem:[%s2900_s30 + $0x1f8] sm:$0xff] %vm1898_vm3, %v1897_v41 }
 0x21b PF: > { %s13_s12 = sadd.s32 1, %s2588_s12  }
 0x21c   : > { %p10_p4 = scmp.ge.s32.totalorder %s13_s12, 18  }
 0x21e   :  { %12 = sbr.rel (!%p10_p4) target bundleno = 1 (0x1), region = 62 }

</bundles_post_ra>
